<compile_context>
chip_gen: v7x
topology: tpu7x:2x2x1
jax: 0.10.0
libtpu: 0.0.40
codegen_flags: <defaults>
</compile_context>

<pallas_src>
import jax
import jax.numpy as jnp
from jax import lax
from jax.experimental import pallas as pl
from jax.experimental.pallas import tpu as pltpu


# --------------------------------------------------------------------------
# Pallas kernel: full multi-layer LSTM over time + output linear projection,
# single invocation, everything VMEM-resident.
# --------------------------------------------------------------------------
def _lstm_kernel(x_ref, w_ref, b_ref, w_out_ref, b_out_ref, out_ref):
    # x_ref:     (T, B, H)        time-major embedded inputs
    # w_ref:     (L*4, 2H, H)     per-(layer,gate) fused [W_ih^T; W_hh^T]
    # b_ref:     (L*4, 1, H)      per-(layer,gate) b_ih + b_hh
    # w_out_ref: (H, Dout)        pre-transposed projection
    # b_out_ref: (1, Dout)
    # out_ref:   (T, B, Dout)
    T, B, H = x_ref.shape
    L = w_ref.shape[0] // 4

    # Hoist loop-invariant loads out of the recurrence (done once per call).
    w = [[w_ref[l * 4 + g] for g in range(4)] for l in range(L)]   # (2H, H)
    b = [[b_ref[l * 4 + g] for g in range(4)] for l in range(L)]   # (1, H)
    w_out = w_out_ref[...]                                         # (H, Dout)
    b_out = b_out_ref[...]                                         # (1, Dout)

    # PyTorch default: h0 = c0 = 0.  Carried in vregs (static unroll).
    h = [jnp.zeros((B, H), jnp.float32) for _ in range(L)]
    c = [jnp.zeros((B, H), jnp.float32) for _ in range(L)]

    for t in range(T):
        layer_in = x_ref[t]                                        # (B, H)
        for l in range(L):
            # Fused contraction input: [x_t, h_{t-1}] -> one K=2H dot per gate.
            xh = jnp.concatenate([layer_in, h[l]], axis=-1)        # (B, 2H)
            # PyTorch gate order: input, forget, cell(g), output.  Each gate is
            # a full lane-aligned (B, H) result -- no sub-vreg slicing.
            i_g = jax.nn.sigmoid(
                jnp.dot(xh, w[l][0], preferred_element_type=jnp.float32) + b[l][0])
            f_g = jax.nn.sigmoid(
                jnp.dot(xh, w[l][1], preferred_element_type=jnp.float32) + b[l][1])
            g_g = jnp.tanh(
                jnp.dot(xh, w[l][2], preferred_element_type=jnp.float32) + b[l][2])
            o_g = jax.nn.sigmoid(
                jnp.dot(xh, w[l][3], preferred_element_type=jnp.float32) + b[l][3])
            c[l] = f_g * c[l] + i_g * g_g
            h[l] = o_g * jnp.tanh(c[l])
            layer_in = h[l]

        # Output projection; store hits the VMEM-resident output block (single
        # HBM writeback happens once when the kernel finishes).
        out_ref[t] = (
            jnp.dot(layer_in, w_out, preferred_element_type=jnp.float32) + b_out
        )
    # TODO(synk): at production sizes, stash the top-layer h for all t in a
    # VMEM scratch and do one lane-dense (T*B, H) @ (H, Dout) projection+store.


def lstm_linear_pallas(x_t, w_cat, b_cat, w_out_t, b_out):
    """x_t: (T, B, H) time-major. Returns (T, B, Dout)."""
    T, B, H = x_t.shape
    Dout = w_out_t.shape[1]
    return pl.pallas_call(
        _lstm_kernel,
        out_shape=jax.ShapeDtypeStruct((T, B, Dout), jnp.float32),
        # No grid / no BlockSpecs: every operand is a single whole-array block
        # resident in VMEM for the entire call (a few KiB here).
    )(x_t, w_cat, b_cat, w_out_t, b_out)


# --------------------------------------------------------------------------
# Weight packing (done once, in XLA, outside the kernel).
# --------------------------------------------------------------------------
def pack_lstm_params(w_ih, w_hh, b_ih, b_hh):
    """PyTorch layout -> per-gate, pre-transposed, K-fused kernel layout.

    w_ih/w_hh: (L, 4H, H) with gate-order rows [i; f; g; o].
    Returns w_cat (L*4, 2H, H) and b_cat (L*4, 1, H).
    """
    L, fourH, Hin = w_ih.shape
    H = fourH // 4
    wi_t = jnp.transpose(w_ih.reshape(L, 4, H, Hin), (0, 1, 3, 2))  # (L,4,Hin,H)
    wh_t = jnp.transpose(w_hh.reshape(L, 4, H, H), (0, 1, 3, 2))    # (L,4,H,H)
    w_cat = jnp.concatenate([wi_t, wh_t], axis=2)                   # (L,4,2H,H)
    w_cat = w_cat.reshape(L * 4, Hin + H, H)
    b_cat = (b_ih + b_hh).reshape(L, 4, H).reshape(L * 4, 1, H)
    return w_cat, b_cat


# --------------------------------------------------------------------------
# Parameter construction (deterministic, mirrors nn.Module __init__ shapes).
# --------------------------------------------------------------------------
def init_params(key, vocab=256, input_dim=32, hidden=32, output_dim=16,
                num_layers=2):
    assert input_dim == hidden, "stacked-layer weights require input_dim == hidden"
    ks = jax.random.split(key, 8)
    s = 1.0 / jnp.sqrt(hidden)
    return {
        "embedding": jax.random.uniform(ks[0], (vocab, input_dim),
                                        jnp.float32, -s, s),
        "w_ih": jax.random.uniform(ks[1], (num_layers, 4 * hidden, input_dim),
                                   jnp.float32, -s, s),
        "w_hh": jax.random.uniform(ks[2], (num_layers, 4 * hidden, hidden),
                                   jnp.float32, -s, s),
        "b_ih": jax.random.uniform(ks[3], (num_layers, 4 * hidden),
                                   jnp.float32, -s, s),
        "b_hh": jax.random.uniform(ks[4], (num_layers, 4 * hidden),
                                   jnp.float32, -s, s),
        "w_out": jax.random.uniform(ks[5], (output_dim, hidden),
                                    jnp.float32, -s, s),
        "b_out": jax.random.uniform(ks[6], (output_dim,),
                                    jnp.float32, -s, s),
    }


# --------------------------------------------------------------------------
# Full forward (matches SimpleTTSModel.forward with speaker_embedding=True).
# --------------------------------------------------------------------------
@jax.jit
def simple_tts_forward(tokens, speaker_emb, params):
    # tokens: (B, T) int32; speaker_emb: (B, input_dim)
    x = params["embedding"][tokens]                  # (B, T, H) embedding lookup
    x = x + speaker_emb[:, None, :]                  # speaker_emb.unsqueeze(1)
    x_t = jnp.transpose(x, (1, 0, 2))                # (T, B, H) time-major

    w_cat, b_cat = pack_lstm_params(params["w_ih"], params["w_hh"],
                                    params["b_ih"], params["b_hh"])
    w_out_t = params["w_out"].T                      # (H, Dout) pre-transposed
    b_out = params["b_out"][None, :]                 # (1, Dout)

    out_t = lstm_linear_pallas(x_t, w_cat, b_cat, w_out_t, b_out)  # (T, B, Dout)
    return jnp.transpose(out_t, (1, 0, 2))           # (B, T, Dout) batch_first


# --------------------------------------------------------------------------
# Pure-JAX reference for correctness checking (PyTorch-layout params).
# --------------------------------------------------------------------------
def reference_forward(tokens, speaker_emb, params):
    x = params["embedding"][tokens] + speaker_emb[:, None, :]   # (B, T, H)
    B, T, _ = x.shape
    L, fourH, _ = params["w_ih"].shape
    H = fourH // 4
    layer_in = x
    for l in range(L):
        w_ih = params["w_ih"][l]
        w_hh = params["w_hh"][l]
        bias = params["b_ih"][l] + params["b_hh"][l]

        def step(carry, xt, w_ih=w_ih, w_hh=w_hh, bias=bias):
            h, c = carry
            gates = xt @ w_ih.T + h @ w_hh.T + bias
            i = jax.nn.sigmoid(gates[:, 0 * H:1 * H])
            f = jax.nn.sigmoid(gates[:, 1 * H:2 * H])
            g = jnp.tanh(gates[:, 2 * H:3 * H])
            o = jax.nn.sigmoid(gates[:, 3 * H:4 * H])
            c = f * c + i * g
            h = o * jnp.tanh(c)
            return (h, c), h

        h0 = jnp.zeros((B, H), jnp.float32)
        c0 = jnp.zeros((B, H), jnp.float32)
        _, hs = lax.scan(step, (h0, c0), jnp.transpose(layer_in, (1, 0, 2)))
        layer_in = jnp.transpose(hs, (1, 0, 2))
    return layer_in @ params["w_out"].T + params["b_out"]


if __name__ == "__main__":
    key = jax.random.PRNGKey(0)
    k_tok, k_spk, k_par = jax.random.split(key, 3)

    B, T = 2, 8
    INPUT_DIM = HIDDEN = 32
    OUTPUT_DIM = 16
    NUM_LAYERS = 2
    VOCAB = 256

    params = init_params(k_par, vocab=VOCAB, input_dim=INPUT_DIM,
                         hidden=HIDDEN, output_dim=OUTPUT_DIM,
                         num_layers=NUM_LAYERS)
    tokens = jax.random.randint(k_tok, (B, T), 0, VOCAB, dtype=jnp.int32)
    speaker_emb = jax.random.normal(k_spk, (B, INPUT_DIM), jnp.float32)

    out = simple_tts_forward(tokens, speaker_emb, params)
    out = jax.block_until_ready(out)

    ref = reference_forward(tokens, speaker_emb, params)
    assert out.shape == (B, T, OUTPUT_DIM), out.shape
    assert jnp.allclose(out, ref, atol=1e-4, rtol=1e-4), \
        f"max err {jnp.max(jnp.abs(out - ref))}"

    print("KERNEL_OK")
</pallas_src>

<mosaic_0001>
module attributes {stable_mosaic.version = 11 : i64} {
  func.func @_lstm_kernel(%arg0: memref<8x2x32xf32, #tpu.memory_space<vmem>>, %arg1: memref<8x64x32xf32, #tpu.memory_space<vmem>>, %arg2: memref<8x1x32xf32, #tpu.memory_space<vmem>>, %arg3: memref<32x16xf32, #tpu.memory_space<vmem>>, %arg4: memref<1x16xf32, #tpu.memory_space<vmem>>, %arg5: memref<8x2x16xf32, #tpu.memory_space<vmem>>) attributes {dimension_semantics = [], scalar_prefetch = 0 : i64, scratch_operands = 0 : i64, tpu.core_type = #tpu.core_type<tc>} {
    %c0 = arith.constant 0 : index
    %c0_0 = arith.constant 0 : index
    %c0_1 = arith.constant 0 : index
    %0 = vector.load %arg1[%c0, %c0_0, %c0_1] : memref<8x64x32xf32, #tpu.memory_space<vmem>>, vector<1x64x32xf32>
    %1 = vector.shape_cast %0 : vector<1x64x32xf32> to vector<64x32xf32>
    %c1 = arith.constant 1 : index
    %c0_2 = arith.constant 0 : index
    %c0_3 = arith.constant 0 : index
    %2 = vector.load %arg1[%c1, %c0_2, %c0_3] : memref<8x64x32xf32, #tpu.memory_space<vmem>>, vector<1x64x32xf32>
    %3 = vector.shape_cast %2 : vector<1x64x32xf32> to vector<64x32xf32>
    %c2 = arith.constant 2 : index
    %c0_4 = arith.constant 0 : index
    %c0_5 = arith.constant 0 : index
    %4 = vector.load %arg1[%c2, %c0_4, %c0_5] : memref<8x64x32xf32, #tpu.memory_space<vmem>>, vector<1x64x32xf32>
    %5 = vector.shape_cast %4 : vector<1x64x32xf32> to vector<64x32xf32>
    %c3 = arith.constant 3 : index
    %c0_6 = arith.constant 0 : index
    %c0_7 = arith.constant 0 : index
    %6 = vector.load %arg1[%c3, %c0_6, %c0_7] : memref<8x64x32xf32, #tpu.memory_space<vmem>>, vector<1x64x32xf32>
    %7 = vector.shape_cast %6 : vector<1x64x32xf32> to vector<64x32xf32>
    %c4 = arith.constant 4 : index
    %c0_8 = arith.constant 0 : index
    %c0_9 = arith.constant 0 : index
    %8 = vector.load %arg1[%c4, %c0_8, %c0_9] : memref<8x64x32xf32, #tpu.memory_space<vmem>>, vector<1x64x32xf32>
    %9 = vector.shape_cast %8 : vector<1x64x32xf32> to vector<64x32xf32>
    %c5 = arith.constant 5 : index
    %c0_10 = arith.constant 0 : index
    %c0_11 = arith.constant 0 : index
    %10 = vector.load %arg1[%c5, %c0_10, %c0_11] : memref<8x64x32xf32, #tpu.memory_space<vmem>>, vector<1x64x32xf32>
    %11 = vector.shape_cast %10 : vector<1x64x32xf32> to vector<64x32xf32>
    %c6 = arith.constant 6 : index
    %c0_12 = arith.constant 0 : index
    %c0_13 = arith.constant 0 : index
    %12 = vector.load %arg1[%c6, %c0_12, %c0_13] : memref<8x64x32xf32, #tpu.memory_space<vmem>>, vector<1x64x32xf32>
    %13 = vector.shape_cast %12 : vector<1x64x32xf32> to vector<64x32xf32>
    %c7 = arith.constant 7 : index
    %c0_14 = arith.constant 0 : index
    %c0_15 = arith.constant 0 : index
    %14 = vector.load %arg1[%c7, %c0_14, %c0_15] : memref<8x64x32xf32, #tpu.memory_space<vmem>>, vector<1x64x32xf32>
    %15 = vector.shape_cast %14 : vector<1x64x32xf32> to vector<64x32xf32>
    %c0_16 = arith.constant 0 : index
    %c0_17 = arith.constant 0 : index
    %c0_18 = arith.constant 0 : index
    %16 = vector.load %arg2[%c0_16, %c0_17, %c0_18] : memref<8x1x32xf32, #tpu.memory_space<vmem>>, vector<1x1x32xf32>
    %17 = vector.shape_cast %16 : vector<1x1x32xf32> to vector<1x32xf32>
    %c1_19 = arith.constant 1 : index
    %c0_20 = arith.constant 0 : index
    %c0_21 = arith.constant 0 : index
    %18 = vector.load %arg2[%c1_19, %c0_20, %c0_21] : memref<8x1x32xf32, #tpu.memory_space<vmem>>, vector<1x1x32xf32>
    %19 = vector.shape_cast %18 : vector<1x1x32xf32> to vector<1x32xf32>
    %c2_22 = arith.constant 2 : index
    %c0_23 = arith.constant 0 : index
    %c0_24 = arith.constant 0 : index
    %20 = vector.load %arg2[%c2_22, %c0_23, %c0_24] : memref<8x1x32xf32, #tpu.memory_space<vmem>>, vector<1x1x32xf32>
    %21 = vector.shape_cast %20 : vector<1x1x32xf32> to vector<1x32xf32>
    %c3_25 = arith.constant 3 : index
    %c0_26 = arith.constant 0 : index
    %c0_27 = arith.constant 0 : index
    %22 = vector.load %arg2[%c3_25, %c0_26, %c0_27] : memref<8x1x32xf32, #tpu.memory_space<vmem>>, vector<1x1x32xf32>
    %23 = vector.shape_cast %22 : vector<1x1x32xf32> to vector<1x32xf32>
    %c4_28 = arith.constant 4 : index
    %c0_29 = arith.constant 0 : index
    %c0_30 = arith.constant 0 : index
    %24 = vector.load %arg2[%c4_28, %c0_29, %c0_30] : memref<8x1x32xf32, #tpu.memory_space<vmem>>, vector<1x1x32xf32>
    %25 = vector.shape_cast %24 : vector<1x1x32xf32> to vector<1x32xf32>
    %c5_31 = arith.constant 5 : index
    %c0_32 = arith.constant 0 : index
    %c0_33 = arith.constant 0 : index
    %26 = vector.load %arg2[%c5_31, %c0_32, %c0_33] : memref<8x1x32xf32, #tpu.memory_space<vmem>>, vector<1x1x32xf32>
    %27 = vector.shape_cast %26 : vector<1x1x32xf32> to vector<1x32xf32>
    %c6_34 = arith.constant 6 : index
    %c0_35 = arith.constant 0 : index
    %c0_36 = arith.constant 0 : index
    %28 = vector.load %arg2[%c6_34, %c0_35, %c0_36] : memref<8x1x32xf32, #tpu.memory_space<vmem>>, vector<1x1x32xf32>
    %29 = vector.shape_cast %28 : vector<1x1x32xf32> to vector<1x32xf32>
    %c7_37 = arith.constant 7 : index
    %c0_38 = arith.constant 0 : index
    %c0_39 = arith.constant 0 : index
    %30 = vector.load %arg2[%c7_37, %c0_38, %c0_39] : memref<8x1x32xf32, #tpu.memory_space<vmem>>, vector<1x1x32xf32>
    %31 = vector.shape_cast %30 : vector<1x1x32xf32> to vector<1x32xf32>
    %c0_40 = arith.constant 0 : index
    %c0_41 = arith.constant 0 : index
    %32 = vector.load %arg3[%c0_40, %c0_41] : memref<32x16xf32, #tpu.memory_space<vmem>>, vector<32x16xf32>
    %c0_42 = arith.constant 0 : index
    %c0_43 = arith.constant 0 : index
    %33 = vector.load %arg4[%c0_42, %c0_43] : memref<1x16xf32, #tpu.memory_space<vmem>>, vector<1x16xf32>
    %cst = arith.constant 0.000000e+00 : f32
    %34 = vector.broadcast %cst : f32 to vector<2x32xf32>
    %cst_44 = arith.constant 0.000000e+00 : f32
    %35 = vector.broadcast %cst_44 : f32 to vector<2x32xf32>
    %cst_45 = arith.constant 0.000000e+00 : f32
    %36 = vector.broadcast %cst_45 : f32 to vector<2x32xf32>
    %cst_46 = arith.constant 0.000000e+00 : f32
    %37 = vector.broadcast %cst_46 : f32 to vector<2x32xf32>
    %c0_47 = arith.constant 0 : index
    %c0_48 = arith.constant 0 : index
    %c0_49 = arith.constant 0 : index
    %38 = vector.load %arg0[%c0_47, %c0_48, %c0_49] : memref<8x2x32xf32, #tpu.memory_space<vmem>>, vector<1x2x32xf32>
    %39 = vector.shape_cast %38 : vector<1x2x32xf32> to vector<2x32xf32>
    %40 = tpu.concatenate %39, %34 in 1 : vector<2x32xf32>, vector<2x32xf32> -> vector<2x64xf32>
    %cst_50 = arith.constant dense<0.000000e+00> : vector<2x32xf32>
    %41 = tpu.matmul %40, %1, %cst_50 {dimension_numbers = #tpu.dot_dimension_numbers<[1], [0], [0], [1], [0, 0, 1, 1], [], []>} : vector<2x64xf32>, vector<64x32xf32>, vector<2x32xf32> -> vector<2x32xf32>
    %42 = vector.broadcast %17 : vector<1x32xf32> to vector<2x32xf32>
    %43 = arith.addf %41, %42 : vector<2x32xf32>
    %44 = arith.negf %43 : vector<2x32xf32>
    %45 = math.exp %44 : vector<2x32xf32>
    %cst_51 = arith.constant 1.000000e+00 : f32
    %46 = vector.broadcast %cst_51 : f32 to vector<2x32xf32>
    %47 = arith.addf %46, %45 : vector<2x32xf32>
    %48 = arith.divf %46, %47 : vector<2x32xf32>
    %cst_52 = arith.constant dense<0.000000e+00> : vector<2x32xf32>
    %49 = tpu.matmul %40, %3, %cst_52 {dimension_numbers = #tpu.dot_dimension_numbers<[1], [0], [0], [1], [0, 0, 1, 1], [], []>} : vector<2x64xf32>, vector<64x32xf32>, vector<2x32xf32> -> vector<2x32xf32>
    %50 = vector.broadcast %19 : vector<1x32xf32> to vector<2x32xf32>
    %51 = arith.addf %49, %50 : vector<2x32xf32>
    %52 = arith.negf %51 : vector<2x32xf32>
    %53 = math.exp %52 : vector<2x32xf32>
    %cst_53 = arith.constant 1.000000e+00 : f32
    %54 = vector.broadcast %cst_53 : f32 to vector<2x32xf32>
    %55 = arith.addf %54, %53 : vector<2x32xf32>
    %56 = arith.divf %54, %55 : vector<2x32xf32>
    %cst_54 = arith.constant dense<0.000000e+00> : vector<2x32xf32>
    %57 = tpu.matmul %40, %5, %cst_54 {dimension_numbers = #tpu.dot_dimension_numbers<[1], [0], [0], [1], [0, 0, 1, 1], [], []>} : vector<2x64xf32>, vector<64x32xf32>, vector<2x32xf32> -> vector<2x32xf32>
    %58 = vector.broadcast %21 : vector<1x32xf32> to vector<2x32xf32>
    %59 = arith.addf %57, %58 : vector<2x32xf32>
    %60 = math.tanh %59 : vector<2x32xf32>
    %cst_55 = arith.constant dense<0.000000e+00> : vector<2x32xf32>
    %61 = tpu.matmul %40, %7, %cst_55 {dimension_numbers = #tpu.dot_dimension_numbers<[1], [0], [0], [1], [0, 0, 1, 1], [], []>} : vector<2x64xf32>, vector<64x32xf32>, vector<2x32xf32> -> vector<2x32xf32>
    %62 = vector.broadcast %23 : vector<1x32xf32> to vector<2x32xf32>
    %63 = arith.addf %61, %62 : vector<2x32xf32>
    %64 = arith.negf %63 : vector<2x32xf32>
    %65 = math.exp %64 : vector<2x32xf32>
    %cst_56 = arith.constant 1.000000e+00 : f32
    %66 = vector.broadcast %cst_56 : f32 to vector<2x32xf32>
    %67 = arith.addf %66, %65 : vector<2x32xf32>
    %68 = arith.divf %66, %67 : vector<2x32xf32>
    %69 = arith.mulf %56, %36 : vector<2x32xf32>
    %70 = arith.mulf %48, %60 : vector<2x32xf32>
    %71 = arith.addf %69, %70 : vector<2x32xf32>
    %72 = math.tanh %71 : vector<2x32xf32>
    %73 = arith.mulf %68, %72 : vector<2x32xf32>
    %74 = tpu.concatenate %73, %35 in 1 : vector<2x32xf32>, vector<2x32xf32> -> vector<2x64xf32>
    %cst_57 = arith.constant dense<0.000000e+00> : vector<2x32xf32>
    %75 = tpu.matmul %74, %9, %cst_57 {dimension_numbers = #tpu.dot_dimension_numbers<[1], [0], [0], [1], [0, 0, 1, 1], [], []>} : vector<2x64xf32>, vector<64x32xf32>, vector<2x32xf32> -> vector<2x32xf32>
    %76 = vector.broadcast %25 : vector<1x32xf32> to vector<2x32xf32>
    %77 = arith.addf %75, %76 : vector<2x32xf32>
    %78 = arith.negf %77 : vector<2x32xf32>
    %79 = math.exp %78 : vector<2x32xf32>
    %cst_58 = arith.constant 1.000000e+00 : f32
    %80 = vector.broadcast %cst_58 : f32 to vector<2x32xf32>
    %81 = arith.addf %80, %79 : vector<2x32xf32>
    %82 = arith.divf %80, %81 : vector<2x32xf32>
    %cst_59 = arith.constant dense<0.000000e+00> : vector<2x32xf32>
    %83 = tpu.matmul %74, %11, %cst_59 {dimension_numbers = #tpu.dot_dimension_numbers<[1], [0], [0], [1], [0, 0, 1, 1], [], []>} : vector<2x64xf32>, vector<64x32xf32>, vector<2x32xf32> -> vector<2x32xf32>
    %84 = vector.broadcast %27 : vector<1x32xf32> to vector<2x32xf32>
    %85 = arith.addf %83, %84 : vector<2x32xf32>
    %86 = arith.negf %85 : vector<2x32xf32>
    %87 = math.exp %86 : vector<2x32xf32>
    %cst_60 = arith.constant 1.000000e+00 : f32
    %88 = vector.broadcast %cst_60 : f32 to vector<2x32xf32>
    %89 = arith.addf %88, %87 : vector<2x32xf32>
    %90 = arith.divf %88, %89 : vector<2x32xf32>
    %cst_61 = arith.constant dense<0.000000e+00> : vector<2x32xf32>
    %91 = tpu.matmul %74, %13, %cst_61 {dimension_numbers = #tpu.dot_dimension_numbers<[1], [0], [0], [1], [0, 0, 1, 1], [], []>} : vector<2x64xf32>, vector<64x32xf32>, vector<2x32xf32> -> vector<2x32xf32>
    %92 = vector.broadcast %29 : vector<1x32xf32> to vector<2x32xf32>
    %93 = arith.addf %91, %92 : vector<2x32xf32>
    %94 = math.tanh %93 : vector<2x32xf32>
    %cst_62 = arith.constant dense<0.000000e+00> : vector<2x32xf32>
    %95 = tpu.matmul %74, %15, %cst_62 {dimension_numbers = #tpu.dot_dimension_numbers<[1], [0], [0], [1], [0, 0, 1, 1], [], []>} : vector<2x64xf32>, vector<64x32xf32>, vector<2x32xf32> -> vector<2x32xf32>
    %96 = vector.broadcast %31 : vector<1x32xf32> to vector<2x32xf32>
    %97 = arith.addf %95, %96 : vector<2x32xf32>
    %98 = arith.negf %97 : vector<2x32xf32>
    %99 = math.exp %98 : vector<2x32xf32>
    %cst_63 = arith.constant 1.000000e+00 : f32
    %100 = vector.broadcast %cst_63 : f32 to vector<2x32xf32>
    %101 = arith.addf %100, %99 : vector<2x32xf32>
    %102 = arith.divf %100, %101 : vector<2x32xf32>
    %103 = arith.mulf %90, %37 : vector<2x32xf32>
    %104 = arith.mulf %82, %94 : vector<2x32xf32>
    %105 = arith.addf %103, %104 : vector<2x32xf32>
    %106 = math.tanh %105 : vector<2x32xf32>
    %107 = arith.mulf %102, %106 : vector<2x32xf32>
    %cst_64 = arith.constant dense<0.000000e+00> : vector<2x16xf32>
    %108 = tpu.matmul %107, %32, %cst_64 {dimension_numbers = #tpu.dot_dimension_numbers<[1], [0], [0], [1], [0, 0, 1, 1], [], []>} : vector<2x32xf32>, vector<32x16xf32>, vector<2x16xf32> -> vector<2x16xf32>
    %109 = vector.broadcast %33 : vector<1x16xf32> to vector<2x16xf32>
    %110 = arith.addf %108, %109 : vector<2x16xf32>
    %c0_65 = arith.constant 0 : index
    %c0_66 = arith.constant 0 : index
    %c0_67 = arith.constant 0 : index
    %111 = vector.load %arg5[%c0_65, %c0_66, %c0_67] : memref<8x2x16xf32, #tpu.memory_space<vmem>>, vector<1x2x16xf32>
    %112 = vector.shape_cast %111 : vector<1x2x16xf32> to vector<2x16xf32>
    %113 = vector.shape_cast %110 : vector<2x16xf32> to vector<1x2x16xf32>
    tpu.vector_store %arg5[%c0_65, %c0_66, %c0_67], %113 {strides = array<i32>} : memref<8x2x16xf32, #tpu.memory_space<vmem>>, vector<1x2x16xf32>,
    %c1_68 = arith.constant 1 : index
    %c0_69 = arith.constant 0 : index
    %c0_70 = arith.constant 0 : index
    %114 = vector.load %arg0[%c1_68, %c0_69, %c0_70] : memref<8x2x32xf32, #tpu.memory_space<vmem>>, vector<1x2x32xf32>
    %115 = vector.shape_cast %114 : vector<1x2x32xf32> to vector<2x32xf32>
    %116 = tpu.concatenate %115, %73 in 1 : vector<2x32xf32>, vector<2x32xf32> -> vector<2x64xf32>
    %cst_71 = arith.constant dense<0.000000e+00> : vector<2x32xf32>
    %117 = tpu.matmul %116, %1, %cst_71 {dimension_numbers = #tpu.dot_dimension_numbers<[1], [0], [0], [1], [0, 0, 1, 1], [], []>} : vector<2x64xf32>, vector<64x32xf32>, vector<2x32xf32> -> vector<2x32xf32>
    %118 = vector.broadcast %17 : vector<1x32xf32> to vector<2x32xf32>
    %119 = arith.addf %117, %118 : vector<2x32xf32>
    %120 = arith.negf %119 : vector<2x32xf32>
    %121 = math.exp %120 : vector<2x32xf32>
    %cst_72 = arith.constant 1.000000e+00 : f32
    %122 = vector.broadcast %cst_72 : f32 to vector<2x32xf32>
    %123 = arith.addf %122, %121 : vector<2x32xf32>
    %124 = arith.divf %122, %123 : vector<2x32xf32>
    %cst_73 = arith.constant dense<0.000000e+00> : vector<2x32xf32>
    %125 = tpu.matmul %116, %3, %cst_73 {dimension_numbers = #tpu.dot_dimension_numbers<[1], [0], [0], [1], [0, 0, 1, 1], [], []>} : vector<2x64xf32>, vector<64x32xf32>, vector<2x32xf32> -> vector<2x32xf32>
    %126 = vector.broadcast %19 : vector<1x32xf32> to vector<2x32xf32>
    %127 = arith.addf %125, %126 : vector<2x32xf32>
    %128 = arith.negf %127 : vector<2x32xf32>
    %129 = math.exp %128 : vector<2x32xf32>
    %cst_74 = arith.constant 1.000000e+00 : f32
    %130 = vector.broadcast %cst_74 : f32 to vector<2x32xf32>
    %131 = arith.addf %130, %129 : vector<2x32xf32>
    %132 = arith.divf %130, %131 : vector<2x32xf32>
    %cst_75 = arith.constant dense<0.000000e+00> : vector<2x32xf32>
    %133 = tpu.matmul %116, %5, %cst_75 {dimension_numbers = #tpu.dot_dimension_numbers<[1], [0], [0], [1], [0, 0, 1, 1], [], []>} : vector<2x64xf32>, vector<64x32xf32>, vector<2x32xf32> -> vector<2x32xf32>
    %134 = vector.broadcast %21 : vector<1x32xf32> to vector<2x32xf32>
    %135 = arith.addf %133, %134 : vector<2x32xf32>
    %136 = math.tanh %135 : vector<2x32xf32>
    %cst_76 = arith.constant dense<0.000000e+00> : vector<2x32xf32>
    %137 = tpu.matmul %116, %7, %cst_76 {dimension_numbers = #tpu.dot_dimension_numbers<[1], [0], [0], [1], [0, 0, 1, 1], [], []>} : vector<2x64xf32>, vector<64x32xf32>, vector<2x32xf32> -> vector<2x32xf32>
    %138 = vector.broadcast %23 : vector<1x32xf32> to vector<2x32xf32>
    %139 = arith.addf %137, %138 : vector<2x32xf32>
    %140 = arith.negf %139 : vector<2x32xf32>
    %141 = math.exp %140 : vector<2x32xf32>
    %cst_77 = arith.constant 1.000000e+00 : f32
    %142 = vector.broadcast %cst_77 : f32 to vector<2x32xf32>
    %143 = arith.addf %142, %141 : vector<2x32xf32>
    %144 = arith.divf %142, %143 : vector<2x32xf32>
    %145 = arith.mulf %132, %71 : vector<2x32xf32>
    %146 = arith.mulf %124, %136 : vector<2x32xf32>
    %147 = arith.addf %145, %146 : vector<2x32xf32>
    %148 = math.tanh %147 : vector<2x32xf32>
    %149 = arith.mulf %144, %148 : vector<2x32xf32>
    %150 = tpu.concatenate %149, %107 in 1 : vector<2x32xf32>, vector<2x32xf32> -> vector<2x64xf32>
    %cst_78 = arith.constant dense<0.000000e+00> : vector<2x32xf32>
    %151 = tpu.matmul %150, %9, %cst_78 {dimension_numbers = #tpu.dot_dimension_numbers<[1], [0], [0], [1], [0, 0, 1, 1], [], []>} : vector<2x64xf32>, vector<64x32xf32>, vector<2x32xf32> -> vector<2x32xf32>
    %152 = vector.broadcast %25 : vector<1x32xf32> to vector<2x32xf32>
    %153 = arith.addf %151, %152 : vector<2x32xf32>
    %154 = arith.negf %153 : vector<2x32xf32>
    %155 = math.exp %154 : vector<2x32xf32>
    %cst_79 = arith.constant 1.000000e+00 : f32
    %156 = vector.broadcast %cst_79 : f32 to vector<2x32xf32>
    %157 = arith.addf %156, %155 : vector<2x32xf32>
    %158 = arith.divf %156, %157 : vector<2x32xf32>
    %cst_80 = arith.constant dense<0.000000e+00> : vector<2x32xf32>
    %159 = tpu.matmul %150, %11, %cst_80 {dimension_numbers = #tpu.dot_dimension_numbers<[1], [0], [0], [1], [0, 0, 1, 1], [], []>} : vector<2x64xf32>, vector<64x32xf32>, vector<2x32xf32> -> vector<2x32xf32>
    %160 = vector.broadcast %27 : vector<1x32xf32> to vector<2x32xf32>
    %161 = arith.addf %159, %160 : vector<2x32xf32>
    %162 = arith.negf %161 : vector<2x32xf32>
    %163 = math.exp %162 : vector<2x32xf32>
    %cst_81 = arith.constant 1.000000e+00 : f32
    %164 = vector.broadcast %cst_81 : f32 to vector<2x32xf32>
    %165 = arith.addf %164, %163 : vector<2x32xf32>
    %166 = arith.divf %164, %165 : vector<2x32xf32>
    %cst_82 = arith.constant dense<0.000000e+00> : vector<2x32xf32>
    %167 = tpu.matmul %150, %13, %cst_82 {dimension_numbers = #tpu.dot_dimension_numbers<[1], [0], [0], [1], [0, 0, 1, 1], [], []>} : vector<2x64xf32>, vector<64x32xf32>, vector<2x32xf32> -> vector<2x32xf32>
    %168 = vector.broadcast %29 : vector<1x32xf32> to vector<2x32xf32>
    %169 = arith.addf %167, %168 : vector<2x32xf32>
    %170 = math.tanh %169 : vector<2x32xf32>
    %cst_83 = arith.constant dense<0.000000e+00> : vector<2x32xf32>
    %171 = tpu.matmul %150, %15, %cst_83 {dimension_numbers = #tpu.dot_dimension_numbers<[1], [0], [0], [1], [0, 0, 1, 1], [], []>} : vector<2x64xf32>, vector<64x32xf32>, vector<2x32xf32> -> vector<2x32xf32>
    %172 = vector.broadcast %31 : vector<1x32xf32> to vector<2x32xf32>
    %173 = arith.addf %171, %172 : vector<2x32xf32>
    %174 = arith.negf %173 : vector<2x32xf32>
    %175 = math.exp %174 : vector<2x32xf32>
    %cst_84 = arith.constant 1.000000e+00 : f32
    %176 = vector.broadcast %cst_84 : f32 to vector<2x32xf32>
    %177 = arith.addf %176, %175 : vector<2x32xf32>
    %178 = arith.divf %176, %177 : vector<2x32xf32>
    %179 = arith.mulf %166, %105 : vector<2x32xf32>
    %180 = arith.mulf %158, %170 : vector<2x32xf32>
    %181 = arith.addf %179, %180 : vector<2x32xf32>
    %182 = math.tanh %181 : vector<2x32xf32>
    %183 = arith.mulf %178, %182 : vector<2x32xf32>
    %cst_85 = arith.constant dense<0.000000e+00> : vector<2x16xf32>
    %184 = tpu.matmul %183, %32, %cst_85 {dimension_numbers = #tpu.dot_dimension_numbers<[1], [0], [0], [1], [0, 0, 1, 1], [], []>} : vector<2x32xf32>, vector<32x16xf32>, vector<2x16xf32> -> vector<2x16xf32>
    %185 = vector.broadcast %33 : vector<1x16xf32> to vector<2x16xf32>
    %186 = arith.addf %184, %185 : vector<2x16xf32>
    %c1_86 = arith.constant 1 : index
    %c0_87 = arith.constant 0 : index
    %c0_88 = arith.constant 0 : index
    %187 = vector.load %arg5[%c1_86, %c0_87, %c0_88] : memref<8x2x16xf32, #tpu.memory_space<vmem>>, vector<1x2x16xf32>
    %188 = vector.shape_cast %187 : vector<1x2x16xf32> to vector<2x16xf32>
    %189 = vector.shape_cast %186 : vector<2x16xf32> to vector<1x2x16xf32>
    tpu.vector_store %arg5[%c1_86, %c0_87, %c0_88], %189 {strides = array<i32>} : memref<8x2x16xf32, #tpu.memory_space<vmem>>, vector<1x2x16xf32>,
    %c2_89 = arith.constant 2 : index
    %c0_90 = arith.constant 0 : index
    %c0_91 = arith.constant 0 : index
    %190 = vector.load %arg0[%c2_89, %c0_90, %c0_91] : memref<8x2x32xf32, #tpu.memory_space<vmem>>, vector<1x2x32xf32>
    %191 = vector.shape_cast %190 : vector<1x2x32xf32> to vector<2x32xf32>
    %192 = tpu.concatenate %191, %149 in 1 : vector<2x32xf32>, vector<2x32xf32> -> vector<2x64xf32>
    %cst_92 = arith.constant dense<0.000000e+00> : vector<2x32xf32>
    %193 = tpu.matmul %192, %1, %cst_92 {dimension_numbers = #tpu.dot_dimension_numbers<[1], [0], [0], [1], [0, 0, 1, 1], [], []>} : vector<2x64xf32>, vector<64x32xf32>, vector<2x32xf32> -> vector<2x32xf32>
    %194 = vector.broadcast %17 : vector<1x32xf32> to vector<2x32xf32>
    %195 = arith.addf %193, %194 : vector<2x32xf32>
    %196 = arith.negf %195 : vector<2x32xf32>
    %197 = math.exp %196 : vector<2x32xf32>
    %cst_93 = arith.constant 1.000000e+00 : f32
    %198 = vector.broadcast %cst_93 : f32 to vector<2x32xf32>
    %199 = arith.addf %198, %197 : vector<2x32xf32>
    %200 = arith.divf %198, %199 : vector<2x32xf32>
    %cst_94 = arith.constant dense<0.000000e+00> : vector<2x32xf32>
    %201 = tpu.matmul %192, %3, %cst_94 {dimension_numbers = #tpu.dot_dimension_numbers<[1], [0], [0], [1], [0, 0, 1, 1], [], []>} : vector<2x64xf32>, vector<64x32xf32>, vector<2x32xf32> -> vector<2x32xf32>
    %202 = vector.broadcast %19 : vector<1x32xf32> to vector<2x32xf32>
    %203 = arith.addf %201, %202 : vector<2x32xf32>
    %204 = arith.negf %203 : vector<2x32xf32>
    %205 = math.exp %204 : vector<2x32xf32>
    %cst_95 = arith.constant 1.000000e+00 : f32
    %206 = vector.broadcast %cst_95 : f32 to vector<2x32xf32>
    %207 = arith.addf %206, %205 : vector<2x32xf32>
    %208 = arith.divf %206, %207 : vector<2x32xf32>
    %cst_96 = arith.constant dense<0.000000e+00> : vector<2x32xf32>
    %209 = tpu.matmul %192, %5, %cst_96 {dimension_numbers = #tpu.dot_dimension_numbers<[1], [0], [0], [1], [0, 0, 1, 1], [], []>} : vector<2x64xf32>, vector<64x32xf32>, vector<2x32xf32> -> vector<2x32xf32>
    %210 = vector.broadcast %21 : vector<1x32xf32> to vector<2x32xf32>
    %211 = arith.addf %209, %210 : vector<2x32xf32>
    %212 = math.tanh %211 : vector<2x32xf32>
    %cst_97 = arith.constant dense<0.000000e+00> : vector<2x32xf32>
    %213 = tpu.matmul %192, %7, %cst_97 {dimension_numbers = #tpu.dot_dimension_numbers<[1], [0], [0], [1], [0, 0, 1, 1], [], []>} : vector<2x64xf32>, vector<64x32xf32>, vector<2x32xf32> -> vector<2x32xf32>
    %214 = vector.broadcast %23 : vector<1x32xf32> to vector<2x32xf32>
    %215 = arith.addf %213, %214 : vector<2x32xf32>
    %216 = arith.negf %215 : vector<2x32xf32>
    %217 = math.exp %216 : vector<2x32xf32>
    %cst_98 = arith.constant 1.000000e+00 : f32
    %218 = vector.broadcast %cst_98 : f32 to vector<2x32xf32>
    %219 = arith.addf %218, %217 : vector<2x32xf32>
    %220 = arith.divf %218, %219 : vector<2x32xf32>
    %221 = arith.mulf %208, %147 : vector<2x32xf32>
    %222 = arith.mulf %200, %212 : vector<2x32xf32>
    %223 = arith.addf %221, %222 : vector<2x32xf32>
    %224 = math.tanh %223 : vector<2x32xf32>
    %225 = arith.mulf %220, %224 : vector<2x32xf32>
    %226 = tpu.concatenate %225, %183 in 1 : vector<2x32xf32>, vector<2x32xf32> -> vector<2x64xf32>
    %cst_99 = arith.constant dense<0.000000e+00> : vector<2x32xf32>
    %227 = tpu.matmul %226, %9, %cst_99 {dimension_numbers = #tpu.dot_dimension_numbers<[1], [0], [0], [1], [0, 0, 1, 1], [], []>} : vector<2x64xf32>, vector<64x32xf32>, vector<2x32xf32> -> vector<2x32xf32>
    %228 = vector.broadcast %25 : vector<1x32xf32> to vector<2x32xf32>
    %229 = arith.addf %227, %228 : vector<2x32xf32>
    %230 = arith.negf %229 : vector<2x32xf32>
    %231 = math.exp %230 : vector<2x32xf32>
    %cst_100 = arith.constant 1.000000e+00 : f32
    %232 = vector.broadcast %cst_100 : f32 to vector<2x32xf32>
    %233 = arith.addf %232, %231 : vector<2x32xf32>
    %234 = arith.divf %232, %233 : vector<2x32xf32>
    %cst_101 = arith.constant dense<0.000000e+00> : vector<2x32xf32>
    %235 = tpu.matmul %226, %11, %cst_101 {dimension_numbers = #tpu.dot_dimension_numbers<[1], [0], [0], [1], [0, 0, 1, 1], [], []>} : vector<2x64xf32>, vector<64x32xf32>, vector<2x32xf32> -> vector<2x32xf32>
    %236 = vector.broadcast %27 : vector<1x32xf32> to vector<2x32xf32>
    %237 = arith.addf %235, %236 : vector<2x32xf32>
    %238 = arith.negf %237 : vector<2x32xf32>
    %239 = math.exp %238 : vector<2x32xf32>
    %cst_102 = arith.constant 1.000000e+00 : f32
    %240 = vector.broadcast %cst_102 : f32 to vector<2x32xf32>
    %241 = arith.addf %240, %239 : vector<2x32xf32>
    %242 = arith.divf %240, %241 : vector<2x32xf32>
    %cst_103 = arith.constant dense<0.000000e+00> : vector<2x32xf32>
    %243 = tpu.matmul %226, %13, %cst_103 {dimension_numbers = #tpu.dot_dimension_numbers<[1], [0], [0], [1], [0, 0, 1, 1], [], []>} : vector<2x64xf32>, vector<64x32xf32>, vector<2x32xf32> -> vector<2x32xf32>
    %244 = vector.broadcast %29 : vector<1x32xf32> to vector<2x32xf32>
    %245 = arith.addf %243, %244 : vector<2x32xf32>
    %246 = math.tanh %245 : vector<2x32xf32>
    %cst_104 = arith.constant dense<0.000000e+00> : vector<2x32xf32>
    %247 = tpu.matmul %226, %15, %cst_104 {dimension_numbers = #tpu.dot_dimension_numbers<[1], [0], [0], [1], [0, 0, 1, 1], [], []>} : vector<2x64xf32>, vector<64x32xf32>, vector<2x32xf32> -> vector<2x32xf32>
    %248 = vector.broadcast %31 : vector<1x32xf32> to vector<2x32xf32>
    %249 = arith.addf %247, %248 : vector<2x32xf32>
    %250 = arith.negf %249 : vector<2x32xf32>
    %251 = math.exp %250 : vector<2x32xf32>
    %cst_105 = arith.constant 1.000000e+00 : f32
    %252 = vector.broadcast %cst_105 : f32 to vector<2x32xf32>
    %253 = arith.addf %252, %251 : vector<2x32xf32>
    %254 = arith.divf %252, %253 : vector<2x32xf32>
    %255 = arith.mulf %242, %181 : vector<2x32xf32>
    %256 = arith.mulf %234, %246 : vector<2x32xf32>
    %257 = arith.addf %255, %256 : vector<2x32xf32>
    %258 = math.tanh %257 : vector<2x32xf32>
    %259 = arith.mulf %254, %258 : vector<2x32xf32>
    %cst_106 = arith.constant dense<0.000000e+00> : vector<2x16xf32>
    %260 = tpu.matmul %259, %32, %cst_106 {dimension_numbers = #tpu.dot_dimension_numbers<[1], [0], [0], [1], [0, 0, 1, 1], [], []>} : vector<2x32xf32>, vector<32x16xf32>, vector<2x16xf32> -> vector<2x16xf32>
    %261 = vector.broadcast %33 : vector<1x16xf32> to vector<2x16xf32>
    %262 = arith.addf %260, %261 : vector<2x16xf32>
    %c2_107 = arith.constant 2 : index
    %c0_108 = arith.constant 0 : index
    %c0_109 = arith.constant 0 : index
    %263 = vector.load %arg5[%c2_107, %c0_108, %c0_109] : memref<8x2x16xf32, #tpu.memory_space<vmem>>, vector<1x2x16xf32>
    %264 = vector.shape_cast %263 : vector<1x2x16xf32> to vector<2x16xf32>
    %265 = vector.shape_cast %262 : vector<2x16xf32> to vector<1x2x16xf32>
    tpu.vector_store %arg5[%c2_107, %c0_108, %c0_109], %265 {strides = array<i32>} : memref<8x2x16xf32, #tpu.memory_space<vmem>>, vector<1x2x16xf32>,
    %c3_110 = arith.constant 3 : index
    %c0_111 = arith.constant 0 : index
    %c0_112 = arith.constant 0 : index
    %266 = vector.load %arg0[%c3_110, %c0_111, %c0_112] : memref<8x2x32xf32, #tpu.memory_space<vmem>>, vector<1x2x32xf32>
    %267 = vector.shape_cast %266 : vector<1x2x32xf32> to vector<2x32xf32>
    %268 = tpu.concatenate %267, %225 in 1 : vector<2x32xf32>, vector<2x32xf32> -> vector<2x64xf32>
    %cst_113 = arith.constant dense<0.000000e+00> : vector<2x32xf32>
    %269 = tpu.matmul %268, %1, %cst_113 {dimension_numbers = #tpu.dot_dimension_numbers<[1], [0], [0], [1], [0, 0, 1, 1], [], []>} : vector<2x64xf32>, vector<64x32xf32>, vector<2x32xf32> -> vector<2x32xf32>
    %270 = vector.broadcast %17 : vector<1x32xf32> to vector<2x32xf32>
    %271 = arith.addf %269, %270 : vector<2x32xf32>
    %272 = arith.negf %271 : vector<2x32xf32>
    %273 = math.exp %272 : vector<2x32xf32>
    %cst_114 = arith.constant 1.000000e+00 : f32
    %274 = vector.broadcast %cst_114 : f32 to vector<2x32xf32>
    %275 = arith.addf %274, %273 : vector<2x32xf32>
    %276 = arith.divf %274, %275 : vector<2x32xf32>
    %cst_115 = arith.constant dense<0.000000e+00> : vector<2x32xf32>
    %277 = tpu.matmul %268, %3, %cst_115 {dimension_numbers = #tpu.dot_dimension_numbers<[1], [0], [0], [1], [0, 0, 1, 1], [], []>} : vector<2x64xf32>, vector<64x32xf32>, vector<2x32xf32> -> vector<2x32xf32>
    %278 = vector.broadcast %19 : vector<1x32xf32> to vector<2x32xf32>
    %279 = arith.addf %277, %278 : vector<2x32xf32>
    %280 = arith.negf %279 : vector<2x32xf32>
    %281 = math.exp %280 : vector<2x32xf32>
    %cst_116 = arith.constant 1.000000e+00 : f32
    %282 = vector.broadcast %cst_116 : f32 to vector<2x32xf32>
    %283 = arith.addf %282, %281 : vector<2x32xf32>
    %284 = arith.divf %282, %283 : vector<2x32xf32>
    %cst_117 = arith.constant dense<0.000000e+00> : vector<2x32xf32>
    %285 = tpu.matmul %268, %5, %cst_117 {dimension_numbers = #tpu.dot_dimension_numbers<[1], [0], [0], [1], [0, 0, 1, 1], [], []>} : vector<2x64xf32>, vector<64x32xf32>, vector<2x32xf32> -> vector<2x32xf32>
    %286 = vector.broadcast %21 : vector<1x32xf32> to vector<2x32xf32>
    %287 = arith.addf %285, %286 : vector<2x32xf32>
    %288 = math.tanh %287 : vector<2x32xf32>
    %cst_118 = arith.constant dense<0.000000e+00> : vector<2x32xf32>
    %289 = tpu.matmul %268, %7, %cst_118 {dimension_numbers = #tpu.dot_dimension_numbers<[1], [0], [0], [1], [0, 0, 1, 1], [], []>} : vector<2x64xf32>, vector<64x32xf32>, vector<2x32xf32> -> vector<2x32xf32>
    %290 = vector.broadcast %23 : vector<1x32xf32> to vector<2x32xf32>
    %291 = arith.addf %289, %290 : vector<2x32xf32>
    %292 = arith.negf %291 : vector<2x32xf32>
    %293 = math.exp %292 : vector<2x32xf32>
    %cst_119 = arith.constant 1.000000e+00 : f32
    %294 = vector.broadcast %cst_119 : f32 to vector<2x32xf32>
    %295 = arith.addf %294, %293 : vector<2x32xf32>
    %296 = arith.divf %294, %295 : vector<2x32xf32>
    %297 = arith.mulf %284, %223 : vector<2x32xf32>
    %298 = arith.mulf %276, %288 : vector<2x32xf32>
    %299 = arith.addf %297, %298 : vector<2x32xf32>
    %300 = math.tanh %299 : vector<2x32xf32>
    %301 = arith.mulf %296, %300 : vector<2x32xf32>
    %302 = tpu.concatenate %301, %259 in 1 : vector<2x32xf32>, vector<2x32xf32> -> vector<2x64xf32>
    %cst_120 = arith.constant dense<0.000000e+00> : vector<2x32xf32>
    %303 = tpu.matmul %302, %9, %cst_120 {dimension_numbers = #tpu.dot_dimension_numbers<[1], [0], [0], [1], [0, 0, 1, 1], [], []>} : vector<2x64xf32>, vector<64x32xf32>, vector<2x32xf32> -> vector<2x32xf32>
    %304 = vector.broadcast %25 : vector<1x32xf32> to vector<2x32xf32>
    %305 = arith.addf %303, %304 : vector<2x32xf32>
    %306 = arith.negf %305 : vector<2x32xf32>
    %307 = math.exp %306 : vector<2x32xf32>
    %cst_121 = arith.constant 1.000000e+00 : f32
    %308 = vector.broadcast %cst_121 : f32 to vector<2x32xf32>
    %309 = arith.addf %308, %307 : vector<2x32xf32>
    %310 = arith.divf %308, %309 : vector<2x32xf32>
    %cst_122 = arith.constant dense<0.000000e+00> : vector<2x32xf32>
    %311 = tpu.matmul %302, %11, %cst_122 {dimension_numbers = #tpu.dot_dimension_numbers<[1], [0], [0], [1], [0, 0, 1, 1], [], []>} : vector<2x64xf32>, vector<64x32xf32>, vector<2x32xf32> -> vector<2x32xf32>
    %312 = vector.broadcast %27 : vector<1x32xf32> to vector<2x32xf32>
    %313 = arith.addf %311, %312 : vector<2x32xf32>
    %314 = arith.negf %313 : vector<2x32xf32>
    %315 = math.exp %314 : vector<2x32xf32>
    %cst_123 = arith.constant 1.000000e+00 : f32
    %316 = vector.broadcast %cst_123 : f32 to vector<2x32xf32>
    %317 = arith.addf %316, %315 : vector<2x32xf32>
    %318 = arith.divf %316, %317 : vector<2x32xf32>
    %cst_124 = arith.constant dense<0.000000e+00> : vector<2x32xf32>
    %319 = tpu.matmul %302, %13, %cst_124 {dimension_numbers = #tpu.dot_dimension_numbers<[1], [0], [0], [1], [0, 0, 1, 1], [], []>} : vector<2x64xf32>, vector<64x32xf32>, vector<2x32xf32> -> vector<2x32xf32>
    %320 = vector.broadcast %29 : vector<1x32xf32> to vector<2x32xf32>
    %321 = arith.addf %319, %320 : vector<2x32xf32>
    %322 = math.tanh %321 : vector<2x32xf32>
    %cst_125 = arith.constant dense<0.000000e+00> : vector<2x32xf32>
    %323 = tpu.matmul %302, %15, %cst_125 {dimension_numbers = #tpu.dot_dimension_numbers<[1], [0], [0], [1], [0, 0, 1, 1], [], []>} : vector<2x64xf32>, vector<64x32xf32>, vector<2x32xf32> -> vector<2x32xf32>
    %324 = vector.broadcast %31 : vector<1x32xf32> to vector<2x32xf32>
    %325 = arith.addf %323, %324 : vector<2x32xf32>
    %326 = arith.negf %325 : vector<2x32xf32>
    %327 = math.exp %326 : vector<2x32xf32>
    %cst_126 = arith.constant 1.000000e+00 : f32
    %328 = vector.broadcast %cst_126 : f32 to vector<2x32xf32>
    %329 = arith.addf %328, %327 : vector<2x32xf32>
    %330 = arith.divf %328, %329 : vector<2x32xf32>
    %331 = arith.mulf %318, %257 : vector<2x32xf32>
    %332 = arith.mulf %310, %322 : vector<2x32xf32>
    %333 = arith.addf %331, %332 : vector<2x32xf32>
    %334 = math.tanh %333 : vector<2x32xf32>
    %335 = arith.mulf %330, %334 : vector<2x32xf32>
    %cst_127 = arith.constant dense<0.000000e+00> : vector<2x16xf32>
    %336 = tpu.matmul %335, %32, %cst_127 {dimension_numbers = #tpu.dot_dimension_numbers<[1], [0], [0], [1], [0, 0, 1, 1], [], []>} : vector<2x32xf32>, vector<32x16xf32>, vector<2x16xf32> -> vector<2x16xf32>
    %337 = vector.broadcast %33 : vector<1x16xf32> to vector<2x16xf32>
    %338 = arith.addf %336, %337 : vector<2x16xf32>
    %c3_128 = arith.constant 3 : index
    %c0_129 = arith.constant 0 : index
    %c0_130 = arith.constant 0 : index
    %339 = vector.load %arg5[%c3_128, %c0_129, %c0_130] : memref<8x2x16xf32, #tpu.memory_space<vmem>>, vector<1x2x16xf32>
    %340 = vector.shape_cast %339 : vector<1x2x16xf32> to vector<2x16xf32>
    %341 = vector.shape_cast %338 : vector<2x16xf32> to vector<1x2x16xf32>
    tpu.vector_store %arg5[%c3_128, %c0_129, %c0_130], %341 {strides = array<i32>} : memref<8x2x16xf32, #tpu.memory_space<vmem>>, vector<1x2x16xf32>,
    %c4_131 = arith.constant 4 : index
    %c0_132 = arith.constant 0 : index
    %c0_133 = arith.constant 0 : index
    %342 = vector.load %arg0[%c4_131, %c0_132, %c0_133] : memref<8x2x32xf32, #tpu.memory_space<vmem>>, vector<1x2x32xf32>
    %343 = vector.shape_cast %342 : vector<1x2x32xf32> to vector<2x32xf32>
    %344 = tpu.concatenate %343, %301 in 1 : vector<2x32xf32>, vector<2x32xf32> -> vector<2x64xf32>
    %cst_134 = arith.constant dense<0.000000e+00> : vector<2x32xf32>
    %345 = tpu.matmul %344, %1, %cst_134 {dimension_numbers = #tpu.dot_dimension_numbers<[1], [0], [0], [1], [0, 0, 1, 1], [], []>} : vector<2x64xf32>, vector<64x32xf32>, vector<2x32xf32> -> vector<2x32xf32>
    %346 = vector.broadcast %17 : vector<1x32xf32> to vector<2x32xf32>
    %347 = arith.addf %345, %346 : vector<2x32xf32>
    %348 = arith.negf %347 : vector<2x32xf32>
    %349 = math.exp %348 : vector<2x32xf32>
    %cst_135 = arith.constant 1.000000e+00 : f32
    %350 = vector.broadcast %cst_135 : f32 to vector<2x32xf32>
    %351 = arith.addf %350, %349 : vector<2x32xf32>
    %352 = arith.divf %350, %351 : vector<2x32xf32>
    %cst_136 = arith.constant dense<0.000000e+00> : vector<2x32xf32>
    %353 = tpu.matmul %344, %3, %cst_136 {dimension_numbers = #tpu.dot_dimension_numbers<[1], [0], [0], [1], [0, 0, 1, 1], [], []>} : vector<2x64xf32>, vector<64x32xf32>, vector<2x32xf32> -> vector<2x32xf32>
    %354 = vector.broadcast %19 : vector<1x32xf32> to vector<2x32xf32>
    %355 = arith.addf %353, %354 : vector<2x32xf32>
    %356 = arith.negf %355 : vector<2x32xf32>
    %357 = math.exp %356 : vector<2x32xf32>
    %cst_137 = arith.constant 1.000000e+00 : f32
    %358 = vector.broadcast %cst_137 : f32 to vector<2x32xf32>
    %359 = arith.addf %358, %357 : vector<2x32xf32>
    %360 = arith.divf %358, %359 : vector<2x32xf32>
    %cst_138 = arith.constant dense<0.000000e+00> : vector<2x32xf32>
    %361 = tpu.matmul %344, %5, %cst_138 {dimension_numbers = #tpu.dot_dimension_numbers<[1], [0], [0], [1], [0, 0, 1, 1], [], []>} : vector<2x64xf32>, vector<64x32xf32>, vector<2x32xf32> -> vector<2x32xf32>
    %362 = vector.broadcast %21 : vector<1x32xf32> to vector<2x32xf32>
    %363 = arith.addf %361, %362 : vector<2x32xf32>
    %364 = math.tanh %363 : vector<2x32xf32>
    %cst_139 = arith.constant dense<0.000000e+00> : vector<2x32xf32>
    %365 = tpu.matmul %344, %7, %cst_139 {dimension_numbers = #tpu.dot_dimension_numbers<[1], [0], [0], [1], [0, 0, 1, 1], [], []>} : vector<2x64xf32>, vector<64x32xf32>, vector<2x32xf32> -> vector<2x32xf32>
    %366 = vector.broadcast %23 : vector<1x32xf32> to vector<2x32xf32>
    %367 = arith.addf %365, %366 : vector<2x32xf32>
    %368 = arith.negf %367 : vector<2x32xf32>
    %369 = math.exp %368 : vector<2x32xf32>
    %cst_140 = arith.constant 1.000000e+00 : f32
    %370 = vector.broadcast %cst_140 : f32 to vector<2x32xf32>
    %371 = arith.addf %370, %369 : vector<2x32xf32>
    %372 = arith.divf %370, %371 : vector<2x32xf32>
    %373 = arith.mulf %360, %299 : vector<2x32xf32>
    %374 = arith.mulf %352, %364 : vector<2x32xf32>
    %375 = arith.addf %373, %374 : vector<2x32xf32>
    %376 = math.tanh %375 : vector<2x32xf32>
    %377 = arith.mulf %372, %376 : vector<2x32xf32>
    %378 = tpu.concatenate %377, %335 in 1 : vector<2x32xf32>, vector<2x32xf32> -> vector<2x64xf32>
    %cst_141 = arith.constant dense<0.000000e+00> : vector<2x32xf32>
    %379 = tpu.matmul %378, %9, %cst_141 {dimension_numbers = #tpu.dot_dimension_numbers<[1], [0], [0], [1], [0, 0, 1, 1], [], []>} : vector<2x64xf32>, vector<64x32xf32>, vector<2x32xf32> -> vector<2x32xf32>
    %380 = vector.broadcast %25 : vector<1x32xf32> to vector<2x32xf32>
    %381 = arith.addf %379, %380 : vector<2x32xf32>
    %382 = arith.negf %381 : vector<2x32xf32>
    %383 = math.exp %382 : vector<2x32xf32>
    %cst_142 = arith.constant 1.000000e+00 : f32
    %384 = vector.broadcast %cst_142 : f32 to vector<2x32xf32>
    %385 = arith.addf %384, %383 : vector<2x32xf32>
    %386 = arith.divf %384, %385 : vector<2x32xf32>
    %cst_143 = arith.constant dense<0.000000e+00> : vector<2x32xf32>
    %387 = tpu.matmul %378, %11, %cst_143 {dimension_numbers = #tpu.dot_dimension_numbers<[1], [0], [0], [1], [0, 0, 1, 1], [], []>} : vector<2x64xf32>, vector<64x32xf32>, vector<2x32xf32> -> vector<2x32xf32>
    %388 = vector.broadcast %27 : vector<1x32xf32> to vector<2x32xf32>
    %389 = arith.addf %387, %388 : vector<2x32xf32>
    %390 = arith.negf %389 : vector<2x32xf32>
    %391 = math.exp %390 : vector<2x32xf32>
    %cst_144 = arith.constant 1.000000e+00 : f32
    %392 = vector.broadcast %cst_144 : f32 to vector<2x32xf32>
    %393 = arith.addf %392, %391 : vector<2x32xf32>
    %394 = arith.divf %392, %393 : vector<2x32xf32>
    %cst_145 = arith.constant dense<0.000000e+00> : vector<2x32xf32>
    %395 = tpu.matmul %378, %13, %cst_145 {dimension_numbers = #tpu.dot_dimension_numbers<[1], [0], [0], [1], [0, 0, 1, 1], [], []>} : vector<2x64xf32>, vector<64x32xf32>, vector<2x32xf32> -> vector<2x32xf32>
    %396 = vector.broadcast %29 : vector<1x32xf32> to vector<2x32xf32>
    %397 = arith.addf %395, %396 : vector<2x32xf32>
    %398 = math.tanh %397 : vector<2x32xf32>
    %cst_146 = arith.constant dense<0.000000e+00> : vector<2x32xf32>
    %399 = tpu.matmul %378, %15, %cst_146 {dimension_numbers = #tpu.dot_dimension_numbers<[1], [0], [0], [1], [0, 0, 1, 1], [], []>} : vector<2x64xf32>, vector<64x32xf32>, vector<2x32xf32> -> vector<2x32xf32>
    %400 = vector.broadcast %31 : vector<1x32xf32> to vector<2x32xf32>
    %401 = arith.addf %399, %400 : vector<2x32xf32>
    %402 = arith.negf %401 : vector<2x32xf32>
    %403 = math.exp %402 : vector<2x32xf32>
    %cst_147 = arith.constant 1.000000e+00 : f32
    %404 = vector.broadcast %cst_147 : f32 to vector<2x32xf32>
    %405 = arith.addf %404, %403 : vector<2x32xf32>
    %406 = arith.divf %404, %405 : vector<2x32xf32>
    %407 = arith.mulf %394, %333 : vector<2x32xf32>
    %408 = arith.mulf %386, %398 : vector<2x32xf32>
    %409 = arith.addf %407, %408 : vector<2x32xf32>
    %410 = math.tanh %409 : vector<2x32xf32>
    %411 = arith.mulf %406, %410 : vector<2x32xf32>
    %cst_148 = arith.constant dense<0.000000e+00> : vector<2x16xf32>
    %412 = tpu.matmul %411, %32, %cst_148 {dimension_numbers = #tpu.dot_dimension_numbers<[1], [0], [0], [1], [0, 0, 1, 1], [], []>} : vector<2x32xf32>, vector<32x16xf32>, vector<2x16xf32> -> vector<2x16xf32>
    %413 = vector.broadcast %33 : vector<1x16xf32> to vector<2x16xf32>
    %414 = arith.addf %412, %413 : vector<2x16xf32>
    %c4_149 = arith.constant 4 : index
    %c0_150 = arith.constant 0 : index
    %c0_151 = arith.constant 0 : index
    %415 = vector.load %arg5[%c4_149, %c0_150, %c0_151] : memref<8x2x16xf32, #tpu.memory_space<vmem>>, vector<1x2x16xf32>
    %416 = vector.shape_cast %415 : vector<1x2x16xf32> to vector<2x16xf32>
    %417 = vector.shape_cast %414 : vector<2x16xf32> to vector<1x2x16xf32>
    tpu.vector_store %arg5[%c4_149, %c0_150, %c0_151], %417 {strides = array<i32>} : memref<8x2x16xf32, #tpu.memory_space<vmem>>, vector<1x2x16xf32>,
    %c5_152 = arith.constant 5 : index
    %c0_153 = arith.constant 0 : index
    %c0_154 = arith.constant 0 : index
    %418 = vector.load %arg0[%c5_152, %c0_153, %c0_154] : memref<8x2x32xf32, #tpu.memory_space<vmem>>, vector<1x2x32xf32>
    %419 = vector.shape_cast %418 : vector<1x2x32xf32> to vector<2x32xf32>
    %420 = tpu.concatenate %419, %377 in 1 : vector<2x32xf32>, vector<2x32xf32> -> vector<2x64xf32>
    %cst_155 = arith.constant dense<0.000000e+00> : vector<2x32xf32>
    %421 = tpu.matmul %420, %1, %cst_155 {dimension_numbers = #tpu.dot_dimension_numbers<[1], [0], [0], [1], [0, 0, 1, 1], [], []>} : vector<2x64xf32>, vector<64x32xf32>, vector<2x32xf32> -> vector<2x32xf32>
    %422 = vector.broadcast %17 : vector<1x32xf32> to vector<2x32xf32>
    %423 = arith.addf %421, %422 : vector<2x32xf32>
    %424 = arith.negf %423 : vector<2x32xf32>
    %425 = math.exp %424 : vector<2x32xf32>
    %cst_156 = arith.constant 1.000000e+00 : f32
    %426 = vector.broadcast %cst_156 : f32 to vector<2x32xf32>
    %427 = arith.addf %426, %425 : vector<2x32xf32>
    %428 = arith.divf %426, %427 : vector<2x32xf32>
    %cst_157 = arith.constant dense<0.000000e+00> : vector<2x32xf32>
    %429 = tpu.matmul %420, %3, %cst_157 {dimension_numbers = #tpu.dot_dimension_numbers<[1], [0], [0], [1], [0, 0, 1, 1], [], []>} : vector<2x64xf32>, vector<64x32xf32>, vector<2x32xf32> -> vector<2x32xf32>
    %430 = vector.broadcast %19 : vector<1x32xf32> to vector<2x32xf32>
    %431 = arith.addf %429, %430 : vector<2x32xf32>
    %432 = arith.negf %431 : vector<2x32xf32>
    %433 = math.exp %432 : vector<2x32xf32>
    %cst_158 = arith.constant 1.000000e+00 : f32
    %434 = vector.broadcast %cst_158 : f32 to vector<2x32xf32>
    %435 = arith.addf %434, %433 : vector<2x32xf32>
    %436 = arith.divf %434, %435 : vector<2x32xf32>
    %cst_159 = arith.constant dense<0.000000e+00> : vector<2x32xf32>
    %437 = tpu.matmul %420, %5, %cst_159 {dimension_numbers = #tpu.dot_dimension_numbers<[1], [0], [0], [1], [0, 0, 1, 1], [], []>} : vector<2x64xf32>, vector<64x32xf32>, vector<2x32xf32> -> vector<2x32xf32>
    %438 = vector.broadcast %21 : vector<1x32xf32> to vector<2x32xf32>
    %439 = arith.addf %437, %438 : vector<2x32xf32>
    %440 = math.tanh %439 : vector<2x32xf32>
    %cst_160 = arith.constant dense<0.000000e+00> : vector<2x32xf32>
    %441 = tpu.matmul %420, %7, %cst_160 {dimension_numbers = #tpu.dot_dimension_numbers<[1], [0], [0], [1], [0, 0, 1, 1], [], []>} : vector<2x64xf32>, vector<64x32xf32>, vector<2x32xf32> -> vector<2x32xf32>
    %442 = vector.broadcast %23 : vector<1x32xf32> to vector<2x32xf32>
    %443 = arith.addf %441, %442 : vector<2x32xf32>
    %444 = arith.negf %443 : vector<2x32xf32>
    %445 = math.exp %444 : vector<2x32xf32>
    %cst_161 = arith.constant 1.000000e+00 : f32
    %446 = vector.broadcast %cst_161 : f32 to vector<2x32xf32>
    %447 = arith.addf %446, %445 : vector<2x32xf32>
    %448 = arith.divf %446, %447 : vector<2x32xf32>
    %449 = arith.mulf %436, %375 : vector<2x32xf32>
    %450 = arith.mulf %428, %440 : vector<2x32xf32>
    %451 = arith.addf %449, %450 : vector<2x32xf32>
    %452 = math.tanh %451 : vector<2x32xf32>
    %453 = arith.mulf %448, %452 : vector<2x32xf32>
    %454 = tpu.concatenate %453, %411 in 1 : vector<2x32xf32>, vector<2x32xf32> -> vector<2x64xf32>
    %cst_162 = arith.constant dense<0.000000e+00> : vector<2x32xf32>
    %455 = tpu.matmul %454, %9, %cst_162 {dimension_numbers = #tpu.dot_dimension_numbers<[1], [0], [0], [1], [0, 0, 1, 1], [], []>} : vector<2x64xf32>, vector<64x32xf32>, vector<2x32xf32> -> vector<2x32xf32>
    %456 = vector.broadcast %25 : vector<1x32xf32> to vector<2x32xf32>
    %457 = arith.addf %455, %456 : vector<2x32xf32>
    %458 = arith.negf %457 : vector<2x32xf32>
    %459 = math.exp %458 : vector<2x32xf32>
    %cst_163 = arith.constant 1.000000e+00 : f32
    %460 = vector.broadcast %cst_163 : f32 to vector<2x32xf32>
    %461 = arith.addf %460, %459 : vector<2x32xf32>
    %462 = arith.divf %460, %461 : vector<2x32xf32>
    %cst_164 = arith.constant dense<0.000000e+00> : vector<2x32xf32>
    %463 = tpu.matmul %454, %11, %cst_164 {dimension_numbers = #tpu.dot_dimension_numbers<[1], [0], [0], [1], [0, 0, 1, 1], [], []>} : vector<2x64xf32>, vector<64x32xf32>, vector<2x32xf32> -> vector<2x32xf32>
    %464 = vector.broadcast %27 : vector<1x32xf32> to vector<2x32xf32>
    %465 = arith.addf %463, %464 : vector<2x32xf32>
    %466 = arith.negf %465 : vector<2x32xf32>
    %467 = math.exp %466 : vector<2x32xf32>
    %cst_165 = arith.constant 1.000000e+00 : f32
    %468 = vector.broadcast %cst_165 : f32 to vector<2x32xf32>
    %469 = arith.addf %468, %467 : vector<2x32xf32>
    %470 = arith.divf %468, %469 : vector<2x32xf32>
    %cst_166 = arith.constant dense<0.000000e+00> : vector<2x32xf32>
    %471 = tpu.matmul %454, %13, %cst_166 {dimension_numbers = #tpu.dot_dimension_numbers<[1], [0], [0], [1], [0, 0, 1, 1], [], []>} : vector<2x64xf32>, vector<64x32xf32>, vector<2x32xf32> -> vector<2x32xf32>
    %472 = vector.broadcast %29 : vector<1x32xf32> to vector<2x32xf32>
    %473 = arith.addf %471, %472 : vector<2x32xf32>
    %474 = math.tanh %473 : vector<2x32xf32>
    %cst_167 = arith.constant dense<0.000000e+00> : vector<2x32xf32>
    %475 = tpu.matmul %454, %15, %cst_167 {dimension_numbers = #tpu.dot_dimension_numbers<[1], [0], [0], [1], [0, 0, 1, 1], [], []>} : vector<2x64xf32>, vector<64x32xf32>, vector<2x32xf32> -> vector<2x32xf32>
    %476 = vector.broadcast %31 : vector<1x32xf32> to vector<2x32xf32>
    %477 = arith.addf %475, %476 : vector<2x32xf32>
    %478 = arith.negf %477 : vector<2x32xf32>
    %479 = math.exp %478 : vector<2x32xf32>
    %cst_168 = arith.constant 1.000000e+00 : f32
    %480 = vector.broadcast %cst_168 : f32 to vector<2x32xf32>
    %481 = arith.addf %480, %479 : vector<2x32xf32>
    %482 = arith.divf %480, %481 : vector<2x32xf32>
    %483 = arith.mulf %470, %409 : vector<2x32xf32>
    %484 = arith.mulf %462, %474 : vector<2x32xf32>
    %485 = arith.addf %483, %484 : vector<2x32xf32>
    %486 = math.tanh %485 : vector<2x32xf32>
    %487 = arith.mulf %482, %486 : vector<2x32xf32>
    %cst_169 = arith.constant dense<0.000000e+00> : vector<2x16xf32>
    %488 = tpu.matmul %487, %32, %cst_169 {dimension_numbers = #tpu.dot_dimension_numbers<[1], [0], [0], [1], [0, 0, 1, 1], [], []>} : vector<2x32xf32>, vector<32x16xf32>, vector<2x16xf32> -> vector<2x16xf32>
    %489 = vector.broadcast %33 : vector<1x16xf32> to vector<2x16xf32>
    %490 = arith.addf %488, %489 : vector<2x16xf32>
    %c5_170 = arith.constant 5 : index
    %c0_171 = arith.constant 0 : index
    %c0_172 = arith.constant 0 : index
    %491 = vector.load %arg5[%c5_170, %c0_171, %c0_172] : memref<8x2x16xf32, #tpu.memory_space<vmem>>, vector<1x2x16xf32>
    %492 = vector.shape_cast %491 : vector<1x2x16xf32> to vector<2x16xf32>
    %493 = vector.shape_cast %490 : vector<2x16xf32> to vector<1x2x16xf32>
    tpu.vector_store %arg5[%c5_170, %c0_171, %c0_172], %493 {strides = array<i32>} : memref<8x2x16xf32, #tpu.memory_space<vmem>>, vector<1x2x16xf32>,
    %c6_173 = arith.constant 6 : index
    %c0_174 = arith.constant 0 : index
    %c0_175 = arith.constant 0 : index
    %494 = vector.load %arg0[%c6_173, %c0_174, %c0_175] : memref<8x2x32xf32, #tpu.memory_space<vmem>>, vector<1x2x32xf32>
    %495 = vector.shape_cast %494 : vector<1x2x32xf32> to vector<2x32xf32>
    %496 = tpu.concatenate %495, %453 in 1 : vector<2x32xf32>, vector<2x32xf32> -> vector<2x64xf32>
    %cst_176 = arith.constant dense<0.000000e+00> : vector<2x32xf32>
    %497 = tpu.matmul %496, %1, %cst_176 {dimension_numbers = #tpu.dot_dimension_numbers<[1], [0], [0], [1], [0, 0, 1, 1], [], []>} : vector<2x64xf32>, vector<64x32xf32>, vector<2x32xf32> -> vector<2x32xf32>
    %498 = vector.broadcast %17 : vector<1x32xf32> to vector<2x32xf32>
    %499 = arith.addf %497, %498 : vector<2x32xf32>
    %500 = arith.negf %499 : vector<2x32xf32>
    %501 = math.exp %500 : vector<2x32xf32>
    %cst_177 = arith.constant 1.000000e+00 : f32
    %502 = vector.broadcast %cst_177 : f32 to vector<2x32xf32>
    %503 = arith.addf %502, %501 : vector<2x32xf32>
    %504 = arith.divf %502, %503 : vector<2x32xf32>
    %cst_178 = arith.constant dense<0.000000e+00> : vector<2x32xf32>
    %505 = tpu.matmul %496, %3, %cst_178 {dimension_numbers = #tpu.dot_dimension_numbers<[1], [0], [0], [1], [0, 0, 1, 1], [], []>} : vector<2x64xf32>, vector<64x32xf32>, vector<2x32xf32> -> vector<2x32xf32>
    %506 = vector.broadcast %19 : vector<1x32xf32> to vector<2x32xf32>
    %507 = arith.addf %505, %506 : vector<2x32xf32>
    %508 = arith.negf %507 : vector<2x32xf32>
    %509 = math.exp %508 : vector<2x32xf32>
    %cst_179 = arith.constant 1.000000e+00 : f32
    %510 = vector.broadcast %cst_179 : f32 to vector<2x32xf32>
    %511 = arith.addf %510, %509 : vector<2x32xf32>
    %512 = arith.divf %510, %511 : vector<2x32xf32>
    %cst_180 = arith.constant dense<0.000000e+00> : vector<2x32xf32>
    %513 = tpu.matmul %496, %5, %cst_180 {dimension_numbers = #tpu.dot_dimension_numbers<[1], [0], [0], [1], [0, 0, 1, 1], [], []>} : vector<2x64xf32>, vector<64x32xf32>, vector<2x32xf32> -> vector<2x32xf32>
    %514 = vector.broadcast %21 : vector<1x32xf32> to vector<2x32xf32>
    %515 = arith.addf %513, %514 : vector<2x32xf32>
    %516 = math.tanh %515 : vector<2x32xf32>
    %cst_181 = arith.constant dense<0.000000e+00> : vector<2x32xf32>
    %517 = tpu.matmul %496, %7, %cst_181 {dimension_numbers = #tpu.dot_dimension_numbers<[1], [0], [0], [1], [0, 0, 1, 1], [], []>} : vector<2x64xf32>, vector<64x32xf32>, vector<2x32xf32> -> vector<2x32xf32>
    %518 = vector.broadcast %23 : vector<1x32xf32> to vector<2x32xf32>
    %519 = arith.addf %517, %518 : vector<2x32xf32>
    %520 = arith.negf %519 : vector<2x32xf32>
    %521 = math.exp %520 : vector<2x32xf32>
    %cst_182 = arith.constant 1.000000e+00 : f32
    %522 = vector.broadcast %cst_182 : f32 to vector<2x32xf32>
    %523 = arith.addf %522, %521 : vector<2x32xf32>
    %524 = arith.divf %522, %523 : vector<2x32xf32>
    %525 = arith.mulf %512, %451 : vector<2x32xf32>
    %526 = arith.mulf %504, %516 : vector<2x32xf32>
    %527 = arith.addf %525, %526 : vector<2x32xf32>
    %528 = math.tanh %527 : vector<2x32xf32>
    %529 = arith.mulf %524, %528 : vector<2x32xf32>
    %530 = tpu.concatenate %529, %487 in 1 : vector<2x32xf32>, vector<2x32xf32> -> vector<2x64xf32>
    %cst_183 = arith.constant dense<0.000000e+00> : vector<2x32xf32>
    %531 = tpu.matmul %530, %9, %cst_183 {dimension_numbers = #tpu.dot_dimension_numbers<[1], [0], [0], [1], [0, 0, 1, 1], [], []>} : vector<2x64xf32>, vector<64x32xf32>, vector<2x32xf32> -> vector<2x32xf32>
    %532 = vector.broadcast %25 : vector<1x32xf32> to vector<2x32xf32>
    %533 = arith.addf %531, %532 : vector<2x32xf32>
    %534 = arith.negf %533 : vector<2x32xf32>
    %535 = math.exp %534 : vector<2x32xf32>
    %cst_184 = arith.constant 1.000000e+00 : f32
    %536 = vector.broadcast %cst_184 : f32 to vector<2x32xf32>
    %537 = arith.addf %536, %535 : vector<2x32xf32>
    %538 = arith.divf %536, %537 : vector<2x32xf32>
    %cst_185 = arith.constant dense<0.000000e+00> : vector<2x32xf32>
    %539 = tpu.matmul %530, %11, %cst_185 {dimension_numbers = #tpu.dot_dimension_numbers<[1], [0], [0], [1], [0, 0, 1, 1], [], []>} : vector<2x64xf32>, vector<64x32xf32>, vector<2x32xf32> -> vector<2x32xf32>
    %540 = vector.broadcast %27 : vector<1x32xf32> to vector<2x32xf32>
    %541 = arith.addf %539, %540 : vector<2x32xf32>
    %542 = arith.negf %541 : vector<2x32xf32>
    %543 = math.exp %542 : vector<2x32xf32>
    %cst_186 = arith.constant 1.000000e+00 : f32
    %544 = vector.broadcast %cst_186 : f32 to vector<2x32xf32>
    %545 = arith.addf %544, %543 : vector<2x32xf32>
    %546 = arith.divf %544, %545 : vector<2x32xf32>
    %cst_187 = arith.constant dense<0.000000e+00> : vector<2x32xf32>
    %547 = tpu.matmul %530, %13, %cst_187 {dimension_numbers = #tpu.dot_dimension_numbers<[1], [0], [0], [1], [0, 0, 1, 1], [], []>} : vector<2x64xf32>, vector<64x32xf32>, vector<2x32xf32> -> vector<2x32xf32>
    %548 = vector.broadcast %29 : vector<1x32xf32> to vector<2x32xf32>
    %549 = arith.addf %547, %548 : vector<2x32xf32>
    %550 = math.tanh %549 : vector<2x32xf32>
    %cst_188 = arith.constant dense<0.000000e+00> : vector<2x32xf32>
    %551 = tpu.matmul %530, %15, %cst_188 {dimension_numbers = #tpu.dot_dimension_numbers<[1], [0], [0], [1], [0, 0, 1, 1], [], []>} : vector<2x64xf32>, vector<64x32xf32>, vector<2x32xf32> -> vector<2x32xf32>
    %552 = vector.broadcast %31 : vector<1x32xf32> to vector<2x32xf32>
    %553 = arith.addf %551, %552 : vector<2x32xf32>
    %554 = arith.negf %553 : vector<2x32xf32>
    %555 = math.exp %554 : vector<2x32xf32>
    %cst_189 = arith.constant 1.000000e+00 : f32
    %556 = vector.broadcast %cst_189 : f32 to vector<2x32xf32>
    %557 = arith.addf %556, %555 : vector<2x32xf32>
    %558 = arith.divf %556, %557 : vector<2x32xf32>
    %559 = arith.mulf %546, %485 : vector<2x32xf32>
    %560 = arith.mulf %538, %550 : vector<2x32xf32>
    %561 = arith.addf %559, %560 : vector<2x32xf32>
    %562 = math.tanh %561 : vector<2x32xf32>
    %563 = arith.mulf %558, %562 : vector<2x32xf32>
    %cst_190 = arith.constant dense<0.000000e+00> : vector<2x16xf32>
    %564 = tpu.matmul %563, %32, %cst_190 {dimension_numbers = #tpu.dot_dimension_numbers<[1], [0], [0], [1], [0, 0, 1, 1], [], []>} : vector<2x32xf32>, vector<32x16xf32>, vector<2x16xf32> -> vector<2x16xf32>
    %565 = vector.broadcast %33 : vector<1x16xf32> to vector<2x16xf32>
    %566 = arith.addf %564, %565 : vector<2x16xf32>
    %c6_191 = arith.constant 6 : index
    %c0_192 = arith.constant 0 : index
    %c0_193 = arith.constant 0 : index
    %567 = vector.load %arg5[%c6_191, %c0_192, %c0_193] : memref<8x2x16xf32, #tpu.memory_space<vmem>>, vector<1x2x16xf32>
    %568 = vector.shape_cast %567 : vector<1x2x16xf32> to vector<2x16xf32>
    %569 = vector.shape_cast %566 : vector<2x16xf32> to vector<1x2x16xf32>
    tpu.vector_store %arg5[%c6_191, %c0_192, %c0_193], %569 {strides = array<i32>} : memref<8x2x16xf32, #tpu.memory_space<vmem>>, vector<1x2x16xf32>,
    %c7_194 = arith.constant 7 : index
    %c0_195 = arith.constant 0 : index
    %c0_196 = arith.constant 0 : index
    %570 = vector.load %arg0[%c7_194, %c0_195, %c0_196] : memref<8x2x32xf32, #tpu.memory_space<vmem>>, vector<1x2x32xf32>
    %571 = vector.shape_cast %570 : vector<1x2x32xf32> to vector<2x32xf32>
    %572 = tpu.concatenate %571, %529 in 1 : vector<2x32xf32>, vector<2x32xf32> -> vector<2x64xf32>
    %cst_197 = arith.constant dense<0.000000e+00> : vector<2x32xf32>
    %573 = tpu.matmul %572, %1, %cst_197 {dimension_numbers = #tpu.dot_dimension_numbers<[1], [0], [0], [1], [0, 0, 1, 1], [], []>} : vector<2x64xf32>, vector<64x32xf32>, vector<2x32xf32> -> vector<2x32xf32>
    %574 = vector.broadcast %17 : vector<1x32xf32> to vector<2x32xf32>
    %575 = arith.addf %573, %574 : vector<2x32xf32>
    %576 = arith.negf %575 : vector<2x32xf32>
    %577 = math.exp %576 : vector<2x32xf32>
    %cst_198 = arith.constant 1.000000e+00 : f32
    %578 = vector.broadcast %cst_198 : f32 to vector<2x32xf32>
    %579 = arith.addf %578, %577 : vector<2x32xf32>
    %580 = arith.divf %578, %579 : vector<2x32xf32>
    %cst_199 = arith.constant dense<0.000000e+00> : vector<2x32xf32>
    %581 = tpu.matmul %572, %3, %cst_199 {dimension_numbers = #tpu.dot_dimension_numbers<[1], [0], [0], [1], [0, 0, 1, 1], [], []>} : vector<2x64xf32>, vector<64x32xf32>, vector<2x32xf32> -> vector<2x32xf32>
    %582 = vector.broadcast %19 : vector<1x32xf32> to vector<2x32xf32>
    %583 = arith.addf %581, %582 : vector<2x32xf32>
    %584 = arith.negf %583 : vector<2x32xf32>
    %585 = math.exp %584 : vector<2x32xf32>
    %cst_200 = arith.constant 1.000000e+00 : f32
    %586 = vector.broadcast %cst_200 : f32 to vector<2x32xf32>
    %587 = arith.addf %586, %585 : vector<2x32xf32>
    %588 = arith.divf %586, %587 : vector<2x32xf32>
    %cst_201 = arith.constant dense<0.000000e+00> : vector<2x32xf32>
    %589 = tpu.matmul %572, %5, %cst_201 {dimension_numbers = #tpu.dot_dimension_numbers<[1], [0], [0], [1], [0, 0, 1, 1], [], []>} : vector<2x64xf32>, vector<64x32xf32>, vector<2x32xf32> -> vector<2x32xf32>
    %590 = vector.broadcast %21 : vector<1x32xf32> to vector<2x32xf32>
    %591 = arith.addf %589, %590 : vector<2x32xf32>
    %592 = math.tanh %591 : vector<2x32xf32>
    %cst_202 = arith.constant dense<0.000000e+00> : vector<2x32xf32>
    %593 = tpu.matmul %572, %7, %cst_202 {dimension_numbers = #tpu.dot_dimension_numbers<[1], [0], [0], [1], [0, 0, 1, 1], [], []>} : vector<2x64xf32>, vector<64x32xf32>, vector<2x32xf32> -> vector<2x32xf32>
    %594 = vector.broadcast %23 : vector<1x32xf32> to vector<2x32xf32>
    %595 = arith.addf %593, %594 : vector<2x32xf32>
    %596 = arith.negf %595 : vector<2x32xf32>
    %597 = math.exp %596 : vector<2x32xf32>
    %cst_203 = arith.constant 1.000000e+00 : f32
    %598 = vector.broadcast %cst_203 : f32 to vector<2x32xf32>
    %599 = arith.addf %598, %597 : vector<2x32xf32>
    %600 = arith.divf %598, %599 : vector<2x32xf32>
    %601 = arith.mulf %588, %527 : vector<2x32xf32>
    %602 = arith.mulf %580, %592 : vector<2x32xf32>
    %603 = arith.addf %601, %602 : vector<2x32xf32>
    %604 = math.tanh %603 : vector<2x32xf32>
    %605 = arith.mulf %600, %604 : vector<2x32xf32>
    %606 = tpu.concatenate %605, %563 in 1 : vector<2x32xf32>, vector<2x32xf32> -> vector<2x64xf32>
    %cst_204 = arith.constant dense<0.000000e+00> : vector<2x32xf32>
    %607 = tpu.matmul %606, %9, %cst_204 {dimension_numbers = #tpu.dot_dimension_numbers<[1], [0], [0], [1], [0, 0, 1, 1], [], []>} : vector<2x64xf32>, vector<64x32xf32>, vector<2x32xf32> -> vector<2x32xf32>
    %608 = vector.broadcast %25 : vector<1x32xf32> to vector<2x32xf32>
    %609 = arith.addf %607, %608 : vector<2x32xf32>
    %610 = arith.negf %609 : vector<2x32xf32>
    %611 = math.exp %610 : vector<2x32xf32>
    %cst_205 = arith.constant 1.000000e+00 : f32
    %612 = vector.broadcast %cst_205 : f32 to vector<2x32xf32>
    %613 = arith.addf %612, %611 : vector<2x32xf32>
    %614 = arith.divf %612, %613 : vector<2x32xf32>
    %cst_206 = arith.constant dense<0.000000e+00> : vector<2x32xf32>
    %615 = tpu.matmul %606, %11, %cst_206 {dimension_numbers = #tpu.dot_dimension_numbers<[1], [0], [0], [1], [0, 0, 1, 1], [], []>} : vector<2x64xf32>, vector<64x32xf32>, vector<2x32xf32> -> vector<2x32xf32>
    %616 = vector.broadcast %27 : vector<1x32xf32> to vector<2x32xf32>
    %617 = arith.addf %615, %616 : vector<2x32xf32>
    %618 = arith.negf %617 : vector<2x32xf32>
    %619 = math.exp %618 : vector<2x32xf32>
    %cst_207 = arith.constant 1.000000e+00 : f32
    %620 = vector.broadcast %cst_207 : f32 to vector<2x32xf32>
    %621 = arith.addf %620, %619 : vector<2x32xf32>
    %622 = arith.divf %620, %621 : vector<2x32xf32>
    %cst_208 = arith.constant dense<0.000000e+00> : vector<2x32xf32>
    %623 = tpu.matmul %606, %13, %cst_208 {dimension_numbers = #tpu.dot_dimension_numbers<[1], [0], [0], [1], [0, 0, 1, 1], [], []>} : vector<2x64xf32>, vector<64x32xf32>, vector<2x32xf32> -> vector<2x32xf32>
    %624 = vector.broadcast %29 : vector<1x32xf32> to vector<2x32xf32>
    %625 = arith.addf %623, %624 : vector<2x32xf32>
    %626 = math.tanh %625 : vector<2x32xf32>
    %cst_209 = arith.constant dense<0.000000e+00> : vector<2x32xf32>
    %627 = tpu.matmul %606, %15, %cst_209 {dimension_numbers = #tpu.dot_dimension_numbers<[1], [0], [0], [1], [0, 0, 1, 1], [], []>} : vector<2x64xf32>, vector<64x32xf32>, vector<2x32xf32> -> vector<2x32xf32>
    %628 = vector.broadcast %31 : vector<1x32xf32> to vector<2x32xf32>
    %629 = arith.addf %627, %628 : vector<2x32xf32>
    %630 = arith.negf %629 : vector<2x32xf32>
    %631 = math.exp %630 : vector<2x32xf32>
    %cst_210 = arith.constant 1.000000e+00 : f32
    %632 = vector.broadcast %cst_210 : f32 to vector<2x32xf32>
    %633 = arith.addf %632, %631 : vector<2x32xf32>
    %634 = arith.divf %632, %633 : vector<2x32xf32>
    %635 = arith.mulf %622, %561 : vector<2x32xf32>
    %636 = arith.mulf %614, %626 : vector<2x32xf32>
    %637 = arith.addf %635, %636 : vector<2x32xf32>
    %638 = math.tanh %637 : vector<2x32xf32>
    %639 = arith.mulf %634, %638 : vector<2x32xf32>
    %cst_211 = arith.constant dense<0.000000e+00> : vector<2x16xf32>
    %640 = tpu.matmul %639, %32, %cst_211 {dimension_numbers = #tpu.dot_dimension_numbers<[1], [0], [0], [1], [0, 0, 1, 1], [], []>} : vector<2x32xf32>, vector<32x16xf32>, vector<2x16xf32> -> vector<2x16xf32>
    %641 = vector.broadcast %33 : vector<1x16xf32> to vector<2x16xf32>
    %642 = arith.addf %640, %641 : vector<2x16xf32>
    %c7_212 = arith.constant 7 : index
    %c0_213 = arith.constant 0 : index
    %c0_214 = arith.constant 0 : index
    %643 = vector.load %arg5[%c7_212, %c0_213, %c0_214] : memref<8x2x16xf32, #tpu.memory_space<vmem>>, vector<1x2x16xf32>
    %644 = vector.shape_cast %643 : vector<1x2x16xf32> to vector<2x16xf32>
    %645 = vector.shape_cast %642 : vector<2x16xf32> to vector<1x2x16xf32>
    tpu.vector_store %arg5[%c7_212, %c0_213, %c0_214], %645 {strides = array<i32>} : memref<8x2x16xf32, #tpu.memory_space<vmem>>, vector<1x2x16xf32>,
    return
  }
}

</mosaic_0001>

<bundles_post_ra>
// kernel: simple_tts_forward.1
= control target key start
LH: loop header
LB: loop body
LE: loop exit
PB: predicated region body
PF: predicated region fallthrough
CT: control target
= control target key end

     0   :  { %v10446_v0 = vmov 0.0|0.0   ;;  %vm8984_vm0 = vmmov 0   ;;  %v10448_v8 = vmov 0.0   ;;  %vm112_vm1 = vcmask 261120   ;;  %s8986_s15 = smov 32   ;;  %s10440_s1 = inlined_call_operand.vmem [shape: f32[8,64,32], index: 1, kind: input, shape index: {}]   ;;  %s10441_s0 = inlined_call_operand.vmem [shape: f32[8,2,32], index: 0, kind: input, shape index: {}]   ;;  %s10442_s2 = inlined_call_operand.vmem [shape: f32[8,1,32], index: 2, kind: input, shape index: {}]   ;;  %s10443_s3 = inlined_call_operand.vmem [shape: f32[32,16], index: 3, kind: input, shape index: {}]   ;;  %s10444_s4 = inlined_call_operand.vmem [shape: f32[1,16], index: 4, kind: input, shape index: {}]   ;;  %s10445_s5 = inlined_call_operand.vmem [shape: f32[8,2,16], index: 5, kind: output, shape index: {}]  }
   0x1   :  { %7889 = vmatprep.subr.bf16.mxu0 %v10446_v0  ;;  %7901 = vmatprep.subr.bf16.mxu1 %v10446_v0  ;;  %v20_v1 = vld [vmem:[%s10440_s1] sm:$0xff]  ;;  %v21_v2 = vld [vmem:[%s10440_s1 + $0x8] sm:$0xff]  ;;  %v22_v6 = vld [vmem:[%s10440_s1 + $0x10] sm:$0xff]  ;;  %vm120_vm2 = vcmask 523264   ;;  %vm857_vm3 = vcmask 123904  }
   0x2   :  { %v5763_v3 = vld [vmem:[%s10440_s1 + $0x40] sm:$0xff]  ;;  %v9028_v4 = vpack.c.bf16 %v21_v2, %v20_v1  ;;  %v5764_v5 = vld [vmem:[%s10440_s1 + $0x48] sm:$0xff]  ;;  %v23_v7 = vld [vmem:[%s10440_s1 + $0x18] sm:$0xff]  ;;  %6601 = vmatprep.mubr.msk.f32.mxu0 %vm8984_vm0, %v10448_v8  ;;  %6620 = vmatprep.mubr.msk.f32.mxu1 %vm8984_vm0, %v10448_v8 }
   0x3   :  { %v9043_v9 = vpack.c.bf16 %v5764_v5, %v5763_v3  ;;  %v5765_v10 = vld [vmem:[%s10440_s1 + $0x50] sm:$0xff]  ;;  %v5766_v11 = vld [vmem:[%s10440_s1 + $0x58] sm:$0xff]  ;;  %v9052_v12 = vpack.c.bf16 %v23_v7, %v22_v6  ;;  %v24_v14 = vld [vmem:[%s10440_s1 + $0x20] sm:$0xff] }
   0x4   :  { %7891 = vmatpush3.bf16.msra.mxu0 %v9028_v4  ;;  %v9056_v13 = vpack.c.bf16 %v5766_v11, %v5765_v10  ;;  %v25_v15 = vld [vmem:[%s10440_s1 + $0x28] sm:$0xff]  ;;  %v5767_v16 = vld [vmem:[%s10440_s1 + $0x60] sm:$0xff]  ;;  %v26_v20 = vld [vmem:[%s10440_s1 + $0x30] sm:$0xff] }
   0x5   :  { %7903 = vmatpush3.bf16.msra.mxu1 %v9043_v9  ;;  %7892 = vmatprep.subr.bf16.mxu0 %v10446_v0  ;;  %v5768_v17 = vld [vmem:[%s10440_s1 + $0x68] sm:$0xff]  ;;  %v9072_v18 = vpack.c.bf16 %v25_v15, %v24_v14  ;;  %v27_v21 = vld [vmem:[%s10440_s1 + $0x38] sm:$0xff]  ;;  %v5769_v22 = vld [vmem:[%s10440_s1 + $0x70] sm:$0xff] }
   0x6   :  { %7904 = vmatprep.subr.bf16.mxu1 %v10446_v0  ;;  %v9076_v19 = vpack.c.bf16 %v5768_v17, %v5767_v16  ;;  %v5770_v23 = vld [vmem:[%s10440_s1 + $0x78] sm:$0xff]  ;;  %v9092_v24 = vpack.c.bf16 %v27_v21, %v26_v20  ;;  %v111_v26 = vld [vmem:[%s10441_s0] sm:$0x3]  ;;  %v5772_v28 = vld [vmem:[%s10440_s1 + $0x88] sm:$0xff] }
   0x7   :  { %v9096_v25 = vpack.c.bf16 %v5770_v23, %v5769_v22  ;;  %v5771_v27 = vld [vmem:[%s10440_s1 + $0x80] sm:$0xff]  ;;  %v5780_v30 = vld [vmem:[%s10440_s1 + $0xc8] sm:$0xff]  ;;  %v113_v31 = vsel %vm112_vm1, %v111_v26, 0.0  ;;  %v5773_v34 = vld [vmem:[%s10440_s1 + $0x90] sm:$0xff] }
   0x8   :  { %7894 = vmatpush3.bf16.msra.mxu0 %v9052_v12  ;;  %v5779_v29 = vld [vmem:[%s10440_s1 + $0xc0] sm:$0xff]  ;;  %v9116_v32 = vpack.c.bf16 %v5772_v28, %v5771_v27  ;;  %v5774_v35 = vld [vmem:[%s10440_s1 + $0x98] sm:$0xff]  ;;  %v5781_v36 = vld [vmem:[%s10440_s1 + $0xd0] sm:$0xff] }
   0x9   :  { %7906 = vmatpush3.bf16.msra.mxu1 %v9056_v13  ;;  %7895 = vmatprep.subr.bf16.mxu0 %v10446_v0  ;;  %v9120_v33 = vpack.c.bf16 %v5780_v30, %v5779_v29  ;;  %v5782_v37 = vld [vmem:[%s10440_s1 + $0xd8] sm:$0xff]  ;;  %v9138_v38 = vpack.c.bf16 %v5774_v35, %v5773_v34  ;;  %v5775_v40 = vld [vmem:[%s10440_s1 + $0xa0] sm:$0xff]  ;;  %v5776_v41 = vld [vmem:[%s10440_s1 + $0xa8] sm:$0xff] }
   0xa   :  { %7907 = vmatprep.subr.bf16.mxu1 %v10446_v0  ;;  %v9142_v39 = vpack.c.bf16 %v5782_v37, %v5781_v36  ;;  %v5783_v42 = vld [vmem:[%s10440_s1 + $0xe0] sm:$0xff]  ;;  %v5784_v43 = vld [vmem:[%s10440_s1 + $0xe8] sm:$0xff]  ;;  %v9162_v44 = vpack.c.bf16 %v5776_v41, %v5775_v40  ;;  %v5777_v46 = vld [vmem:[%s10440_s1 + $0xb0] sm:$0xff] }
   0xb   :  { %v9166_v45 = vpack.c.bf16 %v5784_v43, %v5783_v42  ;;  %v5778_v47 = vld [vmem:[%s10440_s1 + $0xb8] sm:$0xff]  ;;  %v5785_v48 = vld [vmem:[%s10440_s1 + $0xf0] sm:$0xff]  ;;  %v5787_v52 = vld [vmem:[%s10440_s1 + $0x100] sm:$0xff] }
   0xc   :  { %7897 = vmatpush3.bf16.msra.mxu0 %v9072_v18  ;;  %v5786_v49 = vld [vmem:[%s10440_s1 + $0xf8] sm:$0xff]  ;;  %v9182_v50 = vpack.c.bf16 %v5778_v47, %v5777_v46  ;;  %v5788_v53 = vld [vmem:[%s10440_s1 + $0x108] sm:$0xff]  ;;  %v5795_v54 = vld [vmem:[%s10440_s1 + $0x140] sm:$0xff] }
   0xd   :  { %7909 = vmatpush3.bf16.msra.mxu1 %v9076_v19  ;;  %7898 = vmatprep.subr.bf16.mxu0 %v10446_v0  ;;  %v9186_v51 = vpack.c.bf16 %v5786_v49, %v5785_v48  ;;  %v9208_v55 = vpack.c.bf16 %v5788_v53, %v5787_v52  ;;  %v5796_v56 = vld [vmem:[%s10440_s1 + $0x148] sm:$0xff]  ;;  %v5789_v58 = vld [vmem:[%s10440_s1 + $0x110] sm:$0xff]  ;;  %v5790_v59 = vld [vmem:[%s10440_s1 + $0x118] sm:$0xff] }
   0xe   :  { %7910 = vmatprep.subr.bf16.mxu1 %v10446_v0  ;;  %v9213_v57 = vpack.c.bf16 %v5796_v56, %v5795_v54  ;;  %v5797_v60 = vld [vmem:[%s10440_s1 + $0x150] sm:$0xff]  ;;  %v9228_v61 = vpack.c.bf16 %v5790_v59, %v5789_v58  ;;  %v5798_v62 = vld [vmem:[%s10440_s1 + $0x158] sm:$0xff]  ;;  %v5791_v63 = vld [vmem:[%s10440_s1 + $0x120] sm:$0xff] }
   0xf   :  { %v5792_v1 = vld [vmem:[%s10440_s1 + $0x128] sm:$0xff]  ;;  %v9239_v2 = vpack.c.bf16 %v5798_v62, %v5797_v60  ;;  %v5799_v3 = vld [vmem:[%s10440_s1 + $0x160] sm:$0xff]  ;;  %v5793_v10 = vld [vmem:[%s10440_s1 + $0x130] sm:$0xff] }
  0x10   :  { %7900 = vmatpush3.bf16.msra.mxu0 %v9092_v24  ;;  %v5800_v5 = vld [vmem:[%s10440_s1 + $0x168] sm:$0xff]  ;;  %v9248_v6 = vpack.c.bf16 %v5792_v1, %v5791_v63  ;;  %v5794_v11 = vld [vmem:[%s10440_s1 + $0x138] sm:$0xff]  ;;  %v5801_v14 = vld [vmem:[%s10440_s1 + $0x170] sm:$0xff] }
  0x11   :  { %7912 = vmatpush3.bf16.msra.mxu1 %v9096_v25  ;;  %7913 = vmatprep.subr.bf16.mxu0 %v10446_v0  ;;  %v9252_v7 = vpack.c.bf16 %v5800_v5, %v5799_v3  ;;  %v5802_v15 = vld [vmem:[%s10440_s1 + $0x178] sm:$0xff]  ;;  %v9268_v16 = vpack.c.bf16 %v5794_v11, %v5793_v10  ;;  %v9282_v20 = vld [vmem:[%s10442_s2] ss:$0 sm:$0xff]  ;;  %v9287_v21 = vld [vmem:[%s10442_s2 + $0x1] ss:$0 sm:$0xff] }
  0x12   :  { %7925 = vmatprep.subr.bf16.mxu1 %v10446_v0  ;;  %v9272_v17 = vpack.c.bf16 %v5802_v15, %v5801_v14  ;;  %v9294_v34 = vld [vmem:[%s10442_s2 + $0x2] ss:$0 sm:$0xff]  ;;  %v9299_v36 = vld [vmem:[%s10442_s2 + $0x3] ss:$0 sm:$0xff]  ;;  %v5804_v3 = vld [vmem:[%s10440_s1 + $0x188] sm:$0xff] }
  0x13   :  { %6602 = vmatmul.mubr.msk.f32.vlgmr.msra.gmra.mrb[0].mxu0 %vm120_vm2, %v113_v31  ;;  %v5803_v1 = vld [vmem:[%s10440_s1 + $0x180] sm:$0xff]  ;;  %v5812_v10 = vld [vmem:[%s10440_s1 + $0x1c8] sm:$0xff] }
  0x14   :  { %6621 = vmatmul.mubr.msk.f32.vlgmr.msra.gmra.mrb[0].mxu1 %vm120_vm2, %v113_v31  ;;  %7915 = vmatpush3.bf16.msra.mxu0 %v9116_v32  ;;  %v5811_v5 = vld [vmem:[%s10440_s1 + $0x1c0] sm:$0xff] }
  0x15   :  { %7927 = vmatpush3.bf16.msra.mxu1 %v9120_v33  ;;  %7916 = vmatprep.subr.bf16.mxu0 %v10446_v0 }
  0x16   :  { %7928 = vmatprep.subr.bf16.mxu1 %v10446_v0  ;;  %6639 = vmatprep.mubr.msk.f32.mxu0 %vm8984_vm0, %v10448_v8 }
  0x17   :  { %6658 = vmatprep.mubr.msk.f32.mxu1 %vm8984_vm0, %v10448_v8 }
  0x18   :  { %7918 = vmatpush3.bf16.msra.mxu0 %v9138_v38 }
  0x19   :  { %7930 = vmatpush3.bf16.msra.mxu1 %v9142_v39  ;;  %7919 = vmatprep.subr.bf16.mxu0 %v10446_v0 }
  0x1a   :  { %7931 = vmatprep.subr.bf16.mxu1 %v10446_v0 }
  0x1c   :  { %7921 = vmatpush3.bf16.msra.mxu0 %v9162_v44 }
  0x1d   :  { %7933 = vmatpush3.bf16.msra.mxu1 %v9166_v45  ;;  %7922 = vmatprep.subr.bf16.mxu0 %v10446_v0 }
  0x1e   :  { %7934 = vmatprep.subr.bf16.mxu1 %v10446_v0 }
  0x20   :  { %7924 = vmatpush3.bf16.msra.mxu0 %v9182_v50 }
  0x21   :  { %7936 = vmatpush3.bf16.msra.mxu1 %v9186_v51  ;;  %7937 = vmatprep.subr.bf16.mxu0 %v10446_v0 }
  0x22   :  { %7949 = vmatprep.subr.bf16.mxu1 %v10446_v0 }
  0x23   :  { %6640 = vmatmul.mubr.msk.f32.vlgmr.msra.gmra.mrb[2].mxu0 %vm120_vm2, %v113_v31 }
  0x24   :  { %6659 = vmatmul.mubr.msk.f32.vlgmr.msra.gmra.mrb[2].mxu1 %vm120_vm2, %v113_v31  ;;  %6677 = vmatprep.mubr.msk.f32.mxu0 %vm8984_vm0, %v10448_v8 }
  0x25   :  { %6696 = vmatprep.mubr.msk.f32.mxu1 %vm8984_vm0, %v10448_v8  ;;  %7939 = vmatpush3.bf16.msra.mxu0 %v9208_v55 }
  0x26   :  { %7951 = vmatpush3.bf16.msra.mxu1 %v9213_v57  ;;  %7940 = vmatprep.subr.bf16.mxu0 %v10446_v0 }
  0x27   :  { %7952 = vmatprep.subr.bf16.mxu1 %v10446_v0 }
  0x29   :  { %7942 = vmatpush3.bf16.msra.mxu0 %v9228_v61 }
  0x2a   :  { %7954 = vmatpush3.bf16.msra.mxu1 %v9239_v2  ;;  %7943 = vmatprep.subr.bf16.mxu0 %v10446_v0 }
  0x2b   :  { %7955 = vmatprep.subr.bf16.mxu1 %v10446_v0 }
  0x2d   :  { %7945 = vmatpush3.bf16.msra.mxu0 %v9248_v6 }
  0x2e   :  { %7957 = vmatpush3.bf16.msra.mxu1 %v9252_v7  ;;  %7946 = vmatprep.subr.bf16.mxu0 %v10446_v0 }
  0x2f   :  { %7958 = vmatprep.subr.bf16.mxu1 %v10446_v0 }
  0x31   :  { %7948 = vmatpush3.bf16.msra.mxu0 %v9268_v16 }
  0x32   :  { %7960 = vmatpush3.bf16.msra.mxu1 %v9272_v17  ;;  %7961 = vmatprep.subr.bf16.mxu0 %v10446_v0 }
  0x33   :  { %7973 = vmatprep.subr.bf16.mxu1 %v10446_v0 }
  0xe6   :  { %v190_v22 = vpop.f32.mrb[0].mxu0 }
  0xe7   :  { %v191_v23 = vadd.f32 %v9282_v20, %v190_v22  ;;  %v272_v26 = vpop.f32.mrb[0].mxu1  ;;  %v6603_v27 = vpop.f32.mrb[1].mxu0  ;;  %v9318_v22 = vpack.c.bf16 %v5804_v3, %v5803_v1  ;;  %v108_v1 = vld [vmem:[%s10443_s3 + $0x10] sm:$0xff] }
  0xe8   :  { %v273_v28 = vadd.f32 %v9287_v21, %v272_v26  ;;  %v6622_v29 = vpop.f32.mrb[1].mxu1  ;;  %v5805_v26 = vld [vmem:[%s10440_s1 + $0x190] sm:$0xff]  ;;  %v5806_v27 = vld [vmem:[%s10440_s1 + $0x198] sm:$0xff] }
  0xe9   :  { %v5828_v30 = vmul.f32 -1.442695, %v191_v23  ;;  %v9320_v23 = vpack.c.bf16 %v5812_v10, %v5811_v5  ;;  %v5814_v29 = vld [vmem:[%s10440_s1 + $0x1d8] sm:$0xff] }
  0xea   :  { %v5831_v31 = vmul.f32 -1.442695, %v273_v28  ;;  %v5813_v28 = vld [vmem:[%s10440_s1 + $0x1d0] sm:$0xff]  ;;  %v109_v5 = vld [vmem:[%s10443_s3 + $0x18] sm:$0xff] }
  0xeb   :  { %8709 = vpow2.f32 %v5828_v30  ;;  %v9437_v10 = vpack.c.bf16 %v109_v5, %v108_v1 }
  0xec   :  { %8711 = vpow2.f32 %v5831_v31  ;;  %v9340_v31 = vpack.c.bf16 %v5806_v27, %v5805_v26 }
  0xf5   :  { %v8710_v35 = vpop.eup %8709 }
  0xf6   :  { %v8712_v37 = vpop.eup %8711  ;;  %v197_v40 = vadd.f32 1.0, %v8710_v35  ;;  %v354_v41 = vpop.f32.mrb[2].mxu0  ;;  %v9342_v35 = vpack.c.bf16 %v5814_v29, %v5813_v28 }
  0xf7   :  { %v279_v42 = vadd.f32 1.0, %v8712_v37  ;;  %v355_v43 = vadd.f32 %v9294_v34, %v354_v41  ;;  %v431_v46 = vpop.f32.mrb[2].mxu1  ;;  %v6641_v47 = vpop.f32.mrb[3].mxu0  ;;  %v5807_v37 = vld [vmem:[%s10440_s1 + $0x1a0] sm:$0xff] }
  0xf8   :  { %8713 = vrcp.f32 %v197_v40  ;;  %v432_v48 = vadd.f32 %v9299_v36, %v431_v46  ;;  %v6660_v49 = vpop.f32.mrb[3].mxu1  ;;  %v5808_v40 = vld [vmem:[%s10440_s1 + $0x1a8] sm:$0xff]  ;;  %v5815_v41 = vld [vmem:[%s10440_s1 + $0x1e0] sm:$0xff]  ;;  %v5809_v47 = vld [vmem:[%s10440_s1 + $0x1b0] sm:$0xff] }
  0xf9   :  { %8715 = vrcp.f32 %v279_v42  ;;  %v5816_v42 = vld [vmem:[%s10440_s1 + $0x1e8] sm:$0xff]  ;;  %v5817_v49 = vld [vmem:[%s10440_s1 + $0x1f0] sm:$0xff] }
  0xfa   :  { %8717 = vtanh.f32 %v355_v43  ;;  %v5836_v52 = vmul.f32 -1.442695, %v432_v48  ;;  %v9364_v43 = vpack.c.bf16 %v5808_v40, %v5807_v37  ;;  %v9366_v46 = vpack.c.bf16 %v5816_v42, %v5815_v41  ;;  %v5810_v48 = vld [vmem:[%s10440_s1 + $0x1b8] sm:$0xff]  ;;  %v9473_v41 = vld [vmem:[%s10442_s2 + $0x6] ss:$0 sm:$0xff] }
  0xfb   :  { %v9478_v42 = vld [vmem:[%s10442_s2 + $0x7] ss:$0 sm:$0xff] }
  0xfc   :  { %8719 = vpow2.f32 %v5836_v52  ;;  %v5818_v52 = vld [vmem:[%s10440_s1 + $0x1f8] sm:$0xff] }
 0x102   :  { %v8714_v53 = vpop.eup %8713 }
 0x103   :  { %v8716_v54 = vpop.eup %8715 }
 0x104   :  { %v8718_v56 = vpop.eup %8717  ;;  %v441_v58 = vmul.f32 0.0, %v8716_v54  ;;  %v9386_v54 = vpack.c.bf16 %v5818_v52, %v5817_v49 }
 0x105   :  { %v442_v59 = vmul.f32 %v8718_v56, %v8714_v53  ;;  %v9384_v53 = vpack.c.bf16 %v5810_v48, %v5809_v47  ;;  %v5850_v56 = vld [vmem:[%s10441_s0 + $0x2] sm:$0x3] }
 0x106   :  { %v8720_v60 = vpop.eup %8719 }
 0x107   :  { %v9303_v62 = vadd.f32 %v442_v59, %v441_v58  ;;  %v438_v63 = vadd.f32 1.0, %v8720_v60  ;;  %v106_v60 = vld [vmem:[%s10443_s3] sm:$0xff] }
 0x109   :  { %8721 = vrcp.f32 %v438_v63  ;;  %v107_v63 = vld [vmem:[%s10443_s3 + $0x8] sm:$0xff] }
 0x10a   :  { %8723 = vtanh.f32 %v9303_v62  ;;  %v9429_v3 = vpack.c.bf16 %v107_v63, %v106_v60 }
 0x113   :  { %v8722_v11 = vpop.eup %8721 }
 0x114   :  { %v8724_v14 = vpop.eup %8723 }
 0x115   :  { %v445_v15 = vmul.f32 %v8724_v14, %v8722_v11  ;;  %v9461_v11 = vld [vmem:[%s10442_s2 + $0x4] ss:$0 sm:$0xff]  ;;  %v9466_v14 = vld [vmem:[%s10442_s2 + $0x5] ss:$0 sm:$0xff] }
 0x117   :  { %862 = vrot.lane.b32.xlu0 %v445_v15, %s8986_s15  ;;  %v446_v30 = vsel %vm112_vm1, %v445_v15, 0.0 }
 0x118   :  { %6678 = vmatmul.mubr.msk.f32.vlgmr.msra.gmra.mrb[4].mxu0 %vm120_vm2, %v446_v30  ;;  %6697 = vmatmul.mubr.msk.f32.vlgmr.msra.gmra.mrb[4].mxu1 %vm120_vm2, %v446_v30 }
 0x119   :  { %7963 = vmatpush3.bf16.msra.mxu0 %v9318_v22  ;;  %7975 = vmatpush3.bf16.msra.mxu1 %v9320_v23 }
 0x11a   :  { %7964 = vmatprep.subr.bf16.mxu0 %v10446_v0  ;;  %7976 = vmatprep.subr.bf16.mxu1 %v10446_v0 }
 0x11b   :  { %6715 = vmatprep.mubr.msk.f32.mxu0 %vm8984_vm0, %v10448_v8  ;;  %6734 = vmatprep.mubr.msk.f32.mxu1 %vm8984_vm0, %v10448_v8 }
 0x11d   :  { %7966 = vmatpush3.bf16.msra.mxu0 %v9340_v31  ;;  %7978 = vmatpush3.bf16.msra.mxu1 %v9342_v35 }
 0x11e   :  { %7967 = vmatprep.subr.bf16.mxu0 %v10446_v0  ;;  %7979 = vmatprep.subr.bf16.mxu1 %v10446_v0 }
 0x121   :  { %7969 = vmatpush3.bf16.msra.mxu0 %v9364_v43  ;;  %7981 = vmatpush3.bf16.msra.mxu1 %v9366_v46 }
 0x122   :  { %7970 = vmatprep.subr.bf16.mxu0 %v10446_v0  ;;  %7982 = vmatprep.subr.bf16.mxu1 %v10446_v0 }
 0x125   :  { %7972 = vmatpush3.bf16.msra.mxu0 %v9384_v53  ;;  %7984 = vmatpush3.bf16.msra.mxu1 %v9386_v54 }
 0x126   :  { %7991 = vmatprep.subr.bf16.mxu1 %v10446_v0  ;;  %7985 = vmatprep.subr.bf16.mxu0 %v10446_v0 }
 0x128   :  { %6716 = vmatmul.mubr.msk.f32.vlgmr.msra.gmra.mrb[6].mxu0 %vm120_vm2, %v446_v30  ;;  %6735 = vmatmul.mubr.msk.f32.vlgmr.msra.gmra.mrb[6].mxu1 %vm120_vm2, %v446_v30 }
 0x129   :  { %7993 = vmatpush3.bf16.msra.mxu1 %v9028_v4  ;;  %6764 = vmatprep.mubr.msk.f32.mxu1 %vm8984_vm0, %v10448_v8 }
 0x12a   :  { %7994 = vmatprep.subr.bf16.mxu1 %v10446_v0  ;;  %6745 = vmatprep.mubr.msk.f32.mxu0 %vm8984_vm0, %v10448_v8 }
 0x12b   :  { %7987 = vmatpush3.bf16.msra.mxu0 %v9429_v3 }
 0x12c   :  { %7988 = vmatprep.subr.bf16.mxu0 %v10446_v0 }
 0x12d   :  { %7996 = vmatpush3.bf16.msra.mxu1 %v9052_v12 }
 0x12e   :  { %7997 = vmatprep.subr.bf16.mxu1 %v10446_v0 }
 0x12f   :  { %7990 = vmatpush3.bf16.msra.mxu0 %v9437_v10 }
 0x130   :  { %8003 = vmatprep.subr.bf16.mxu0 %v10446_v0 }
 0x131   :  { %7999 = vmatpush3.bf16.msra.mxu1 %v9072_v18 }
 0x132   :  { %8000 = vmatprep.subr.bf16.mxu1 %v10446_v0 }
 0x135   :  { %8002 = vmatpush3.bf16.msra.mxu1 %v9092_v24 }
 0x136   :  { %8015 = vmatprep.subr.bf16.mxu1 %v10446_v0 }
 0x189   :  { %v863_v58 = vpop.permute.xlu0 %862 }
 0x18a   :  { %v9412_v59 = vsel %vm112_vm1, %v5850_v56, %v863_v58 }
 0x18b   :  { %6765 = vmatmul.mubr.msk.f32.vlgmr.msra.gmra.mrb[8].mxu1 %vm120_vm2, %v9412_v59 }
 0x18c   :  { %8017 = vmatpush3.bf16.msra.mxu1 %v9116_v32  ;;  %6802 = vmatprep.mubr.msk.f32.mxu1 %vm8984_vm0, %v10448_v8 }
 0x18d   :  { %8018 = vmatprep.subr.bf16.mxu1 %v10446_v0 }
 0x190   :  { %8020 = vmatpush3.bf16.msra.mxu1 %v9138_v38 }
 0x191   :  { %8021 = vmatprep.subr.bf16.mxu1 %v10446_v0 }
 0x194   :  { %8023 = vmatpush3.bf16.msra.mxu1 %v9162_v44 }
 0x195   :  { %8024 = vmatprep.subr.bf16.mxu1 %v10446_v0 }
 0x198   :  { %8026 = vmatpush3.bf16.msra.mxu1 %v9182_v50 }
 0x199   :  { %8039 = vmatprep.subr.bf16.mxu1 %v10446_v0 }
 0x19b   :  { %6803 = vmatmul.mubr.msk.f32.vlgmr.msra.gmra.mrb[10].mxu1 %vm120_vm2, %v9412_v59 }
 0x19c   :  { %8041 = vmatpush3.bf16.msra.mxu1 %v9208_v55  ;;  %6840 = vmatprep.mubr.msk.f32.mxu1 %vm8984_vm0, %v10448_v8 }
 0x19d   :  { %8042 = vmatprep.subr.bf16.mxu1 %v10446_v0 }
 0x1a0   :  { %8044 = vmatpush3.bf16.msra.mxu1 %v9228_v61 }
 0x1a1   :  { %8045 = vmatprep.subr.bf16.mxu1 %v10446_v0 }
 0x1a4   :  { %8047 = vmatpush3.bf16.msra.mxu1 %v9248_v6 }
 0x1a5   :  { %8048 = vmatprep.subr.bf16.mxu1 %v10446_v0 }
 0x1a8   :  { %8050 = vmatpush3.bf16.msra.mxu1 %v9268_v16 }
 0x1a9   :  { %8063 = vmatprep.subr.bf16.mxu1 %v10446_v0 }
 0x1eb   :  { %v522_v15 = vpop.f32.mrb[4].mxu0  ;;  %v604_v26 = vpop.f32.mrb[4].mxu1 }
 0x1ec   :  { %v523_v27 = vadd.f32 %v9461_v11, %v522_v15  ;;  %v605_v28 = vadd.f32 %v9466_v14, %v604_v26  ;;  %v6679_v29 = vpop.f32.mrb[5].mxu0  ;;  %v6698_v30 = vpop.f32.mrb[5].mxu1 }
 0x1ee   :  { %v5839_v37 = vmul.f32 -1.442695, %v523_v27  ;;  %v5842_v40 = vmul.f32 -1.442695, %v605_v28 }
 0x1f0   :  { %8725 = vpow2.f32 %v5839_v37 }
 0x1f1   :  { %8727 = vpow2.f32 %v5842_v40 }
 0x1fa   :  { %v8726_v47 = vpop.eup %8725 }
 0x1fb   :  { %v8728_v48 = vpop.eup %8727  ;;  %v529_v49 = vadd.f32 1.0, %v8726_v47  ;;  %v686_v52 = vpop.f32.mrb[6].mxu0 }
 0x1fc   :  { %v763_v56 = vpop.f32.mrb[6].mxu1  ;;  %v611_v58 = vadd.f32 1.0, %v8728_v48  ;;  %v687_v60 = vadd.f32 %v9473_v41, %v686_v52  ;;  %v6717_v1 = vpop.f32.mrb[7].mxu0 }
 0x1fd   :  { %v764_v63 = vadd.f32 %v9478_v42, %v763_v56  ;;  %v6736_v5 = vpop.f32.mrb[7].mxu1  ;;  %8729 = vrcp.f32 %v529_v49 }
 0x1fe   :  { %8731 = vrcp.f32 %v611_v58 }
 0x1ff   :  { %v5847_v15 = vmul.f32 -1.442695, %v764_v63  ;;  %8733 = vtanh.f32 %v687_v60 }
 0x201   :  { %8735 = vpow2.f32 %v5847_v15 }
 0x207   :  { %v8730_v26 = vpop.eup %8729 }
 0x208   :  { %v8732_v27 = vpop.eup %8731 }
 0x209   :  { %v8734_v28 = vpop.eup %8733  ;;  %v773_v29 = vmul.f32 0.0, %v8732_v27 }
 0x20a   :  { %v774_v37 = vmul.f32 %v8734_v28, %v8730_v26 }
 0x20b   :  { %v8736_v30 = vpop.eup %8735 }
 0x20c   :  { %v770_v40 = vadd.f32 1.0, %v8736_v30  ;;  %v9482_v47 = vadd.f32 %v774_v37, %v773_v29  ;;  %v9526_v30 = vld [vmem:[%s10444_s4] ss:$0 sm:$0xff] }
 0x20e   :  { %8737 = vrcp.f32 %v770_v40 }
 0x20f   :  { %8739 = vtanh.f32 %v9482_v47 }
 0x218   :  { %v8738_v48 = vpop.eup %8737 }
 0x219   :  { %v8740_v52 = vpop.eup %8739 }
 0x21a   :  { %v777_v56 = vmul.f32 %v8740_v52, %v8738_v48 }
 0x21c   :  { %1173 = vrot.lane.b32.xlu0 %v777_v56, %s8986_s15  ;;  %6746 = vmatmul.mubr.msk.f32.vlgmr.msra.gmra.mrb[8].mxu0 %vm112_vm1, %v777_v56 }
 0x21d   :  { %8005 = vmatpush3.bf16.msra.mxu0 %v9043_v9  ;;  %6783 = vmatprep.mubr.msk.f32.mxu0 %vm8984_vm0, %v10448_v8 }
 0x21e   :  { %8006 = vmatprep.subr.bf16.mxu0 %v10446_v0 }
 0x221   :  { %8008 = vmatpush3.bf16.msra.mxu0 %v9056_v13 }
 0x222   :  { %8009 = vmatprep.subr.bf16.mxu0 %v10446_v0 }
 0x225   :  { %8011 = vmatpush3.bf16.msra.mxu0 %v9076_v19 }
 0x226   :  { %8012 = vmatprep.subr.bf16.mxu0 %v10446_v0 }
 0x229   :  { %8014 = vmatpush3.bf16.msra.mxu0 %v9096_v25 }
 0x22a   :  { %8027 = vmatprep.subr.bf16.mxu0 %v10446_v0 }
 0x22c   :  { %6784 = vmatmul.mubr.msk.f32.vlgmr.msra.gmra.mrb[10].mxu0 %vm120_vm2, %v9412_v59 }
 0x22d   :  { %8029 = vmatpush3.bf16.msra.mxu0 %v9120_v33  ;;  %6821 = vmatprep.mubr.msk.f32.mxu0 %vm8984_vm0, %v10448_v8 }
 0x22e   :  { %8030 = vmatprep.subr.bf16.mxu0 %v10446_v0 }
 0x231   :  { %8032 = vmatpush3.bf16.msra.mxu0 %v9142_v39 }
 0x232   :  { %8033 = vmatprep.subr.bf16.mxu0 %v10446_v0 }
 0x235   :  { %8035 = vmatpush3.bf16.msra.mxu0 %v9166_v45 }
 0x236   :  { %8036 = vmatprep.subr.bf16.mxu0 %v10446_v0 }
 0x239   :  { %8038 = vmatpush3.bf16.msra.mxu0 %v9186_v51 }
 0x23a   :  { %8051 = vmatprep.subr.bf16.mxu0 %v10446_v0 }
 0x23c   :  { %6822 = vmatmul.mubr.msk.f32.vlgmr.msra.gmra.mrb[12].mxu0 %vm120_vm2, %v9412_v59 }
 0x23d   :  { %8053 = vmatpush3.bf16.msra.mxu0 %v9213_v57  ;;  %6859 = vmatprep.mubr.msk.f32.mxu0 %vm8984_vm0, %v10448_v8 }
 0x23e   :  { %8054 = vmatprep.subr.bf16.mxu0 %v10446_v0 }
 0x241   :  { %8056 = vmatpush3.bf16.msra.mxu0 %v9239_v2 }
 0x242   :  { %8057 = vmatprep.subr.bf16.mxu0 %v10446_v0 }
 0x245   :  { %8059 = vmatpush3.bf16.msra.mxu0 %v9252_v7 }
 0x246   :  { %8060 = vmatprep.subr.bf16.mxu0 %v10446_v0 }
 0x249   :  { %8062 = vmatpush3.bf16.msra.mxu0 %v9272_v17 }
 0x24a   :  { %8075 = vmatprep.subr.bf16.mxu0 %v10446_v0 }
 0x25e   :  { %v935_v59 = vpop.f32.mrb[8].mxu1 }
 0x25f   :  { %v936_v49 = vadd.f32 %v9282_v20, %v935_v59  ;;  %v6766_v58 = vpop.f32.mrb[9].mxu1 }
 0x261   :  { %v5852_v60 = vmul.f32 -1.442695, %v936_v49 }
 0x263   :  { %8741 = vpow2.f32 %v5852_v60 }
 0x26d   :  { %v8742_v63 = vpop.eup %8741 }
 0x26e   :  { %v942_v1 = vadd.f32 1.0, %v8742_v63  ;;  %v1087_v5 = vpop.f32.mrb[10].mxu1 }
 0x26f   :  { %v1088_v15 = vadd.f32 %v9294_v34, %v1087_v5  ;;  %v6804_v26 = vpop.f32.mrb[11].mxu1 }
 0x270   :  { %8743 = vrcp.f32 %v942_v1 }
 0x271   :  { %8745 = vtanh.f32 %v1088_v15 }
 0x27a   :  { %v8744_v27 = vpop.eup %8743 }
 0x27b   :  { %v8746_v28 = vpop.eup %8745 }
 0x27c   :  { %v1169_v29 = vmul.f32 %v8746_v28, %v8744_v27 }
 0x2ef   :  { %v853_v37 = vpop.f32.mrb[8].mxu0 }
 0x2f0   :  { %v854_v40 = vadd.f32 %v9526_v30, %v853_v37  ;;  %v6747_v48 = vpop.f32.mrb[9].mxu0 }
 0x2f2   :  { %858 = vst.msk [vmem:[%s10445_s5] sm:$0x3] %vm857_vm3, %v854_v40 }
 0x2ff   :  { %v1011_v52 = vpop.f32.mrb[10].mxu0 }
 0x300   :  { %v1012_v56 = vadd.f32 %v9287_v21, %v1011_v52  ;;  %v6785_v59 = vpop.f32.mrb[11].mxu0 }
 0x301   :  { %v1174_v59 = vpop.permute.xlu0 %1173 }
 0x302   :  { %v5854_v49 = vmul.f32 -1.442695, %v1012_v56 }
 0x304   :  { %8747 = vpow2.f32 %v5854_v49 }
 0x30e   :  { %v8748_v58 = vpop.eup %8747 }
 0x30f   :  { %v1018_v60 = vadd.f32 1.0, %v8748_v58  ;;  %v1158_v63 = vpop.f32.mrb[12].mxu0 }
 0x310   :  { %v1159_v1 = vadd.f32 %v9299_v36, %v1158_v63  ;;  %v6823_v5 = vpop.f32.mrb[13].mxu0 }
 0x311   :  { %8749 = vrcp.f32 %v1018_v60 }
 0x312   :  { %v5857_v15 = vmul.f32 -1.442695, %v1159_v1 }
 0x314   :  { %8751 = vpow2.f32 %v5857_v15 }
 0x31b   :  { %v8750_v26 = vpop.eup %8749 }
 0x31c   :  { %v1168_v27 = vmul.f32 %v8750_v26, %v9303_v62  ;;  %v5867_v62 = vld [vmem:[%s10441_s0 + $0x4] sm:$0x3] }
 0x31e   :  { %v8752_v28 = vpop.eup %8751  ;;  %v9536_v37 = vadd.f32 %v1169_v29, %v1168_v27 }
 0x31f   :  { %v1165_v40 = vadd.f32 1.0, %v8752_v28 }
 0x320   :  { %8753 = vtanh.f32 %v9536_v37 }
 0x321   :  { %8755 = vrcp.f32 %v1165_v40 }
 0x32a   :  { %v8754_v48 = vpop.eup %8753 }
 0x32b   :  { %v8756_v52 = vpop.eup %8755 }
 0x32c   :  { %v1172_v56 = vmul.f32 %v8756_v52, %v8754_v48 }
 0x32e   :  { %1562 = vrot.lane.b32.xlu1 %v1172_v56, %s8986_s15  ;;  %v1176_v49 = vsel %vm112_vm1, %v1172_v56, %v1174_v59 }
 0x32f   :  { %6841 = vmatmul.mubr.msk.f32.vlgmr.msra.gmra.mrb[12].mxu1 %vm120_vm2, %v1176_v49  ;;  %6860 = vmatmul.mubr.msk.f32.vlgmr.msra.gmra.mrb[14].mxu0 %vm120_vm2, %v1176_v49 }
 0x330   :  { %8065 = vmatpush3.bf16.msra.mxu1 %v9318_v22  ;;  %8077 = vmatpush3.bf16.msra.mxu0 %v9320_v23 }
 0x331   :  { %8066 = vmatprep.subr.bf16.mxu1 %v10446_v0  ;;  %8078 = vmatprep.subr.bf16.mxu0 %v10446_v0 }
 0x332   :  { %6878 = vmatprep.mubr.msk.f32.mxu1 %vm8984_vm0, %v10448_v8  ;;  %6897 = vmatprep.mubr.msk.f32.mxu0 %vm8984_vm0, %v10448_v8 }
 0x334   :  { %8068 = vmatpush3.bf16.msra.mxu1 %v9340_v31  ;;  %8080 = vmatpush3.bf16.msra.mxu0 %v9342_v35 }
 0x335   :  { %8069 = vmatprep.subr.bf16.mxu1 %v10446_v0  ;;  %8081 = vmatprep.subr.bf16.mxu0 %v10446_v0 }
 0x338   :  { %8071 = vmatpush3.bf16.msra.mxu1 %v9364_v43  ;;  %8083 = vmatpush3.bf16.msra.mxu0 %v9366_v46 }
 0x339   :  { %8072 = vmatprep.subr.bf16.mxu1 %v10446_v0  ;;  %8084 = vmatprep.subr.bf16.mxu0 %v10446_v0 }
 0x33c   :  { %8074 = vmatpush3.bf16.msra.mxu1 %v9384_v53  ;;  %8086 = vmatpush3.bf16.msra.mxu0 %v9386_v54 }
 0x33d   :  { %8093 = vmatprep.subr.bf16.mxu0 %v10446_v0  ;;  %8087 = vmatprep.subr.bf16.mxu1 %v10446_v0 }
 0x33f   :  { %6879 = vmatmul.mubr.msk.f32.vlgmr.msra.gmra.mrb[14].mxu1 %vm120_vm2, %v1176_v49  ;;  %6898 = vmatmul.mubr.msk.f32.vlgmr.msra.gmra.mrb[16].mxu0 %vm120_vm2, %v1176_v49 }
 0x340   :  { %8095 = vmatpush3.bf16.msra.mxu0 %v9028_v4  ;;  %6927 = vmatprep.mubr.msk.f32.mxu0 %vm8984_vm0, %v10448_v8 }
 0x341   :  { %8096 = vmatprep.subr.bf16.mxu0 %v10446_v0  ;;  %8089 = vmatpush3.bf16.msra.mxu1 %v9429_v3 }
 0x342   :  { %8090 = vmatprep.subr.bf16.mxu1 %v10446_v0  ;;  %6908 = vmatprep.mubr.msk.f32.mxu1 %vm8984_vm0, %v10448_v8 }
 0x344   :  { %8098 = vmatpush3.bf16.msra.mxu0 %v9052_v12 }
 0x345   :  { %8099 = vmatprep.subr.bf16.mxu0 %v10446_v0  ;;  %8092 = vmatpush3.bf16.msra.mxu1 %v9437_v10 }
 0x346   :  { %8105 = vmatprep.subr.bf16.mxu1 %v10446_v0 }
 0x348   :  { %8101 = vmatpush3.bf16.msra.mxu0 %v9072_v18 }
 0x349   :  { %8102 = vmatprep.subr.bf16.mxu0 %v10446_v0 }
 0x34c   :  { %8104 = vmatpush3.bf16.msra.mxu0 %v9092_v24 }
 0x34d   :  { %8117 = vmatprep.subr.bf16.mxu0 %v10446_v0 }
 0x3a0   :  { %v1563_v29 = vpop.permute.xlu1 %1562 }
 0x3a1   :  { %v9585_v58 = vsel %vm112_vm1, %v5867_v62, %v1563_v29 }
 0x3a2   :  { %6928 = vmatmul.mubr.msk.f32.vlgmr.msra.gmra.mrb[18].mxu0 %vm120_vm2, %v9585_v58 }
 0x3a3   :  { %8119 = vmatpush3.bf16.msra.mxu0 %v9116_v32  ;;  %6965 = vmatprep.mubr.msk.f32.mxu0 %vm8984_vm0, %v10448_v8 }
 0x3a4   :  { %8120 = vmatprep.subr.bf16.mxu0 %v10446_v0 }
 0x3a7   :  { %8122 = vmatpush3.bf16.msra.mxu0 %v9138_v38 }
 0x3a8   :  { %8123 = vmatprep.subr.bf16.mxu0 %v10446_v0 }
 0x3ab   :  { %8125 = vmatpush3.bf16.msra.mxu0 %v9162_v44 }
 0x3ac   :  { %8126 = vmatprep.subr.bf16.mxu0 %v10446_v0 }
 0x3af   :  { %8128 = vmatpush3.bf16.msra.mxu0 %v9182_v50 }
 0x3b0   :  { %8141 = vmatprep.subr.bf16.mxu0 %v10446_v0 }
 0x3b2   :  { %6966 = vmatmul.mubr.msk.f32.vlgmr.msra.gmra.mrb[20].mxu0 %vm120_vm2, %v9585_v58 }
 0x3b3   :  { %8143 = vmatpush3.bf16.msra.mxu0 %v9208_v55  ;;  %7003 = vmatprep.mubr.msk.f32.mxu0 %vm8984_vm0, %v10448_v8 }
 0x3b4   :  { %8144 = vmatprep.subr.bf16.mxu0 %v10446_v0 }
 0x3b7   :  { %8146 = vmatpush3.bf16.msra.mxu0 %v9228_v61 }
 0x3b8   :  { %8147 = vmatprep.subr.bf16.mxu0 %v10446_v0 }
 0x3bb   :  { %8149 = vmatpush3.bf16.msra.mxu0 %v9248_v6 }
 0x3bc   :  { %8150 = vmatprep.subr.bf16.mxu0 %v10446_v0 }
 0x3bf   :  { %8152 = vmatpush3.bf16.msra.mxu0 %v9268_v16 }
 0x3c0   :  { %8165 = vmatprep.subr.bf16.mxu0 %v10446_v0 }
 0x402   :  { %v1246_v60 = vpop.f32.mrb[12].mxu1  ;;  %v1322_v63 = vpop.f32.mrb[14].mxu0 }
 0x403   :  { %v1247_v1 = vadd.f32 %v9461_v11, %v1246_v60  ;;  %v1323_v5 = vadd.f32 %v9466_v14, %v1322_v63  ;;  %v6842_v15 = vpop.f32.mrb[13].mxu1  ;;  %v6861_v26 = vpop.f32.mrb[15].mxu0 }
 0x405   :  { %v5859_v27 = vmul.f32 -1.442695, %v1247_v1  ;;  %v5861_v28 = vmul.f32 -1.442695, %v1323_v5 }
 0x407   :  { %8757 = vpow2.f32 %v5859_v27 }
 0x408   :  { %8759 = vpow2.f32 %v5861_v28 }
 0x411   :  { %v8758_v40 = vpop.eup %8757 }
 0x412   :  { %v8760_v48 = vpop.eup %8759  ;;  %v1253_v52 = vadd.f32 1.0, %v8758_v40  ;;  %v1398_v56 = vpop.f32.mrb[14].mxu1 }
 0x413   :  { %v1469_v59 = vpop.f32.mrb[16].mxu0  ;;  %v1329_v49 = vadd.f32 1.0, %v8760_v48  ;;  %v1399_v62 = vadd.f32 %v9473_v41, %v1398_v56  ;;  %v6880_v0 = vpop.f32.mrb[15].mxu1 }
 0x414   :  { %v1470_v29 = vadd.f32 %v9478_v42, %v1469_v59  ;;  %v6899_v60 = vpop.f32.mrb[17].mxu0  ;;  %8761 = vrcp.f32 %v1253_v52 }
 0x415   :  { %8763 = vrcp.f32 %v1329_v49 }
 0x416   :  { %v5864_v63 = vmul.f32 -1.442695, %v1470_v29  ;;  %8765 = vtanh.f32 %v1399_v62 }
 0x418   :  { %8767 = vpow2.f32 %v5864_v63 }
 0x41e   :  { %v8762_v1 = vpop.eup %8761 }
 0x41f   :  { %v8764_v5 = vpop.eup %8763 }
 0x420   :  { %v8766_v15 = vpop.eup %8765  ;;  %v1479_v26 = vmul.f32 %v8764_v5, %v9482_v47  ;;  %v10450_v47 = vmov 0.0|0.0  }
 0x421   :  { %v1480_v28 = vmul.f32 %v8766_v15, %v8762_v1 }
 0x422   :  { %v8768_v27 = vpop.eup %8767 }
 0x423   :  { %v1476_v40 = vadd.f32 1.0, %v8768_v27  ;;  %v9616_v48 = vadd.f32 %v1480_v28, %v1479_v26 }
 0x425   :  { %8769 = vrcp.f32 %v1476_v40 }
 0x426   :  { %8771 = vtanh.f32 %v9616_v48 }
 0x42f   :  { %v8770_v0 = vpop.eup %8769 }
 0x430   :  { %v8772_v56 = vpop.eup %8771 }
 0x431   :  { %v1483_v52 = vmul.f32 %v8772_v56, %v8770_v0 }
 0x433   :  { %1873 = vrot.lane.b32.xlu1 %v1483_v52, %s8986_s15  ;;  %6909 = vmatmul.mubr.msk.f32.vlgmr.msra.gmra.mrb[16].mxu1 %vm112_vm1, %v1483_v52 }
 0x434   :  { %8107 = vmatpush3.bf16.msra.mxu1 %v9043_v9  ;;  %6946 = vmatprep.mubr.msk.f32.mxu1 %vm8984_vm0, %v10448_v8 }
 0x435   :  { %8108 = vmatprep.subr.bf16.mxu1 %v10450_v47 }
 0x438   :  { %8110 = vmatpush3.bf16.msra.mxu1 %v9056_v13 }
 0x439   :  { %8111 = vmatprep.subr.bf16.mxu1 %v10450_v47 }
 0x43c   :  { %8113 = vmatpush3.bf16.msra.mxu1 %v9076_v19 }
 0x43d   :  { %8114 = vmatprep.subr.bf16.mxu1 %v10450_v47 }
 0x440   :  { %8116 = vmatpush3.bf16.msra.mxu1 %v9096_v25 }
 0x441   :  { %8129 = vmatprep.subr.bf16.mxu1 %v10450_v47 }
 0x443   :  { %6947 = vmatmul.mubr.msk.f32.vlgmr.msra.gmra.mrb[18].mxu1 %vm120_vm2, %v9585_v58 }
 0x444   :  { %8131 = vmatpush3.bf16.msra.mxu1 %v9120_v33  ;;  %6984 = vmatprep.mubr.msk.f32.mxu1 %vm8984_vm0, %v10448_v8 }
 0x445   :  { %8132 = vmatprep.subr.bf16.mxu1 %v10450_v47 }
 0x448   :  { %8134 = vmatpush3.bf16.msra.mxu1 %v9142_v39 }
 0x449   :  { %8135 = vmatprep.subr.bf16.mxu1 %v10450_v47 }
 0x44c   :  { %8137 = vmatpush3.bf16.msra.mxu1 %v9166_v45 }
 0x44d   :  { %8138 = vmatprep.subr.bf16.mxu1 %v10450_v47 }
 0x450   :  { %8140 = vmatpush3.bf16.msra.mxu1 %v9186_v51 }
 0x451   :  { %8153 = vmatprep.subr.bf16.mxu1 %v10450_v47 }
 0x453   :  { %6985 = vmatmul.mubr.msk.f32.vlgmr.msra.gmra.mrb[20].mxu1 %vm120_vm2, %v9585_v58 }
 0x454   :  { %8155 = vmatpush3.bf16.msra.mxu1 %v9213_v57  ;;  %7022 = vmatprep.mubr.msk.f32.mxu1 %vm8984_vm0, %v10448_v8 }
 0x455   :  { %8156 = vmatprep.subr.bf16.mxu1 %v10450_v47 }
 0x458   :  { %8158 = vmatpush3.bf16.msra.mxu1 %v9239_v2 }
 0x459   :  { %8159 = vmatprep.subr.bf16.mxu1 %v10450_v47 }
 0x45c   :  { %8161 = vmatpush3.bf16.msra.mxu1 %v9252_v7 }
 0x45d   :  { %8162 = vmatprep.subr.bf16.mxu1 %v10450_v47 }
 0x460   :  { %8164 = vmatpush3.bf16.msra.mxu1 %v9272_v17 }
 0x461   :  { %8177 = vmatprep.subr.bf16.mxu1 %v10450_v47 }
 0x475   :  { %v1635_v58 = vpop.f32.mrb[18].mxu0 }
 0x476   :  { %v1636_v59 = vadd.f32 %v9282_v20, %v1635_v58  ;;  %v6929_v49 = vpop.f32.mrb[19].mxu0 }
 0x478   :  { %v5869_v62 = vmul.f32 -1.442695, %v1636_v59 }
 0x47a   :  { %8773 = vpow2.f32 %v5869_v62 }
 0x484   :  { %v8774_v29 = vpop.eup %8773 }
 0x485   :  { %v1642_v60 = vadd.f32 1.0, %v8774_v29  ;;  %v1787_v63 = vpop.f32.mrb[20].mxu0 }
 0x486   :  { %v1788_v1 = vadd.f32 %v9294_v34, %v1787_v63  ;;  %v6967_v5 = vpop.f32.mrb[21].mxu0 }
 0x487   :  { %8775 = vrcp.f32 %v1642_v60 }
 0x488   :  { %8777 = vtanh.f32 %v1788_v1 }
 0x491   :  { %v8776_v15 = vpop.eup %8775 }
 0x492   :  { %v8778_v26 = vpop.eup %8777 }
 0x493   :  { %v1869_v27 = vmul.f32 %v8778_v26, %v8776_v15 }
 0x506   :  { %v1553_v28 = vpop.f32.mrb[16].mxu1 }
 0x507   :  { %v1554_v40 = vadd.f32 %v9526_v30, %v1553_v28  ;;  %v6910_v0 = vpop.f32.mrb[17].mxu1 }
 0x508   :  { %v1874_v0 = vpop.permute.xlu1 %1873 }
 0x509   :  { %5866 = vst.msk [vmem:[%s10445_s5 + $0x2] sm:$0x3] %vm857_vm3, %v1554_v40 }
 0x516   :  { %v1711_v20 = vpop.f32.mrb[18].mxu1 }
 0x517   :  { %v1712_v56 = vadd.f32 %v9287_v21, %v1711_v20  ;;  %v6948_v52 = vpop.f32.mrb[19].mxu1 }
 0x519   :  { %v5871_v34 = vmul.f32 -1.442695, %v1712_v56 }
 0x51b   :  { %8779 = vpow2.f32 %v5871_v34 }
 0x525   :  { %v8780_v58 = vpop.eup %8779 }
 0x526   :  { %v1718_v59 = vadd.f32 1.0, %v8780_v58  ;;  %v1858_v49 = vpop.f32.mrb[20].mxu1 }
 0x527   :  { %v1859_v62 = vadd.f32 %v9299_v36, %v1858_v49  ;;  %v6986_v29 = vpop.f32.mrb[21].mxu1 }
 0x528   :  { %8781 = vrcp.f32 %v1718_v59 }
 0x529   :  { %v5874_v60 = vmul.f32 -1.442695, %v1859_v62 }
 0x52b   :  { %8783 = vpow2.f32 %v5874_v60 }
 0x532   :  { %v8782_v63 = vpop.eup %8781 }
 0x533   :  { %v1868_v1 = vmul.f32 %v8782_v63, %v9536_v37  ;;  %v5884_v37 = vld [vmem:[%s10441_s0 + $0x6] sm:$0x3] }
 0x535   :  { %v8784_v5 = vpop.eup %8783  ;;  %v9665_v15 = vadd.f32 %v1869_v27, %v1868_v1 }
 0x536   :  { %v1865_v26 = vadd.f32 1.0, %v8784_v5 }
 0x537   :  { %8785 = vtanh.f32 %v9665_v15 }
 0x538   :  { %8787 = vrcp.f32 %v1865_v26 }
 0x541   :  { %v8786_v21 = vpop.eup %8785 }
 0x542   :  { %v8788_v28 = vpop.eup %8787 }
 0x543   :  { %v1872_v40 = vmul.f32 %v8788_v28, %v8786_v21 }
 0x545   :  { %2262 = vrot.lane.b32.xlu0 %v1872_v40, %s8986_s15  ;;  %v1876_v36 = vsel %vm112_vm1, %v1872_v40, %v1874_v0 }
 0x546   :  { %7004 = vmatmul.mubr.msk.f32.vlgmr.msra.gmra.mrb[22].mxu0 %vm120_vm2, %v1876_v36  ;;  %7023 = vmatmul.mubr.msk.f32.vlgmr.msra.gmra.mrb[22].mxu1 %vm120_vm2, %v1876_v36 }
 0x547   :  { %8167 = vmatpush3.bf16.msra.mxu0 %v9318_v22  ;;  %8179 = vmatpush3.bf16.msra.mxu1 %v9320_v23 }
 0x548   :  { %8168 = vmatprep.subr.bf16.mxu0 %v10450_v47  ;;  %8180 = vmatprep.subr.bf16.mxu1 %v10450_v47 }
 0x549   :  { %7041 = vmatprep.mubr.msk.f32.mxu0 %vm8984_vm0, %v10448_v8  ;;  %7060 = vmatprep.mubr.msk.f32.mxu1 %vm8984_vm0, %v10448_v8 }
 0x54b   :  { %8170 = vmatpush3.bf16.msra.mxu0 %v9340_v31  ;;  %8182 = vmatpush3.bf16.msra.mxu1 %v9342_v35 }
 0x54c   :  { %8171 = vmatprep.subr.bf16.mxu0 %v10450_v47  ;;  %8183 = vmatprep.subr.bf16.mxu1 %v10450_v47 }
 0x54f   :  { %8173 = vmatpush3.bf16.msra.mxu0 %v9364_v43  ;;  %8185 = vmatpush3.bf16.msra.mxu1 %v9366_v46 }
 0x550   :  { %8174 = vmatprep.subr.bf16.mxu0 %v10450_v47  ;;  %8186 = vmatprep.subr.bf16.mxu1 %v10450_v47 }
 0x553   :  { %8176 = vmatpush3.bf16.msra.mxu0 %v9384_v53  ;;  %8188 = vmatpush3.bf16.msra.mxu1 %v9386_v54 }
 0x554   :  { %8195 = vmatprep.subr.bf16.mxu1 %v10450_v47  ;;  %8189 = vmatprep.subr.bf16.mxu0 %v10450_v47 }
 0x556   :  { %7042 = vmatmul.mubr.msk.f32.vlgmr.msra.gmra.mrb[24].mxu0 %vm120_vm2, %v1876_v36  ;;  %7061 = vmatmul.mubr.msk.f32.vlgmr.msra.gmra.mrb[24].mxu1 %vm120_vm2, %v1876_v36 }
 0x557   :  { %8197 = vmatpush3.bf16.msra.mxu1 %v9028_v4  ;;  %7090 = vmatprep.mubr.msk.f32.mxu1 %vm8984_vm0, %v10448_v8 }
 0x558   :  { %8198 = vmatprep.subr.bf16.mxu1 %v10450_v47  ;;  %8191 = vmatpush3.bf16.msra.mxu0 %v9429_v3 }
 0x559   :  { %8192 = vmatprep.subr.bf16.mxu0 %v10450_v47  ;;  %7071 = vmatprep.mubr.msk.f32.mxu0 %vm8984_vm0, %v10448_v8 }
 0x55b   :  { %8200 = vmatpush3.bf16.msra.mxu1 %v9052_v12 }
 0x55c   :  { %8201 = vmatprep.subr.bf16.mxu1 %v10450_v47  ;;  %8194 = vmatpush3.bf16.msra.mxu0 %v9437_v10 }
 0x55d   :  { %8207 = vmatprep.subr.bf16.mxu0 %v10450_v47 }
 0x55f   :  { %8203 = vmatpush3.bf16.msra.mxu1 %v9072_v18 }
 0x560   :  { %8204 = vmatprep.subr.bf16.mxu1 %v10450_v47 }
 0x563   :  { %8206 = vmatpush3.bf16.msra.mxu1 %v9092_v24 }
 0x564   :  { %8219 = vmatprep.subr.bf16.mxu1 %v10450_v47 }
 0x5b7   :  { %v2263_v27 = vpop.permute.xlu0 %2262 }
 0x5b8   :  { %v9714_v20 = vsel %vm112_vm1, %v5884_v37, %v2263_v27 }
 0x5b9   :  { %7091 = vmatmul.mubr.msk.f32.vlgmr.msra.gmra.mrb[26].mxu1 %vm120_vm2, %v9714_v20 }
 0x5ba   :  { %8221 = vmatpush3.bf16.msra.mxu1 %v9116_v32  ;;  %7128 = vmatprep.mubr.msk.f32.mxu1 %vm8984_vm0, %v10448_v8 }
 0x5bb   :  { %8222 = vmatprep.subr.bf16.mxu1 %v10450_v47 }
 0x5be   :  { %8224 = vmatpush3.bf16.msra.mxu1 %v9138_v38 }
 0x5bf   :  { %8225 = vmatprep.subr.bf16.mxu1 %v10450_v47 }
 0x5c2   :  { %8227 = vmatpush3.bf16.msra.mxu1 %v9162_v44 }
 0x5c3   :  { %8228 = vmatprep.subr.bf16.mxu1 %v10450_v47 }
 0x5c6   :  { %8230 = vmatpush3.bf16.msra.mxu1 %v9182_v50 }
 0x5c7   :  { %8243 = vmatprep.subr.bf16.mxu1 %v10450_v47 }
 0x5c9   :  { %7129 = vmatmul.mubr.msk.f32.vlgmr.msra.gmra.mrb[28].mxu1 %vm120_vm2, %v9714_v20 }
 0x5ca   :  { %8245 = vmatpush3.bf16.msra.mxu1 %v9208_v55  ;;  %7166 = vmatprep.mubr.msk.f32.mxu1 %vm8984_vm0, %v10448_v8 }
 0x5cb   :  { %8246 = vmatprep.subr.bf16.mxu1 %v10450_v47 }
 0x5ce   :  { %8248 = vmatpush3.bf16.msra.mxu1 %v9228_v61 }
 0x5cf   :  { %8249 = vmatprep.subr.bf16.mxu1 %v10450_v47 }
 0x5d2   :  { %8251 = vmatpush3.bf16.msra.mxu1 %v9248_v6 }
 0x5d3   :  { %8252 = vmatprep.subr.bf16.mxu1 %v10450_v47 }
 0x5d6   :  { %8254 = vmatpush3.bf16.msra.mxu1 %v9268_v16 }
 0x5d7   :  { %8267 = vmatprep.subr.bf16.mxu1 %v10450_v47 }
 0x619   :  { %v1946_v56 = vpop.f32.mrb[22].mxu0  ;;  %v2022_v52 = vpop.f32.mrb[22].mxu1 }
 0x61a   :  { %v1947_v34 = vadd.f32 %v9461_v11, %v1946_v56  ;;  %v2023_v58 = vadd.f32 %v9466_v14, %v2022_v52  ;;  %v7005_v59 = vpop.f32.mrb[23].mxu0  ;;  %v7024_v49 = vpop.f32.mrb[23].mxu1 }
 0x61c   :  { %v5876_v62 = vmul.f32 -1.442695, %v1947_v34  ;;  %v5878_v29 = vmul.f32 -1.442695, %v2023_v58 }
 0x61e   :  { %8789 = vpow2.f32 %v5876_v62 }
 0x61f   :  { %8791 = vpow2.f32 %v5878_v29 }
 0x628   :  { %v8790_v60 = vpop.eup %8789 }
 0x629   :  { %v8792_v63 = vpop.eup %8791  ;;  %v1953_v1 = vadd.f32 1.0, %v8790_v60  ;;  %v2098_v5 = vpop.f32.mrb[24].mxu0 }
 0x62a   :  { %v2169_v26 = vpop.f32.mrb[24].mxu1  ;;  %v2029_v21 = vadd.f32 1.0, %v8792_v63  ;;  %v2099_v28 = vadd.f32 %v9473_v41, %v2098_v5  ;;  %v7043_v0 = vpop.f32.mrb[25].mxu0 }
 0x62b   :  { %v2170_v40 = vadd.f32 %v9478_v42, %v2169_v26  ;;  %v7062_v11 = vpop.f32.mrb[25].mxu1  ;;  %8793 = vrcp.f32 %v1953_v1  ;;  %v9793_v26 = vld [vmem:[%s10442_s2 + $0x2] ss:$0 sm:$0xff] }
 0x62c   :  { %8795 = vrcp.f32 %v2029_v21 }
 0x62d   :  { %v5881_v14 = vmul.f32 -1.442695, %v2170_v40  ;;  %8797 = vtanh.f32 %v2099_v28 }
 0x62f   :  { %8799 = vpow2.f32 %v5881_v14 }
 0x635   :  { %v8794_v36 = vpop.eup %8793 }
 0x636   :  { %v8796_v37 = vpop.eup %8795 }
 0x637   :  { %v8798_v27 = vpop.eup %8797  ;;  %v2179_v56 = vmul.f32 %v8796_v37, %v9616_v48 }
 0x638   :  { %v2180_v34 = vmul.f32 %v8798_v27, %v8794_v36 }
 0x639   :  { %v8800_v52 = vpop.eup %8799 }
 0x63a   :  { %v2176_v58 = vadd.f32 1.0, %v8800_v52  ;;  %v9745_v59 = vadd.f32 %v2180_v34, %v2179_v56  ;;  %v9804_v56 = vld [vmem:[%s10442_s2 + $0x1] ss:$0 sm:$0xff] }
 0x63c   :  { %8801 = vrcp.f32 %v2176_v58 }
 0x63d   :  { %8803 = vtanh.f32 %v9745_v59 }
 0x646   :  { %v8802_v41 = vpop.eup %8801 }
 0x647   :  { %v8804_v42 = vpop.eup %8803 }
 0x648   :  { %v2183_v49 = vmul.f32 %v8804_v42, %v8802_v41 }
 0x64a   :  { %2573 = vrot.lane.b32.xlu1 %v2183_v49, %s8986_s15  ;;  %7072 = vmatmul.mubr.msk.f32.vlgmr.msra.gmra.mrb[26].mxu0 %vm112_vm1, %v2183_v49  ;;  %v9810_v49 = vld [vmem:[%s10442_s2 + $0x3] ss:$0 sm:$0xff] }
 0x64b   :  { %8209 = vmatpush3.bf16.msra.mxu0 %v9043_v9  ;;  %7109 = vmatprep.mubr.msk.f32.mxu0 %vm8984_vm0, %v10448_v8 }
 0x64c   :  { %8210 = vmatprep.subr.bf16.mxu0 %v10450_v47 }
 0x64f   :  { %8212 = vmatpush3.bf16.msra.mxu0 %v9056_v13 }
 0x650   :  { %8213 = vmatprep.subr.bf16.mxu0 %v10450_v47 }
 0x653   :  { %8215 = vmatpush3.bf16.msra.mxu0 %v9076_v19 }
 0x654   :  { %8216 = vmatprep.subr.bf16.mxu0 %v10450_v47 }
 0x657   :  { %8218 = vmatpush3.bf16.msra.mxu0 %v9096_v25 }
 0x658   :  { %8231 = vmatprep.subr.bf16.mxu0 %v10450_v47 }
 0x65a   :  { %7110 = vmatmul.mubr.msk.f32.vlgmr.msra.gmra.mrb[28].mxu0 %vm120_vm2, %v9714_v20 }
 0x65b   :  { %8233 = vmatpush3.bf16.msra.mxu0 %v9120_v33  ;;  %7147 = vmatprep.mubr.msk.f32.mxu0 %vm8984_vm0, %v10448_v8 }
 0x65c   :  { %8234 = vmatprep.subr.bf16.mxu0 %v10450_v47 }
 0x65f   :  { %8236 = vmatpush3.bf16.msra.mxu0 %v9142_v39 }
 0x660   :  { %8237 = vmatprep.subr.bf16.mxu0 %v10450_v47 }
 0x663   :  { %8239 = vmatpush3.bf16.msra.mxu0 %v9166_v45 }
 0x664   :  { %8240 = vmatprep.subr.bf16.mxu0 %v10450_v47 }
 0x667   :  { %8242 = vmatpush3.bf16.msra.mxu0 %v9186_v51 }
 0x668   :  { %8255 = vmatprep.subr.bf16.mxu0 %v10450_v47 }
 0x66a   :  { %7148 = vmatmul.mubr.msk.f32.vlgmr.msra.gmra.mrb[30].mxu0 %vm120_vm2, %v9714_v20  ;;  %v9787_v20 = vld [vmem:[%s10442_s2] ss:$0 sm:$0xff] }
 0x66b   :  { %8257 = vmatpush3.bf16.msra.mxu0 %v9213_v57  ;;  %7185 = vmatprep.mubr.msk.f32.mxu0 %vm8984_vm0, %v10448_v8 }
 0x66c   :  { %8258 = vmatprep.subr.bf16.mxu0 %v10450_v47 }
 0x66f   :  { %8260 = vmatpush3.bf16.msra.mxu0 %v9239_v2 }
 0x670   :  { %8261 = vmatprep.subr.bf16.mxu0 %v10450_v47 }
 0x673   :  { %8263 = vmatpush3.bf16.msra.mxu0 %v9252_v7 }
 0x674   :  { %8264 = vmatprep.subr.bf16.mxu0 %v10450_v47 }
 0x677   :  { %8266 = vmatpush3.bf16.msra.mxu0 %v9272_v17 }
 0x678   :  { %8279 = vmatprep.subr.bf16.mxu0 %v10450_v47 }
 0x68c   :  { %v2335_v48 = vpop.f32.mrb[26].mxu1 }
 0x68d   :  { %v2336_v62 = vadd.f32 %v9787_v20, %v2335_v48  ;;  %v7092_v29 = vpop.f32.mrb[27].mxu1 }
 0x68f   :  { %v5886_v60 = vmul.f32 -1.442695, %v2336_v62 }
 0x691   :  { %8805 = vpow2.f32 %v5886_v60 }
 0x69b   :  { %v8806_v63 = vpop.eup %8805 }
 0x69c   :  { %v2342_v1 = vadd.f32 1.0, %v8806_v63  ;;  %v2487_v5 = vpop.f32.mrb[28].mxu1 }
 0x69d   :  { %v2488_v21 = vadd.f32 %v9793_v26, %v2487_v5  ;;  %v7130_v28 = vpop.f32.mrb[29].mxu1 }
 0x69e   :  { %8807 = vrcp.f32 %v2342_v1 }
 0x69f   :  { %8809 = vtanh.f32 %v2488_v21 }
 0x6a8   :  { %v8808_v40 = vpop.eup %8807 }
 0x6a9   :  { %v8810_v0 = vpop.eup %8809 }
 0x6aa   :  { %v2569_v11 = vmul.f32 %v8810_v0, %v8808_v40 }
 0x71d   :  { %v2253_v14 = vpop.f32.mrb[26].mxu0 }
 0x71e   :  { %v2254_v36 = vadd.f32 %v9526_v30, %v2253_v14  ;;  %v7073_v37 = vpop.f32.mrb[27].mxu0  ;;  %v2574_v14 = vpop.permute.xlu1 %2573 }
 0x720   :  { %5883 = vst.msk [vmem:[%s10445_s5 + $0x4] sm:$0x3] %vm857_vm3, %v2254_v36 }
 0x72d   :  { %v2411_v27 = vpop.f32.mrb[28].mxu0 }
 0x72e   :  { %v2412_v52 = vadd.f32 %v9804_v56, %v2411_v27  ;;  %v7111_v34 = vpop.f32.mrb[29].mxu0 }
 0x72f   :  { %v9892_v34 = vld [vmem:[%s10442_s2 + $0x4] ss:$0 sm:$0xff] }
 0x730   :  { %v5888_v58 = vmul.f32 -1.442695, %v2412_v52 }
 0x732   :  { %8811 = vpow2.f32 %v5888_v58 }
 0x73c   :  { %v8812_v41 = vpop.eup %8811 }
 0x73d   :  { %v2418_v42 = vadd.f32 1.0, %v8812_v41  ;;  %v2558_v30 = vpop.f32.mrb[30].mxu0  ;;  %v9898_v41 = vld [vmem:[%s10442_s2 + $0x5] ss:$0 sm:$0xff] }
 0x73e   :  { %v2559_v48 = vadd.f32 %v9810_v49, %v2558_v30  ;;  %v7149_v62 = vpop.f32.mrb[31].mxu0 }
 0x73f   :  { %8813 = vrcp.f32 %v2418_v42 }
 0x740   :  { %v5891_v29 = vmul.f32 -1.442695, %v2559_v48 }
 0x742   :  { %8815 = vpow2.f32 %v5891_v29 }
 0x749   :  { %v8814_v60 = vpop.eup %8813 }
 0x74a   :  { %v2568_v63 = vmul.f32 %v8814_v60, %v9665_v15  ;;  %v5901_v15 = vld [vmem:[%s10441_s0 + $0x8] sm:$0x3] }
 0x74c   :  { %v8816_v1 = vpop.eup %8815  ;;  %v9814_v5 = vadd.f32 %v2569_v11, %v2568_v63 }
 0x74d   :  { %v2565_v21 = vadd.f32 1.0, %v8816_v1 }
 0x74e   :  { %8817 = vtanh.f32 %v9814_v5 }
 0x74f   :  { %8819 = vrcp.f32 %v2565_v21 }
 0x758   :  { %v8818_v28 = vpop.eup %8817 }
 0x759   :  { %v8820_v40 = vpop.eup %8819 }
 0x75a   :  { %v2572_v0 = vmul.f32 %v8820_v40, %v8818_v28 }
 0x75c   :  { %2962 = vrot.lane.b32.xlu0 %v2572_v0, %s8986_s15  ;;  %v2576_v36 = vsel %vm112_vm1, %v2572_v0, %v2574_v14  ;;  %v9904_v0 = vld [vmem:[%s10442_s2 + $0x6] ss:$0 sm:$0xff] }
 0x75d   :  { %7167 = vmatmul.mubr.msk.f32.vlgmr.msra.gmra.mrb[30].mxu1 %vm120_vm2, %v2576_v36  ;;  %7186 = vmatmul.mubr.msk.f32.vlgmr.msra.gmra.mrb[32].mxu0 %vm120_vm2, %v2576_v36 }
 0x75e   :  { %8269 = vmatpush3.bf16.msra.mxu1 %v9318_v22  ;;  %8281 = vmatpush3.bf16.msra.mxu0 %v9320_v23 }
 0x75f   :  { %8270 = vmatprep.subr.bf16.mxu1 %v10450_v47  ;;  %8282 = vmatprep.subr.bf16.mxu0 %v10450_v47 }
 0x760   :  { %7204 = vmatprep.mubr.msk.f32.mxu1 %vm8984_vm0, %v10448_v8  ;;  %7223 = vmatprep.mubr.msk.f32.mxu0 %vm8984_vm0, %v10448_v8 }
 0x762   :  { %8272 = vmatpush3.bf16.msra.mxu1 %v9340_v31  ;;  %8284 = vmatpush3.bf16.msra.mxu0 %v9342_v35 }
 0x763   :  { %8273 = vmatprep.subr.bf16.mxu1 %v10450_v47  ;;  %8285 = vmatprep.subr.bf16.mxu0 %v10450_v47 }
 0x766   :  { %8275 = vmatpush3.bf16.msra.mxu1 %v9364_v43  ;;  %8287 = vmatpush3.bf16.msra.mxu0 %v9366_v46 }
 0x767   :  { %8276 = vmatprep.subr.bf16.mxu1 %v10450_v47  ;;  %8288 = vmatprep.subr.bf16.mxu0 %v10450_v47 }
 0x76a   :  { %8278 = vmatpush3.bf16.msra.mxu1 %v9384_v53  ;;  %8290 = vmatpush3.bf16.msra.mxu0 %v9386_v54 }
 0x76b   :  { %8297 = vmatprep.subr.bf16.mxu0 %v10450_v47  ;;  %8291 = vmatprep.subr.bf16.mxu1 %v10450_v47 }
 0x76d   :  { %7205 = vmatmul.mubr.msk.f32.vlgmr.msra.gmra.mrb[32].mxu1 %vm120_vm2, %v2576_v36  ;;  %7224 = vmatmul.mubr.msk.f32.vlgmr.msra.gmra.mrb[34].mxu0 %vm120_vm2, %v2576_v36  ;;  %v9910_v36 = vld [vmem:[%s10442_s2 + $0x7] ss:$0 sm:$0xff] }
 0x76e   :  { %8299 = vmatpush3.bf16.msra.mxu0 %v9028_v4  ;;  %7253 = vmatprep.mubr.msk.f32.mxu0 %vm8984_vm0, %v10448_v8 }
 0x76f   :  { %8300 = vmatprep.subr.bf16.mxu0 %v10450_v47  ;;  %8293 = vmatpush3.bf16.msra.mxu1 %v9429_v3 }
 0x770   :  { %8294 = vmatprep.subr.bf16.mxu1 %v10450_v47  ;;  %7234 = vmatprep.mubr.msk.f32.mxu1 %vm8984_vm0, %v10448_v8 }
 0x772   :  { %8302 = vmatpush3.bf16.msra.mxu0 %v9052_v12 }
 0x773   :  { %8303 = vmatprep.subr.bf16.mxu0 %v10450_v47  ;;  %8296 = vmatpush3.bf16.msra.mxu1 %v9437_v10 }
 0x774   :  { %8309 = vmatprep.subr.bf16.mxu1 %v10450_v47 }
 0x776   :  { %8305 = vmatpush3.bf16.msra.mxu0 %v9072_v18 }
 0x777   :  { %8306 = vmatprep.subr.bf16.mxu0 %v10450_v47 }
 0x77a   :  { %8308 = vmatpush3.bf16.msra.mxu0 %v9092_v24 }
 0x77b   :  { %8321 = vmatprep.subr.bf16.mxu0 %v10450_v47 }
 0x7ce   :  { %v2963_v11 = vpop.permute.xlu0 %2962 }
 0x7cf   :  { %v9863_v37 = vsel %vm112_vm1, %v5901_v15, %v2963_v11 }
 0x7d0   :  { %7254 = vmatmul.mubr.msk.f32.vlgmr.msra.gmra.mrb[36].mxu0 %vm120_vm2, %v9863_v37 }
 0x7d1   :  { %8323 = vmatpush3.bf16.msra.mxu0 %v9116_v32  ;;  %7291 = vmatprep.mubr.msk.f32.mxu0 %vm8984_vm0, %v10448_v8 }
 0x7d2   :  { %8324 = vmatprep.subr.bf16.mxu0 %v10450_v47 }
 0x7d5   :  { %8326 = vmatpush3.bf16.msra.mxu0 %v9138_v38 }
 0x7d6   :  { %8327 = vmatprep.subr.bf16.mxu0 %v10450_v47 }
 0x7d9   :  { %8329 = vmatpush3.bf16.msra.mxu0 %v9162_v44 }
 0x7da   :  { %8330 = vmatprep.subr.bf16.mxu0 %v10450_v47 }
 0x7dd   :  { %8332 = vmatpush3.bf16.msra.mxu0 %v9182_v50 }
 0x7de   :  { %8345 = vmatprep.subr.bf16.mxu0 %v10450_v47 }
 0x7e0   :  { %7292 = vmatmul.mubr.msk.f32.vlgmr.msra.gmra.mrb[38].mxu0 %vm120_vm2, %v9863_v37 }
 0x7e1   :  { %8347 = vmatpush3.bf16.msra.mxu0 %v9208_v55  ;;  %7329 = vmatprep.mubr.msk.f32.mxu0 %vm8984_vm0, %v10448_v8 }
 0x7e2   :  { %8348 = vmatprep.subr.bf16.mxu0 %v10450_v47 }
 0x7e5   :  { %8350 = vmatpush3.bf16.msra.mxu0 %v9228_v61 }
 0x7e6   :  { %8351 = vmatprep.subr.bf16.mxu0 %v10450_v47 }
 0x7e9   :  { %8353 = vmatpush3.bf16.msra.mxu0 %v9248_v6 }
 0x7ea   :  { %8354 = vmatprep.subr.bf16.mxu0 %v10450_v47 }
 0x7ed   :  { %8356 = vmatpush3.bf16.msra.mxu0 %v9268_v16 }
 0x7ee   :  { %8369 = vmatprep.subr.bf16.mxu0 %v10450_v47 }
 0x830   :  { %v2646_v27 = vpop.f32.mrb[30].mxu1  ;;  %v2722_v52 = vpop.f32.mrb[32].mxu0 }
 0x831   :  { %v2647_v58 = vadd.f32 %v9892_v34, %v2646_v27  ;;  %v2723_v42 = vadd.f32 %v9898_v41, %v2722_v52  ;;  %v7168_v30 = vpop.f32.mrb[31].mxu1  ;;  %v7187_v48 = vpop.f32.mrb[33].mxu0 }
 0x833   :  { %v5893_v62 = vmul.f32 -1.442695, %v2647_v58  ;;  %v5895_v29 = vmul.f32 -1.442695, %v2723_v42 }
 0x835   :  { %8821 = vpow2.f32 %v5893_v62 }
 0x836   :  { %8823 = vpow2.f32 %v5895_v29 }
 0x83f   :  { %v8822_v60 = vpop.eup %8821 }
 0x840   :  { %v8824_v63 = vpop.eup %8823  ;;  %v2653_v1 = vadd.f32 1.0, %v8822_v60  ;;  %v2798_v21 = vpop.f32.mrb[32].mxu1 }
 0x841   :  { %v2869_v28 = vpop.f32.mrb[34].mxu0  ;;  %v2729_v40 = vadd.f32 1.0, %v8824_v63  ;;  %v2799_v14 = vadd.f32 %v9904_v0, %v2798_v21  ;;  %v7206_v11 = vpop.f32.mrb[33].mxu1 }
 0x842   :  { %v2870_v15 = vadd.f32 %v9910_v36, %v2869_v28  ;;  %v7225_v27 = vpop.f32.mrb[35].mxu0  ;;  %8825 = vrcp.f32 %v2653_v1 }
 0x843   :  { %8827 = vrcp.f32 %v2729_v40 }
 0x844   :  { %v5898_v52 = vmul.f32 -1.442695, %v2870_v15  ;;  %8829 = vtanh.f32 %v2799_v14 }
 0x846   :  { %8831 = vpow2.f32 %v5898_v52 }
 0x84c   :  { %v8826_v58 = vpop.eup %8825 }
 0x84d   :  { %v8828_v42 = vpop.eup %8827 }
 0x84e   :  { %v8830_v30 = vpop.eup %8829  ;;  %v2879_v48 = vmul.f32 %v8828_v42, %v9745_v59 }
 0x84f   :  { %v2880_v29 = vmul.f32 %v8830_v30, %v8826_v58 }
 0x850   :  { %v8832_v62 = vpop.eup %8831 }
 0x851   :  { %v2876_v60 = vadd.f32 1.0, %v8832_v62  ;;  %v9914_v63 = vadd.f32 %v2880_v29, %v2879_v48  ;;  %v9958_v29 = vld [vmem:[%s10444_s4] ss:$0 sm:$0xff] }
 0x853   :  { %8833 = vrcp.f32 %v2876_v60 }
 0x854   :  { %8835 = vtanh.f32 %v9914_v63 }
 0x85d   :  { %v8834_v21 = vpop.eup %8833 }
 0x85e   :  { %v8836_v28 = vpop.eup %8835 }
 0x85f   :  { %v2883_v1 = vmul.f32 %v8836_v28, %v8834_v21 }
 0x861   :  { %3273 = vrot.lane.b32.xlu1 %v2883_v1, %s8986_s15  ;;  %7235 = vmatmul.mubr.msk.f32.vlgmr.msra.gmra.mrb[34].mxu1 %vm112_vm1, %v2883_v1 }
 0x862   :  { %8311 = vmatpush3.bf16.msra.mxu1 %v9043_v9  ;;  %7272 = vmatprep.mubr.msk.f32.mxu1 %vm8984_vm0, %v10448_v8 }
 0x863   :  { %8312 = vmatprep.subr.bf16.mxu1 %v10450_v47 }
 0x866   :  { %8314 = vmatpush3.bf16.msra.mxu1 %v9056_v13 }
 0x867   :  { %8315 = vmatprep.subr.bf16.mxu1 %v10450_v47 }
 0x86a   :  { %8317 = vmatpush3.bf16.msra.mxu1 %v9076_v19 }
 0x86b   :  { %8318 = vmatprep.subr.bf16.mxu1 %v10450_v47 }
 0x86e   :  { %8320 = vmatpush3.bf16.msra.mxu1 %v9096_v25 }
 0x86f   :  { %8333 = vmatprep.subr.bf16.mxu1 %v10450_v47 }
 0x871   :  { %7273 = vmatmul.mubr.msk.f32.vlgmr.msra.gmra.mrb[36].mxu1 %vm120_vm2, %v9863_v37 }
 0x872   :  { %8335 = vmatpush3.bf16.msra.mxu1 %v9120_v33  ;;  %7310 = vmatprep.mubr.msk.f32.mxu1 %vm8984_vm0, %v10448_v8 }
 0x873   :  { %8336 = vmatprep.subr.bf16.mxu1 %v10450_v47 }
 0x876   :  { %8338 = vmatpush3.bf16.msra.mxu1 %v9142_v39 }
 0x877   :  { %8339 = vmatprep.subr.bf16.mxu1 %v10450_v47 }
 0x87a   :  { %8341 = vmatpush3.bf16.msra.mxu1 %v9166_v45 }
 0x87b   :  { %8342 = vmatprep.subr.bf16.mxu1 %v10450_v47 }
 0x87e   :  { %8344 = vmatpush3.bf16.msra.mxu1 %v9186_v51 }
 0x87f   :  { %8357 = vmatprep.subr.bf16.mxu1 %v10450_v47 }
 0x881   :  { %7311 = vmatmul.mubr.msk.f32.vlgmr.msra.gmra.mrb[38].mxu1 %vm120_vm2, %v9863_v37 }
 0x882   :  { %8359 = vmatpush3.bf16.msra.mxu1 %v9213_v57  ;;  %7348 = vmatprep.mubr.msk.f32.mxu1 %vm8984_vm0, %v10448_v8 }
 0x883   :  { %8360 = vmatprep.subr.bf16.mxu1 %v10450_v47 }
 0x886   :  { %8362 = vmatpush3.bf16.msra.mxu1 %v9239_v2 }
 0x887   :  { %8363 = vmatprep.subr.bf16.mxu1 %v10450_v47 }
 0x88a   :  { %8365 = vmatpush3.bf16.msra.mxu1 %v9252_v7 }
 0x88b   :  { %8366 = vmatprep.subr.bf16.mxu1 %v10450_v47 }
 0x88e   :  { %8368 = vmatpush3.bf16.msra.mxu1 %v9272_v17 }
 0x88f   :  { %8381 = vmatprep.subr.bf16.mxu1 %v10450_v47 }
 0x8a3   :  { %v3035_v59 = vpop.f32.mrb[36].mxu0 }
 0x8a4   :  { %v3036_v37 = vadd.f32 %v9787_v20, %v3035_v59  ;;  %v7255_v40 = vpop.f32.mrb[37].mxu0 }
 0x8a6   :  { %v5903_v14 = vmul.f32 -1.442695, %v3036_v37 }
 0x8a8   :  { %8837 = vpow2.f32 %v5903_v14 }
 0x8b2   :  { %v8838_v15 = vpop.eup %8837 }
 0x8b3   :  { %v3042_v11 = vadd.f32 1.0, %v8838_v15  ;;  %v3187_v27 = vpop.f32.mrb[38].mxu0 }
 0x8b4   :  { %v3188_v52 = vadd.f32 %v9793_v26, %v3187_v27  ;;  %v7293_v58 = vpop.f32.mrb[39].mxu0 }
 0x8b5   :  { %8839 = vrcp.f32 %v3042_v11 }
 0x8b6   :  { %8841 = vtanh.f32 %v3188_v52 }
 0x8bf   :  { %v8840_v42 = vpop.eup %8839 }
 0x8c0   :  { %v8842_v30 = vpop.eup %8841 }
 0x8c1   :  { %v3269_v48 = vmul.f32 %v8842_v30, %v8840_v42 }
 0x934   :  { %v2953_v62 = vpop.f32.mrb[34].mxu1 }
 0x935   :  { %v2954_v60 = vadd.f32 %v9958_v29, %v2953_v62  ;;  %v7236_v21 = vpop.f32.mrb[35].mxu1 }
 0x937   :  { %5900 = vst.msk [vmem:[%s10445_s5 + $0x6] sm:$0x3] %vm857_vm3, %v2954_v60 }
 0x944   :  { %v3111_v28 = vpop.f32.mrb[36].mxu1 }
 0x945   :  { %v3112_v1 = vadd.f32 %v9804_v56, %v3111_v28  ;;  %v7274_v59 = vpop.f32.mrb[37].mxu1 }
 0x946   :  { %v3274_v59 = vpop.permute.xlu1 %3273 }
 0x947   :  { %v5905_v37 = vmul.f32 -1.442695, %v3112_v1 }
 0x949   :  { %8843 = vpow2.f32 %v5905_v37 }
 0x953   :  { %v8844_v40 = vpop.eup %8843 }
 0x954   :  { %v3118_v14 = vadd.f32 1.0, %v8844_v40  ;;  %v3258_v15 = vpop.f32.mrb[38].mxu1 }
 0x955   :  { %v3259_v11 = vadd.f32 %v9810_v49, %v3258_v15  ;;  %v7312_v27 = vpop.f32.mrb[39].mxu1 }
 0x956   :  { %8845 = vrcp.f32 %v3118_v14 }
 0x957   :  { %v5908_v52 = vmul.f32 -1.442695, %v3259_v11 }
 0x959   :  { %8847 = vpow2.f32 %v5908_v52 }
 0x960   :  { %v8846_v58 = vpop.eup %8845 }
 0x961   :  { %v3268_v42 = vmul.f32 %v8846_v58, %v9814_v5  ;;  %v5918_v5 = vld [vmem:[%s10441_s0 + $0xa] sm:$0x3] }
 0x963   :  { %v8848_v30 = vpop.eup %8847  ;;  %v9968_v62 = vadd.f32 %v3269_v48, %v3268_v42 }
 0x964   :  { %v3265_v60 = vadd.f32 1.0, %v8848_v30 }
 0x965   :  { %8849 = vtanh.f32 %v9968_v62 }
 0x966   :  { %8851 = vrcp.f32 %v3265_v60 }
 0x96f   :  { %v8850_v21 = vpop.eup %8849 }
 0x970   :  { %v8852_v28 = vpop.eup %8851 }
 0x971   :  { %v3272_v1 = vmul.f32 %v8852_v28, %v8850_v21 }
 0x973   :  { %3662 = vrot.lane.b32.xlu0 %v3272_v1, %s8986_s15  ;;  %v3276_v37 = vsel %vm112_vm1, %v3272_v1, %v3274_v59 }
 0x974   :  { %7330 = vmatmul.mubr.msk.f32.vlgmr.msra.gmra.mrb[40].mxu0 %vm120_vm2, %v3276_v37  ;;  %7349 = vmatmul.mubr.msk.f32.vlgmr.msra.gmra.mrb[40].mxu1 %vm120_vm2, %v3276_v37 }
 0x975   :  { %8371 = vmatpush3.bf16.msra.mxu0 %v9318_v22  ;;  %8383 = vmatpush3.bf16.msra.mxu1 %v9320_v23 }
 0x976   :  { %8372 = vmatprep.subr.bf16.mxu0 %v10450_v47  ;;  %8384 = vmatprep.subr.bf16.mxu1 %v10450_v47 }
 0x977   :  { %7367 = vmatprep.mubr.msk.f32.mxu0 %vm8984_vm0, %v10448_v8  ;;  %7386 = vmatprep.mubr.msk.f32.mxu1 %vm8984_vm0, %v10448_v8 }
 0x979   :  { %8374 = vmatpush3.bf16.msra.mxu0 %v9340_v31  ;;  %8386 = vmatpush3.bf16.msra.mxu1 %v9342_v35 }
 0x97a   :  { %8375 = vmatprep.subr.bf16.mxu0 %v10450_v47  ;;  %8387 = vmatprep.subr.bf16.mxu1 %v10450_v47 }
 0x97d   :  { %8377 = vmatpush3.bf16.msra.mxu0 %v9364_v43  ;;  %8389 = vmatpush3.bf16.msra.mxu1 %v9366_v46 }
 0x97e   :  { %8378 = vmatprep.subr.bf16.mxu0 %v10450_v47  ;;  %8390 = vmatprep.subr.bf16.mxu1 %v10450_v47 }
 0x981   :  { %8380 = vmatpush3.bf16.msra.mxu0 %v9384_v53  ;;  %8392 = vmatpush3.bf16.msra.mxu1 %v9386_v54 }
 0x982   :  { %8399 = vmatprep.subr.bf16.mxu1 %v10450_v47  ;;  %8393 = vmatprep.subr.bf16.mxu0 %v10450_v47 }
 0x984   :  { %7368 = vmatmul.mubr.msk.f32.vlgmr.msra.gmra.mrb[42].mxu0 %vm120_vm2, %v3276_v37  ;;  %7387 = vmatmul.mubr.msk.f32.vlgmr.msra.gmra.mrb[42].mxu1 %vm120_vm2, %v3276_v37 }
 0x985   :  { %8401 = vmatpush3.bf16.msra.mxu1 %v9028_v4  ;;  %7416 = vmatprep.mubr.msk.f32.mxu1 %vm8984_vm0, %v10448_v8 }
 0x986   :  { %8402 = vmatprep.subr.bf16.mxu1 %v10450_v47  ;;  %8395 = vmatpush3.bf16.msra.mxu0 %v9429_v3 }
 0x987   :  { %8396 = vmatprep.subr.bf16.mxu0 %v10450_v47  ;;  %7397 = vmatprep.mubr.msk.f32.mxu0 %vm8984_vm0, %v10448_v8 }
 0x989   :  { %8404 = vmatpush3.bf16.msra.mxu1 %v9052_v12 }
 0x98a   :  { %8405 = vmatprep.subr.bf16.mxu1 %v10450_v47  ;;  %8398 = vmatpush3.bf16.msra.mxu0 %v9437_v10 }
 0x98b   :  { %8411 = vmatprep.subr.bf16.mxu0 %v10450_v47 }
 0x98d   :  { %8407 = vmatpush3.bf16.msra.mxu1 %v9072_v18 }
 0x98e   :  { %8408 = vmatprep.subr.bf16.mxu1 %v10450_v47 }
 0x991   :  { %8410 = vmatpush3.bf16.msra.mxu1 %v9092_v24 }
 0x992   :  { %8423 = vmatprep.subr.bf16.mxu1 %v10450_v47 }
 0x9e5   :  { %v3663_v48 = vpop.permute.xlu0 %3662 }
 0x9e6   :  { %v10017_v40 = vsel %vm112_vm1, %v5918_v5, %v3663_v48 }
 0x9e7   :  { %7417 = vmatmul.mubr.msk.f32.vlgmr.msra.gmra.mrb[44].mxu1 %vm120_vm2, %v10017_v40 }
 0x9e8   :  { %8425 = vmatpush3.bf16.msra.mxu1 %v9116_v32  ;;  %7454 = vmatprep.mubr.msk.f32.mxu1 %vm8984_vm0, %v10448_v8 }
 0x9e9   :  { %8426 = vmatprep.subr.bf16.mxu1 %v10450_v47 }
 0x9ec   :  { %8428 = vmatpush3.bf16.msra.mxu1 %v9138_v38 }
 0x9ed   :  { %8429 = vmatprep.subr.bf16.mxu1 %v10450_v47 }
 0x9f0   :  { %8431 = vmatpush3.bf16.msra.mxu1 %v9162_v44 }
 0x9f1   :  { %8432 = vmatprep.subr.bf16.mxu1 %v10450_v47 }
 0x9f4   :  { %8434 = vmatpush3.bf16.msra.mxu1 %v9182_v50 }
 0x9f5   :  { %8447 = vmatprep.subr.bf16.mxu1 %v10450_v47 }
 0x9f7   :  { %7455 = vmatmul.mubr.msk.f32.vlgmr.msra.gmra.mrb[46].mxu1 %vm120_vm2, %v10017_v40 }
 0x9f8   :  { %8449 = vmatpush3.bf16.msra.mxu1 %v9208_v55  ;;  %7492 = vmatprep.mubr.msk.f32.mxu1 %vm8984_vm0, %v10448_v8 }
 0x9f9   :  { %8450 = vmatprep.subr.bf16.mxu1 %v10450_v47 }
 0x9fc   :  { %8452 = vmatpush3.bf16.msra.mxu1 %v9228_v61 }
 0x9fd   :  { %8453 = vmatprep.subr.bf16.mxu1 %v10450_v47 }
 0xa00   :  { %8455 = vmatpush3.bf16.msra.mxu1 %v9248_v6 }
 0xa01   :  { %8456 = vmatprep.subr.bf16.mxu1 %v10450_v47 }
 0xa04   :  { %8458 = vmatpush3.bf16.msra.mxu1 %v9268_v16 }
 0xa05   :  { %8471 = vmatprep.subr.bf16.mxu1 %v10450_v47 }
 0xa47   :  { %v3346_v14 = vpop.f32.mrb[40].mxu0  ;;  %v3422_v15 = vpop.f32.mrb[40].mxu1 }
 0xa48   :  { %v3347_v11 = vadd.f32 %v9892_v34, %v3346_v14  ;;  %v3423_v27 = vadd.f32 %v9898_v41, %v3422_v15  ;;  %v7331_v52 = vpop.f32.mrb[41].mxu0  ;;  %v7350_v58 = vpop.f32.mrb[41].mxu1 }
 0xa4a   :  { %v5910_v42 = vmul.f32 -1.442695, %v3347_v11  ;;  %v5912_v30 = vmul.f32 -1.442695, %v3423_v27 }
 0xa4c   :  { %8853 = vpow2.f32 %v5910_v42 }
 0xa4d   :  { %8855 = vpow2.f32 %v5912_v30 }
 0xa56   :  { %v8854_v60 = vpop.eup %8853 }
 0xa57   :  { %v8856_v21 = vpop.eup %8855  ;;  %v3353_v28 = vadd.f32 1.0, %v8854_v60  ;;  %v3498_v1 = vpop.f32.mrb[42].mxu0 }
 0xa58   :  { %v3569_v59 = vpop.f32.mrb[42].mxu1  ;;  %v3429_v37 = vadd.f32 1.0, %v8856_v21  ;;  %v3499_v5 = vadd.f32 %v9904_v0, %v3498_v1  ;;  %v7369_v8 = vpop.f32.mrb[43].mxu0 }
 0xa59   :  { %v3570_v48 = vadd.f32 %v9910_v36, %v3569_v59  ;;  %v7388_v14 = vpop.f32.mrb[43].mxu1  ;;  %8857 = vrcp.f32 %v3353_v28  ;;  %v10451_v59 = vmov 0.0  }
 0xa5a   :  { %8859 = vrcp.f32 %v3429_v37 }
 0xa5b   :  { %v5915_v15 = vmul.f32 -1.442695, %v3570_v48  ;;  %8861 = vtanh.f32 %v3499_v5 }
 0xa5d   :  { %8863 = vpow2.f32 %v5915_v15 }
 0xa63   :  { %v8858_v11 = vpop.eup %8857 }
 0xa64   :  { %v8860_v27 = vpop.eup %8859 }
 0xa65   :  { %v8862_v52 = vpop.eup %8861  ;;  %v3579_v58 = vmul.f32 %v8860_v27, %v9914_v63 }
 0xa66   :  { %v3580_v30 = vmul.f32 %v8862_v52, %v8858_v11 }
 0xa67   :  { %v8864_v42 = vpop.eup %8863 }
 0xa68   :  { %v3576_v60 = vadd.f32 1.0, %v8864_v42  ;;  %v10048_v21 = vadd.f32 %v3580_v30, %v3579_v58 }
 0xa6a   :  { %8865 = vrcp.f32 %v3576_v60 }
 0xa6b   :  { %8867 = vtanh.f32 %v10048_v21 }
 0xa74   :  { %v8866_v8 = vpop.eup %8865 }
 0xa75   :  { %v8868_v1 = vpop.eup %8867 }
 0xa76   :  { %v3583_v28 = vmul.f32 %v8868_v1, %v8866_v8 }
 0xa78   :  { %3973 = vrot.lane.b32.xlu1 %v3583_v28, %s8986_s15  ;;  %7398 = vmatmul.mubr.msk.f32.vlgmr.msra.gmra.mrb[44].mxu0 %vm112_vm1, %v3583_v28 }
 0xa79   :  { %8413 = vmatpush3.bf16.msra.mxu0 %v9043_v9  ;;  %7435 = vmatprep.mubr.msk.f32.mxu0 %vm8984_vm0, %v10451_v59 }
 0xa7a   :  { %8414 = vmatprep.subr.bf16.mxu0 %v10450_v47 }
 0xa7d   :  { %8416 = vmatpush3.bf16.msra.mxu0 %v9056_v13 }
 0xa7e   :  { %8417 = vmatprep.subr.bf16.mxu0 %v10450_v47 }
 0xa81   :  { %8419 = vmatpush3.bf16.msra.mxu0 %v9076_v19 }
 0xa82   :  { %8420 = vmatprep.subr.bf16.mxu0 %v10450_v47 }
 0xa85   :  { %8422 = vmatpush3.bf16.msra.mxu0 %v9096_v25 }
 0xa86   :  { %8435 = vmatprep.subr.bf16.mxu0 %v10450_v47 }
 0xa88   :  { %7436 = vmatmul.mubr.msk.f32.vlgmr.msra.gmra.mrb[46].mxu0 %vm120_vm2, %v10017_v40 }
 0xa89   :  { %8437 = vmatpush3.bf16.msra.mxu0 %v9120_v33  ;;  %7473 = vmatprep.mubr.msk.f32.mxu0 %vm8984_vm0, %v10451_v59 }
 0xa8a   :  { %8438 = vmatprep.subr.bf16.mxu0 %v10450_v47 }
 0xa8d   :  { %8440 = vmatpush3.bf16.msra.mxu0 %v9142_v39 }
 0xa8e   :  { %8441 = vmatprep.subr.bf16.mxu0 %v10450_v47 }
 0xa91   :  { %8443 = vmatpush3.bf16.msra.mxu0 %v9166_v45 }
 0xa92   :  { %8444 = vmatprep.subr.bf16.mxu0 %v10450_v47 }
 0xa95   :  { %8446 = vmatpush3.bf16.msra.mxu0 %v9186_v51 }
 0xa96   :  { %8459 = vmatprep.subr.bf16.mxu0 %v10450_v47 }
 0xa98   :  { %7474 = vmatmul.mubr.msk.f32.vlgmr.msra.gmra.mrb[48].mxu0 %vm120_vm2, %v10017_v40 }
 0xa99   :  { %8461 = vmatpush3.bf16.msra.mxu0 %v9213_v57  ;;  %7511 = vmatprep.mubr.msk.f32.mxu0 %vm8984_vm0, %v10451_v59 }
 0xa9a   :  { %8462 = vmatprep.subr.bf16.mxu0 %v10450_v47 }
 0xa9d   :  { %8464 = vmatpush3.bf16.msra.mxu0 %v9239_v2 }
 0xa9e   :  { %8465 = vmatprep.subr.bf16.mxu0 %v10450_v47 }
 0xaa1   :  { %8467 = vmatpush3.bf16.msra.mxu0 %v9252_v7 }
 0xaa2   :  { %8468 = vmatprep.subr.bf16.mxu0 %v10450_v47 }
 0xaa5   :  { %8470 = vmatpush3.bf16.msra.mxu0 %v9272_v17 }
 0xaa6   :  { %8483 = vmatprep.subr.bf16.mxu0 %v10450_v47 }
 0xaba   :  { %v3735_v63 = vpop.f32.mrb[44].mxu1 }
 0xabb   :  { %v3736_v40 = vadd.f32 %v9787_v20, %v3735_v63  ;;  %v7418_v37 = vpop.f32.mrb[45].mxu1 }
 0xabd   :  { %v5920_v5 = vmul.f32 -1.442695, %v3736_v40 }
 0xabf   :  { %8869 = vpow2.f32 %v5920_v5 }
 0xac9   :  { %v8870_v48 = vpop.eup %8869 }
 0xaca   :  { %v3742_v14 = vadd.f32 1.0, %v8870_v48  ;;  %v3887_v15 = vpop.f32.mrb[46].mxu1 }
 0xacb   :  { %v3888_v11 = vadd.f32 %v9793_v26, %v3887_v15  ;;  %v7456_v27 = vpop.f32.mrb[47].mxu1 }
 0xacc   :  { %8871 = vrcp.f32 %v3742_v14 }
 0xacd   :  { %8873 = vtanh.f32 %v3888_v11 }
 0xad6   :  { %v8872_v52 = vpop.eup %8871 }
 0xad7   :  { %v8874_v58 = vpop.eup %8873 }
 0xad8   :  { %v3969_v42 = vmul.f32 %v8874_v58, %v8872_v52 }
 0xb4b   :  { %v3653_v30 = vpop.f32.mrb[44].mxu0 }
 0xb4c   :  { %v3654_v60 = vadd.f32 %v9958_v29, %v3653_v30  ;;  %v7399_v8 = vpop.f32.mrb[45].mxu0 }
 0xb4d   :  { %v3974_v8 = vpop.permute.xlu1 %3973 }
 0xb4e   :  { %5917 = vst.msk [vmem:[%s10445_s5 + $0x8] sm:$0x3] %vm857_vm3, %v3654_v60 }
 0xb5b   :  { %v3811_v20 = vpop.f32.mrb[46].mxu0 }
 0xb5c   :  { %v3812_v1 = vadd.f32 %v9804_v56, %v3811_v20  ;;  %v7437_v28 = vpop.f32.mrb[47].mxu0 }
 0xb5e   :  { %v5922_v26 = vmul.f32 -1.442695, %v3812_v1 }
 0xb60   :  { %8875 = vpow2.f32 %v5922_v26 }
 0xb6a   :  { %v8876_v63 = vpop.eup %8875 }
 0xb6b   :  { %v3818_v40 = vadd.f32 1.0, %v8876_v63  ;;  %v3958_v37 = vpop.f32.mrb[48].mxu0 }
 0xb6c   :  { %v3959_v5 = vadd.f32 %v9810_v49, %v3958_v37  ;;  %v7475_v48 = vpop.f32.mrb[49].mxu0 }
 0xb6d   :  { %8877 = vrcp.f32 %v3818_v40 }
 0xb6e   :  { %v5925_v14 = vmul.f32 -1.442695, %v3959_v5 }
 0xb70   :  { %8879 = vpow2.f32 %v5925_v14 }
 0xb77   :  { %v8878_v15 = vpop.eup %8877 }
 0xb78   :  { %v3968_v11 = vmul.f32 %v8878_v15, %v9968_v62  ;;  %v5935_v62 = vld [vmem:[%s10441_s0 + $0xc] sm:$0x3] }
 0xb7a   :  { %v8880_v27 = vpop.eup %8879  ;;  %v10097_v52 = vadd.f32 %v3969_v42, %v3968_v11 }
 0xb7b   :  { %v3965_v58 = vadd.f32 1.0, %v8880_v27 }
 0xb7c   :  { %8881 = vtanh.f32 %v10097_v52 }
 0xb7d   :  { %8883 = vrcp.f32 %v3965_v58 }
 0xb86   :  { %v8882_v56 = vpop.eup %8881 }
 0xb87   :  { %v8884_v30 = vpop.eup %8883 }
 0xb88   :  { %v3972_v60 = vmul.f32 %v8884_v30, %v8882_v56 }
 0xb8a   :  { %4362 = vrot.lane.b32.xlu0 %v3972_v60, %s8986_s15  ;;  %v3976_v49 = vsel %vm112_vm1, %v3972_v60, %v3974_v8 }
 0xb8b   :  { %7493 = vmatmul.mubr.msk.f32.vlgmr.msra.gmra.mrb[48].mxu1 %vm120_vm2, %v3976_v49  ;;  %7512 = vmatmul.mubr.msk.f32.vlgmr.msra.gmra.mrb[50].mxu0 %vm120_vm2, %v3976_v49 }
 0xb8c   :  { %8473 = vmatpush3.bf16.msra.mxu1 %v9318_v22  ;;  %8485 = vmatpush3.bf16.msra.mxu0 %v9320_v23 }
 0xb8d   :  { %8474 = vmatprep.subr.bf16.mxu1 %v10450_v47  ;;  %8486 = vmatprep.subr.bf16.mxu0 %v10450_v47 }
 0xb8e   :  { %7530 = vmatprep.mubr.msk.f32.mxu1 %vm8984_vm0, %v10451_v59  ;;  %7549 = vmatprep.mubr.msk.f32.mxu0 %vm8984_vm0, %v10451_v59 }
 0xb90   :  { %8476 = vmatpush3.bf16.msra.mxu1 %v9340_v31  ;;  %8488 = vmatpush3.bf16.msra.mxu0 %v9342_v35 }
 0xb91   :  { %8477 = vmatprep.subr.bf16.mxu1 %v10450_v47  ;;  %8489 = vmatprep.subr.bf16.mxu0 %v10450_v47 }
 0xb94   :  { %8479 = vmatpush3.bf16.msra.mxu1 %v9364_v43  ;;  %8491 = vmatpush3.bf16.msra.mxu0 %v9366_v46 }
 0xb95   :  { %8480 = vmatprep.subr.bf16.mxu1 %v10450_v47  ;;  %8492 = vmatprep.subr.bf16.mxu0 %v10450_v47 }
 0xb98   :  { %8482 = vmatpush3.bf16.msra.mxu1 %v9384_v53  ;;  %8494 = vmatpush3.bf16.msra.mxu0 %v9386_v54 }
 0xb99   :  { %8501 = vmatprep.subr.bf16.mxu0 %v10450_v47  ;;  %8495 = vmatprep.subr.bf16.mxu1 %v10450_v47 }
 0xb9b   :  { %7531 = vmatmul.mubr.msk.f32.vlgmr.msra.gmra.mrb[50].mxu1 %vm120_vm2, %v3976_v49  ;;  %7550 = vmatmul.mubr.msk.f32.vlgmr.msra.gmra.mrb[52].mxu0 %vm120_vm2, %v3976_v49 }
 0xb9c   :  { %8503 = vmatpush3.bf16.msra.mxu0 %v9028_v4  ;;  %7579 = vmatprep.mubr.msk.f32.mxu0 %vm8984_vm0, %v10451_v59 }
 0xb9d   :  { %8504 = vmatprep.subr.bf16.mxu0 %v10450_v47  ;;  %8497 = vmatpush3.bf16.msra.mxu1 %v9429_v3 }
 0xb9e   :  { %8498 = vmatprep.subr.bf16.mxu1 %v10450_v47  ;;  %7560 = vmatprep.mubr.msk.f32.mxu1 %vm8984_vm0, %v10451_v59 }
 0xba0   :  { %8506 = vmatpush3.bf16.msra.mxu0 %v9052_v12 }
 0xba1   :  { %8507 = vmatprep.subr.bf16.mxu0 %v10450_v47  ;;  %8500 = vmatpush3.bf16.msra.mxu1 %v9437_v10 }
 0xba2   :  { %8513 = vmatprep.subr.bf16.mxu1 %v10450_v47 }
 0xba4   :  { %8509 = vmatpush3.bf16.msra.mxu0 %v9072_v18 }
 0xba5   :  { %8510 = vmatprep.subr.bf16.mxu0 %v10450_v47 }
 0xba8   :  { %8512 = vmatpush3.bf16.msra.mxu0 %v9092_v24 }
 0xba9   :  { %8525 = vmatprep.subr.bf16.mxu0 %v10450_v47 }
 0xbfc   :  { %v4363_v42 = vpop.permute.xlu0 %4362 }
 0xbfd   :  { %v10146_v20 = vsel %vm112_vm1, %v5935_v62, %v4363_v42 }
 0xbfe   :  { %7580 = vmatmul.mubr.msk.f32.vlgmr.msra.gmra.mrb[54].mxu0 %vm120_vm2, %v10146_v20 }
 0xbff   :  { %8527 = vmatpush3.bf16.msra.mxu0 %v9116_v32  ;;  %7617 = vmatprep.mubr.msk.f32.mxu0 %vm8984_vm0, %v10451_v59 }
 0xc00   :  { %8528 = vmatprep.subr.bf16.mxu0 %v10450_v47 }
 0xc03   :  { %8530 = vmatpush3.bf16.msra.mxu0 %v9138_v38 }
 0xc04   :  { %8531 = vmatprep.subr.bf16.mxu0 %v10450_v47 }
 0xc07   :  { %8533 = vmatpush3.bf16.msra.mxu0 %v9162_v44 }
 0xc08   :  { %8534 = vmatprep.subr.bf16.mxu0 %v10450_v47 }
 0xc0b   :  { %8536 = vmatpush3.bf16.msra.mxu0 %v9182_v50 }
 0xc0c   :  { %8549 = vmatprep.subr.bf16.mxu0 %v10450_v47 }
 0xc0e   :  { %7618 = vmatmul.mubr.msk.f32.vlgmr.msra.gmra.mrb[56].mxu0 %vm120_vm2, %v10146_v20 }
 0xc0f   :  { %8551 = vmatpush3.bf16.msra.mxu0 %v9208_v55  ;;  %7655 = vmatprep.mubr.msk.f32.mxu0 %vm8984_vm0, %v10451_v59 }
 0xc10   :  { %8552 = vmatprep.subr.bf16.mxu0 %v10450_v47 }
 0xc13   :  { %8554 = vmatpush3.bf16.msra.mxu0 %v9228_v61 }
 0xc14   :  { %8555 = vmatprep.subr.bf16.mxu0 %v10450_v47 }
 0xc17   :  { %8557 = vmatpush3.bf16.msra.mxu0 %v9248_v6 }
 0xc18   :  { %8558 = vmatprep.subr.bf16.mxu0 %v10450_v47 }
 0xc1b   :  { %8560 = vmatpush3.bf16.msra.mxu0 %v9268_v16 }
 0xc1c   :  { %8573 = vmatprep.subr.bf16.mxu0 %v10450_v47 }
 0xc5e   :  { %v4046_v1 = vpop.f32.mrb[48].mxu1  ;;  %v4122_v28 = vpop.f32.mrb[50].mxu0 }
 0xc5f   :  { %v4047_v26 = vadd.f32 %v9892_v34, %v4046_v1  ;;  %v4123_v63 = vadd.f32 %v9898_v41, %v4122_v28  ;;  %v7494_v40 = vpop.f32.mrb[49].mxu1  ;;  %v7513_v37 = vpop.f32.mrb[51].mxu0 }
 0xc61   :  { %v5927_v5 = vmul.f32 -1.442695, %v4047_v26  ;;  %v5929_v48 = vmul.f32 -1.442695, %v4123_v63 }
 0xc63   :  { %8885 = vpow2.f32 %v5927_v5 }
 0xc64   :  { %8887 = vpow2.f32 %v5929_v48 }
 0xc6d   :  { %v8886_v14 = vpop.eup %8885 }
 0xc6e   :  { %v8888_v15 = vpop.eup %8887  ;;  %v4053_v11 = vadd.f32 1.0, %v8886_v14  ;;  %v4198_v27 = vpop.f32.mrb[50].mxu1 }
 0xc6f   :  { %v4269_v58 = vpop.f32.mrb[52].mxu0  ;;  %v4129_v56 = vadd.f32 1.0, %v8888_v15  ;;  %v4199_v30 = vadd.f32 %v9904_v0, %v4198_v27  ;;  %v7532_v8 = vpop.f32.mrb[51].mxu1 }
 0xc70   :  { %v4270_v60 = vadd.f32 %v9910_v36, %v4269_v58  ;;  %v7551_v34 = vpop.f32.mrb[53].mxu0  ;;  %8889 = vrcp.f32 %v4053_v11  ;;  %v10225_v58 = vld [vmem:[%s10442_s2 + $0x2] ss:$0 sm:$0xff] }
 0xc71   :  { %8891 = vrcp.f32 %v4129_v56 }
 0xc72   :  { %v5932_v41 = vmul.f32 -1.442695, %v4270_v60  ;;  %8893 = vtanh.f32 %v4199_v30 }
 0xc74   :  { %8895 = vpow2.f32 %v5932_v41 }
 0xc7a   :  { %v8890_v49 = vpop.eup %8889 }
 0xc7b   :  { %v8892_v62 = vpop.eup %8891 }
 0xc7c   :  { %v8894_v42 = vpop.eup %8893  ;;  %v4279_v1 = vmul.f32 %v8892_v62, %v10048_v21 }
 0xc7d   :  { %v4280_v26 = vmul.f32 %v8894_v42, %v8890_v49 }
 0xc7e   :  { %v8896_v28 = vpop.eup %8895 }
 0xc7f   :  { %v4276_v63 = vadd.f32 1.0, %v8896_v28  ;;  %v10177_v40 = vadd.f32 %v4280_v26, %v4279_v1  ;;  %v10236_v1 = vld [vmem:[%s10442_s2 + $0x1] ss:$0 sm:$0xff] }
 0xc81   :  { %8897 = vrcp.f32 %v4276_v63 }
 0xc82   :  { %8899 = vtanh.f32 %v10177_v40 }
 0xc8b   :  { %v8898_v0 = vpop.eup %8897 }
 0xc8c   :  { %v8900_v36 = vpop.eup %8899 }
 0xc8d   :  { %v4283_v37 = vmul.f32 %v8900_v36, %v8898_v0 }
 0xc8f   :  { %4673 = vrot.lane.b32.xlu1 %v4283_v37, %s8986_s15  ;;  %7561 = vmatmul.mubr.msk.f32.vlgmr.msra.gmra.mrb[52].mxu1 %vm112_vm1, %v4283_v37  ;;  %v10242_v37 = vld [vmem:[%s10442_s2 + $0x3] ss:$0 sm:$0xff] }
 0xc90   :  { %8515 = vmatpush3.bf16.msra.mxu1 %v9043_v9  ;;  %7598 = vmatprep.mubr.msk.f32.mxu1 %vm8984_vm0, %v10451_v59 }
 0xc91   :  { %8516 = vmatprep.subr.bf16.mxu1 %v10450_v47 }
 0xc94   :  { %8518 = vmatpush3.bf16.msra.mxu1 %v9056_v13 }
 0xc95   :  { %8519 = vmatprep.subr.bf16.mxu1 %v10450_v47 }
 0xc98   :  { %8521 = vmatpush3.bf16.msra.mxu1 %v9076_v19 }
 0xc99   :  { %8522 = vmatprep.subr.bf16.mxu1 %v10450_v47 }
 0xc9c   :  { %8524 = vmatpush3.bf16.msra.mxu1 %v9096_v25 }
 0xc9d   :  { %8537 = vmatprep.subr.bf16.mxu1 %v10450_v47 }
 0xc9f   :  { %7599 = vmatmul.mubr.msk.f32.vlgmr.msra.gmra.mrb[54].mxu1 %vm120_vm2, %v10146_v20 }
 0xca0   :  { %8539 = vmatpush3.bf16.msra.mxu1 %v9120_v33  ;;  %7636 = vmatprep.mubr.msk.f32.mxu1 %vm8984_vm0, %v10451_v59 }
 0xca1   :  { %8540 = vmatprep.subr.bf16.mxu1 %v10450_v47 }
 0xca4   :  { %8542 = vmatpush3.bf16.msra.mxu1 %v9142_v39 }
 0xca5   :  { %8543 = vmatprep.subr.bf16.mxu1 %v10450_v47 }
 0xca8   :  { %8545 = vmatpush3.bf16.msra.mxu1 %v9166_v45 }
 0xca9   :  { %8546 = vmatprep.subr.bf16.mxu1 %v10450_v47 }
 0xcac   :  { %8548 = vmatpush3.bf16.msra.mxu1 %v9186_v51 }
 0xcad   :  { %8561 = vmatprep.subr.bf16.mxu1 %v10450_v47 }
 0xcaf   :  { %7637 = vmatmul.mubr.msk.f32.vlgmr.msra.gmra.mrb[56].mxu1 %vm120_vm2, %v10146_v20  ;;  %v10219_v20 = vld [vmem:[%s10442_s2] ss:$0 sm:$0xff] }
 0xcb0   :  { %8563 = vmatpush3.bf16.msra.mxu1 %v9213_v57  ;;  %7674 = vmatprep.mubr.msk.f32.mxu1 %vm8984_vm0, %v10451_v59 }
 0xcb1   :  { %8564 = vmatprep.subr.bf16.mxu1 %v10450_v47 }
 0xcb4   :  { %8566 = vmatpush3.bf16.msra.mxu1 %v9239_v2 }
 0xcb5   :  { %8567 = vmatprep.subr.bf16.mxu1 %v10450_v47 }
 0xcb8   :  { %8569 = vmatpush3.bf16.msra.mxu1 %v9252_v7 }
 0xcb9   :  { %8570 = vmatprep.subr.bf16.mxu1 %v10450_v47 }
 0xcbc   :  { %8572 = vmatpush3.bf16.msra.mxu1 %v9272_v17 }
 0xcbd   :  { %8585 = vmatprep.subr.bf16.mxu1 %v10450_v47 }
 0xcd1   :  { %v4435_v21 = vpop.f32.mrb[54].mxu0 }
 0xcd2   :  { %v4436_v5 = vadd.f32 %v10219_v20, %v4435_v21  ;;  %v7581_v48 = vpop.f32.mrb[55].mxu0 }
 0xcd4   :  { %v5937_v14 = vmul.f32 -1.442695, %v4436_v5 }
 0xcd6   :  { %8901 = vpow2.f32 %v5937_v14 }
 0xce0   :  { %v8902_v15 = vpop.eup %8901 }
 0xce1   :  { %v4442_v11 = vadd.f32 1.0, %v8902_v15  ;;  %v4587_v27 = vpop.f32.mrb[56].mxu0 }
 0xce2   :  { %v4588_v56 = vadd.f32 %v10225_v58, %v4587_v27  ;;  %v7619_v30 = vpop.f32.mrb[57].mxu0 }
 0xce3   :  { %8903 = vrcp.f32 %v4442_v11 }
 0xce4   :  { %8905 = vtanh.f32 %v4588_v56 }
 0xced   :  { %v8904_v60 = vpop.eup %8903 }
 0xcee   :  { %v8906_v8 = vpop.eup %8905 }
 0xcef   :  { %v4669_v34 = vmul.f32 %v8906_v8, %v8904_v60 }
 0xd62   :  { %v4353_v41 = vpop.f32.mrb[52].mxu1 }
 0xd63   :  { %v4354_v49 = vadd.f32 %v9958_v29, %v4353_v41  ;;  %v7562_v62 = vpop.f32.mrb[53].mxu1  ;;  %v4674_v41 = vpop.permute.xlu1 %4673 }
 0xd65   :  { %5934 = vst.msk [vmem:[%s10445_s5 + $0xa] sm:$0x3] %vm857_vm3, %v4354_v49 }
 0xd72   :  { %v4511_v42 = vpop.f32.mrb[54].mxu1 }
 0xd73   :  { %v4512_v28 = vadd.f32 %v10236_v1, %v4511_v42  ;;  %v7600_v26 = vpop.f32.mrb[55].mxu1 }
 0xd75   :  { %v5939_v63 = vmul.f32 -1.442695, %v4512_v28 }
 0xd77   :  { %8907 = vpow2.f32 %v5939_v63 }
 0xd81   :  { %v8908_v0 = vpop.eup %8907 }
 0xd82   :  { %v4518_v36 = vadd.f32 1.0, %v8908_v0  ;;  %v4658_v29 = vpop.f32.mrb[56].mxu1  ;;  %v10336_v0 = vld [vmem:[%s10442_s2 + $0x6] ss:$0 sm:$0xff] }
 0xd83   :  { %v4659_v21 = vadd.f32 %v10242_v37, %v4658_v29  ;;  %v7638_v5 = vpop.f32.mrb[57].mxu1  ;;  %v10342_v29 = vld [vmem:[%s10442_s2 + $0x7] ss:$0 sm:$0xff] }
 0xd84   :  { %8909 = vrcp.f32 %v4518_v36 }
 0xd85   :  { %v5942_v48 = vmul.f32 -1.442695, %v4659_v21 }
 0xd87   :  { %8911 = vpow2.f32 %v5942_v48 }
 0xd8e   :  { %v8910_v14 = vpop.eup %8909 }
 0xd8f   :  { %v4668_v15 = vmul.f32 %v8910_v14, %v10097_v52 }
 0xd91   :  { %v8912_v11 = vpop.eup %8911  ;;  %v10246_v27 = vadd.f32 %v4669_v34, %v4668_v15 }
 0xd92   :  { %v4665_v56 = vadd.f32 1.0, %v8912_v11 }
 0xd93   :  { %8913 = vtanh.f32 %v10246_v27 }
 0xd94   :  { %8915 = vrcp.f32 %v4665_v56 }
 0xd9d   :  { %v8914_v30 = vpop.eup %8913 }
 0xd9e   :  { %v8916_v60 = vpop.eup %8915 }
 0xd9f   :  { %v4672_v8 = vmul.f32 %v8916_v60, %v8914_v30 }
 0xda1   :  { %5062 = vrot.lane.b32.xlu0 %v4672_v8, %s8986_s15  ;;  %v4676_v49 = vsel %vm112_vm1, %v4672_v8, %v4674_v41 }
 0xda2   :  { %7656 = vmatmul.mubr.msk.f32.vlgmr.msra.gmra.mrb[58].mxu0 %vm120_vm2, %v4676_v49  ;;  %7675 = vmatmul.mubr.msk.f32.vlgmr.msra.gmra.mrb[58].mxu1 %vm120_vm2, %v4676_v49 }
 0xda3   :  { %8575 = vmatpush3.bf16.msra.mxu0 %v9318_v22  ;;  %8587 = vmatpush3.bf16.msra.mxu1 %v9320_v23 }
 0xda4   :  { %8576 = vmatprep.subr.bf16.mxu0 %v10450_v47  ;;  %8588 = vmatprep.subr.bf16.mxu1 %v10450_v47 }
 0xda5   :  { %7693 = vmatprep.mubr.msk.f32.mxu0 %vm8984_vm0, %v10451_v59  ;;  %7712 = vmatprep.mubr.msk.f32.mxu1 %vm8984_vm0, %v10451_v59 }
 0xda7   :  { %8578 = vmatpush3.bf16.msra.mxu0 %v9340_v31  ;;  %8590 = vmatpush3.bf16.msra.mxu1 %v9342_v35 }
 0xda8   :  { %8579 = vmatprep.subr.bf16.mxu0 %v10450_v47  ;;  %8591 = vmatprep.subr.bf16.mxu1 %v10450_v47 }
 0xdab   :  { %8581 = vmatpush3.bf16.msra.mxu0 %v9364_v43  ;;  %8593 = vmatpush3.bf16.msra.mxu1 %v9366_v46 }
 0xdac   :  { %8582 = vmatprep.subr.bf16.mxu0 %v10450_v47  ;;  %8594 = vmatprep.subr.bf16.mxu1 %v10450_v47 }
 0xdaf   :  { %8584 = vmatpush3.bf16.msra.mxu0 %v9384_v53  ;;  %8596 = vmatpush3.bf16.msra.mxu1 %v9386_v54 }
 0xdb0   :  { %8603 = vmatprep.subr.bf16.mxu1 %v10450_v47  ;;  %8597 = vmatprep.subr.bf16.mxu0 %v10450_v47 }
 0xdb2   :  { %7694 = vmatmul.mubr.msk.f32.vlgmr.msra.gmra.mrb[60].mxu0 %vm120_vm2, %v4676_v49  ;;  %7713 = vmatmul.mubr.msk.f32.vlgmr.msra.gmra.mrb[60].mxu1 %vm120_vm2, %v4676_v49 }
 0xdb3   :  { %8605 = vmatpush3.bf16.msra.mxu1 %v9028_v4  ;;  %7742 = vmatprep.mubr.msk.f32.mxu1 %vm8984_vm0, %v10451_v59  ;;  %v5952_v4 = vld [vmem:[%s10441_s0 + $0xe] sm:$0x3] }
 0xdb4   :  { %8606 = vmatprep.subr.bf16.mxu1 %v10450_v47  ;;  %8599 = vmatpush3.bf16.msra.mxu0 %v9429_v3 }
 0xdb5   :  { %8600 = vmatprep.subr.bf16.mxu0 %v10450_v47  ;;  %7723 = vmatprep.mubr.msk.f32.mxu0 %vm8984_vm0, %v10451_v59 }
 0xdb7   :  { %8608 = vmatpush3.bf16.msra.mxu1 %v9052_v12 }
 0xdb8   :  { %8609 = vmatprep.subr.bf16.mxu1 %v10450_v47  ;;  %8602 = vmatpush3.bf16.msra.mxu0 %v9437_v10 }
 0xdb9   :  { %8615 = vmatprep.subr.bf16.mxu0 %v10450_v47 }
 0xdbb   :  { %8611 = vmatpush3.bf16.msra.mxu1 %v9072_v18 }
 0xdbc   :  { %8612 = vmatprep.subr.bf16.mxu1 %v10450_v47 }
 0xdbf   :  { %8614 = vmatpush3.bf16.msra.mxu1 %v9092_v24 }
 0xdc0   :  { %8627 = vmatprep.subr.bf16.mxu1 %v10450_v47 }
 0xe13   :  { %v5063_v52 = vpop.permute.xlu0 %5062 }
 0xe14   :  { %v10295_v12 = vsel %vm112_vm1, %v5952_v4, %v5063_v52 }
 0xe15   :  { %7743 = vmatmul.mubr.msk.f32.vlgmr.msra.gmra.mrb[62].mxu1 %vm120_vm2, %v10295_v12 }
 0xe16   :  { %8629 = vmatpush3.bf16.msra.mxu1 %v9116_v32  ;;  %7780 = vmatprep.mubr.msk.f32.mxu1 %vm8984_vm0, %v10451_v59  ;;  %v10324_v32 = vld [vmem:[%s10442_s2 + $0x4] ss:$0 sm:$0xff] }
 0xe17   :  { %8630 = vmatprep.subr.bf16.mxu1 %v10450_v47 }
 0xe1a   :  { %8632 = vmatpush3.bf16.msra.mxu1 %v9138_v38 }
 0xe1b   :  { %8633 = vmatprep.subr.bf16.mxu1 %v10450_v47 }
 0xe1e   :  { %8635 = vmatpush3.bf16.msra.mxu1 %v9162_v44  ;;  %v10330_v44 = vld [vmem:[%s10442_s2 + $0x5] ss:$0 sm:$0xff] }
 0xe1f   :  { %8636 = vmatprep.subr.bf16.mxu1 %v10450_v47 }
 0xe22   :  { %8638 = vmatpush3.bf16.msra.mxu1 %v9182_v50 }
 0xe23   :  { %8651 = vmatprep.subr.bf16.mxu1 %v10450_v47 }
 0xe25   :  { %7781 = vmatmul.mubr.msk.f32.vlgmr.msra.gmra.mrb[64].mxu1 %vm120_vm2, %v10295_v12 }
 0xe26   :  { %8653 = vmatpush3.bf16.msra.mxu1 %v9208_v55  ;;  %7818 = vmatprep.mubr.msk.f32.mxu1 %vm8984_vm0, %v10451_v59 }
 0xe27   :  { %8654 = vmatprep.subr.bf16.mxu1 %v10450_v47 }
 0xe2a   :  { %8656 = vmatpush3.bf16.msra.mxu1 %v9228_v61 }
 0xe2b   :  { %8657 = vmatprep.subr.bf16.mxu1 %v10450_v47 }
 0xe2e   :  { %8659 = vmatpush3.bf16.msra.mxu1 %v9248_v6 }
 0xe2f   :  { %8660 = vmatprep.subr.bf16.mxu1 %v10450_v47 }
 0xe32   :  { %8662 = vmatpush3.bf16.msra.mxu1 %v9268_v16 }
 0xe33   :  { %8675 = vmatprep.subr.bf16.mxu1 %v10450_v47 }
 0xe75   :  { %v4746_v18 = vpop.f32.mrb[58].mxu0  ;;  %v4822_v24 = vpop.f32.mrb[58].mxu1 }
 0xe76   :  { %v4747_v38 = vadd.f32 %v10324_v32, %v4746_v18  ;;  %v4823_v50 = vadd.f32 %v10330_v44, %v4822_v24  ;;  %v7657_v55 = vpop.f32.mrb[59].mxu0  ;;  %v7676_v61 = vpop.f32.mrb[59].mxu1 }
 0xe78   :  { %v5944_v6 = vmul.f32 -1.442695, %v4747_v38  ;;  %v5946_v16 = vmul.f32 -1.442695, %v4823_v50 }
 0xe7a   :  { %8917 = vpow2.f32 %v5944_v6 }
 0xe7b   :  { %8919 = vpow2.f32 %v5946_v16 }
 0xe84   :  { %v8918_v34 = vpop.eup %8917 }
 0xe85   :  { %v8920_v62 = vpop.eup %8919  ;;  %v4753_v42 = vadd.f32 1.0, %v8918_v34  ;;  %v4898_v28 = vpop.f32.mrb[60].mxu0 }
 0xe86   :  { %v4969_v26 = vpop.f32.mrb[60].mxu1  ;;  %v4829_v63 = vadd.f32 1.0, %v8920_v62  ;;  %v4899_v36 = vadd.f32 %v10336_v0, %v4898_v28  ;;  %v7695_v5 = vpop.f32.mrb[61].mxu0 }
 0xe87   :  { %v4970_v21 = vadd.f32 %v10342_v29, %v4969_v26  ;;  %v7714_v48 = vpop.f32.mrb[61].mxu1  ;;  %8921 = vrcp.f32 %v4753_v42 }
 0xe88   :  { %8923 = vrcp.f32 %v4829_v63 }
 0xe89   :  { %v5949_v14 = vmul.f32 -1.442695, %v4970_v21  ;;  %8925 = vtanh.f32 %v4899_v36 }
 0xe8b   :  { %8927 = vpow2.f32 %v5949_v14 }
 0xe91   :  { %v8922_v15 = vpop.eup %8921 }
 0xe92   :  { %v8924_v11 = vpop.eup %8923 }
 0xe93   :  { %v8926_v56 = vpop.eup %8925  ;;  %v4979_v30 = vmul.f32 %v8924_v11, %v10177_v40 }
 0xe94   :  { %v4980_v8 = vmul.f32 %v8926_v56, %v8922_v15 }
 0xe95   :  { %v8928_v60 = vpop.eup %8927 }
 0xe96   :  { %v4976_v41 = vadd.f32 1.0, %v8928_v60  ;;  %v10346_v49 = vadd.f32 %v4980_v8, %v4979_v30 }
 0xe98   :  { %8929 = vrcp.f32 %v4976_v41 }
 0xe99   :  { %8931 = vtanh.f32 %v10346_v49 }
 0xea2   :  { %v8930_v4 = vpop.eup %8929 }
 0xea3   :  { %v8932_v52 = vpop.eup %8931 }
 0xea4   :  { %v4983_v18 = vmul.f32 %v8932_v52, %v8930_v4 }
 0xea6   :  { %5373 = vrot.lane.b32.xlu1 %v4983_v18, %s8986_s15  ;;  %7724 = vmatmul.mubr.msk.f32.vlgmr.msra.gmra.mrb[62].mxu0 %vm112_vm1, %v4983_v18 }
 0xea7   :  { %8617 = vmatpush3.bf16.msra.mxu0 %v9043_v9  ;;  %7761 = vmatprep.mubr.msk.f32.mxu0 %vm8984_vm0, %v10451_v59 }
 0xea8   :  { %8618 = vmatprep.subr.bf16.mxu0 %v10450_v47 }
 0xeab   :  { %8620 = vmatpush3.bf16.msra.mxu0 %v9056_v13 }
 0xeac   :  { %8621 = vmatprep.subr.bf16.mxu0 %v10450_v47 }
 0xeaf   :  { %8623 = vmatpush3.bf16.msra.mxu0 %v9076_v19 }
 0xeb0   :  { %8624 = vmatprep.subr.bf16.mxu0 %v10450_v47 }
 0xeb3   :  { %8626 = vmatpush3.bf16.msra.mxu0 %v9096_v25 }
 0xeb4   :  { %8639 = vmatprep.subr.bf16.mxu0 %v10450_v47 }
 0xeb6   :  { %7762 = vmatmul.mubr.msk.f32.vlgmr.msra.gmra.mrb[64].mxu0 %vm120_vm2, %v10295_v12 }
 0xeb7   :  { %8641 = vmatpush3.bf16.msra.mxu0 %v9120_v33  ;;  %7799 = vmatprep.mubr.msk.f32.mxu0 %vm8984_vm0, %v10451_v59 }
 0xeb8   :  { %8642 = vmatprep.subr.bf16.mxu0 %v10450_v47 }
 0xebb   :  { %8644 = vmatpush3.bf16.msra.mxu0 %v9142_v39 }
 0xebc   :  { %8645 = vmatprep.subr.bf16.mxu0 %v10450_v47 }
 0xebf   :  { %8647 = vmatpush3.bf16.msra.mxu0 %v9166_v45 }
 0xec0   :  { %8648 = vmatprep.subr.bf16.mxu0 %v10450_v47 }
 0xec3   :  { %8650 = vmatpush3.bf16.msra.mxu0 %v9186_v51 }
 0xec4   :  { %8663 = vmatprep.subr.bf16.mxu0 %v10450_v47 }
 0xec6   :  { %7800 = vmatmul.mubr.msk.f32.vlgmr.msra.gmra.mrb[66].mxu0 %vm120_vm2, %v10295_v12  ;;  %v10390_v12 = vld [vmem:[%s10444_s4] ss:$0 sm:$0xff] }
 0xec7   :  { %8665 = vmatpush3.bf16.msra.mxu0 %v9213_v57  ;;  %7837 = vmatprep.mubr.msk.f32.mxu0 %vm8984_vm0, %v10451_v59 }
 0xec8   :  { %8666 = vmatprep.subr.bf16.mxu0 %v10450_v47 }
 0xecb   :  { %8668 = vmatpush3.bf16.msra.mxu0 %v9239_v2 }
 0xecc   :  { %8669 = vmatprep.subr.bf16.mxu0 %v10450_v47 }
 0xecf   :  { %8671 = vmatpush3.bf16.msra.mxu0 %v9252_v7 }
 0xed0   :  { %8672 = vmatprep.subr.bf16.mxu0 %v10450_v47 }
 0xed3   :  { %8674 = vmatpush3.bf16.msra.mxu0 %v9272_v17 }
 0xed4   :  { %8687 = vmatprep.subr.bf16.mxu0 %v10450_v47 }
 0xee8   :  { %v5135_v9 = vpop.f32.mrb[62].mxu1 }
 0xee9   :  { %v5136_v13 = vadd.f32 %v10219_v20, %v5135_v9  ;;  %v7744_v19 = vpop.f32.mrb[63].mxu1 }
 0xeeb   :  { %v5954_v25 = vmul.f32 -1.442695, %v5136_v13 }
 0xeed   :  { %8933 = vpow2.f32 %v5954_v25 }
 0xef7   :  { %v8934_v33 = vpop.eup %8933 }
 0xef8   :  { %v5142_v39 = vadd.f32 1.0, %v8934_v33  ;;  %v5287_v45 = vpop.f32.mrb[64].mxu1 }
 0xef9   :  { %v5288_v51 = vadd.f32 %v10225_v58, %v5287_v45  ;;  %v7782_v57 = vpop.f32.mrb[65].mxu1 }
 0xefa   :  { %8935 = vrcp.f32 %v5142_v39 }
 0xefb   :  { %8937 = vtanh.f32 %v5288_v51 }
 0xf04   :  { %v8936_v2 = vpop.eup %8935 }
 0xf05   :  { %v8938_v7 = vpop.eup %8937 }
 0xf06   :  { %v5369_v40 = vmul.f32 %v8938_v7, %v8936_v2 }
 0xf18   :  { %v5374_v14 = vpop.permute.xlu1 %5373 }
 0xf79   :  { %v5053_v17 = vpop.f32.mrb[62].mxu0 }
 0xf7a   :  { %v5054_v20 = vadd.f32 %v10390_v12, %v5053_v17  ;;  %v7725_v24 = vpop.f32.mrb[63].mxu0 }
 0xf7c   :  { %5951 = vst.msk [vmem:[%s10445_s5 + $0xc] sm:$0x3] %vm857_vm3, %v5054_v20 }
 0xf89   :  { %v5211_v58 = vpop.f32.mrb[64].mxu0 }
 0xf8a   :  { %v5212_v38 = vadd.f32 %v10236_v1, %v5211_v58  ;;  %v7763_v50 = vpop.f32.mrb[65].mxu0 }
 0xf8c   :  { %v5956_v55 = vmul.f32 -1.442695, %v5212_v38 }
 0xf8e   :  { %8939 = vpow2.f32 %v5956_v55 }
 0xf98   :  { %v8940_v61 = vpop.eup %8939 }
 0xf99   :  { %v5218_v6 = vadd.f32 1.0, %v8940_v61  ;;  %v5358_v16 = vpop.f32.mrb[66].mxu0 }
 0xf9a   :  { %v5359_v34 = vadd.f32 %v10242_v37, %v5358_v16  ;;  %v7801_v62 = vpop.f32.mrb[67].mxu0 }
 0xf9b   :  { %8941 = vrcp.f32 %v5218_v6 }
 0xf9c   :  { %v5959_v42 = vmul.f32 -1.442695, %v5359_v34 }
 0xf9e   :  { %8943 = vpow2.f32 %v5959_v42 }
 0xfa5   :  { %v8942_v28 = vpop.eup %8941 }
 0xfa6   :  { %v5368_v26 = vmul.f32 %v8942_v28, %v10246_v27 }
 0xfa8   :  { %v8944_v63 = vpop.eup %8943  ;;  %v5370_v36 = vadd.f32 %v5369_v40, %v5368_v26 }
 0xfa9   :  { %v5365_v21 = vadd.f32 1.0, %v8944_v63 }
 0xfaa   :  { %8945 = vtanh.f32 %v5370_v36 }
 0xfab   :  { %8947 = vrcp.f32 %v5365_v21 }
 0xfb4   :  { %v8946_v1 = vpop.eup %8945 }
 0xfb5   :  { %v8948_v5 = vpop.eup %8947 }
 0xfb6   :  { %v5372_v48 = vmul.f32 %v8948_v5, %v8946_v1 }
 0xfb8   :  { %v5376_v15 = vsel %vm112_vm1, %v5372_v48, %v5374_v14 }
 0xfb9   :  { %7819 = vmatmul.mubr.msk.f32.vlgmr.msra.gmra.mrb[66].mxu1 %vm120_vm2, %v5376_v15  ;;  %7838 = vmatmul.mubr.msk.f32.vlgmr.msra.gmra.mrb[68].mxu0 %vm120_vm2, %v5376_v15 }
 0xfba   :  { %8677 = vmatpush3.bf16.msra.mxu1 %v9318_v22  ;;  %8689 = vmatpush3.bf16.msra.mxu0 %v9320_v23 }
 0xfbb   :  { %8678 = vmatprep.subr.bf16.mxu1 %v10450_v47  ;;  %8690 = vmatprep.subr.bf16.mxu0 %v10450_v47 }
 0xfbc   :  { %7856 = vmatprep.mubr.msk.f32.mxu1 %vm8984_vm0, %v10451_v59  ;;  %7875 = vmatprep.mubr.msk.f32.mxu0 %vm8984_vm0, %v10451_v59 }
 0xfbe   :  { %8680 = vmatpush3.bf16.msra.mxu1 %v9340_v31  ;;  %8692 = vmatpush3.bf16.msra.mxu0 %v9342_v35 }
 0xfbf   :  { %8681 = vmatprep.subr.bf16.mxu1 %v10450_v47  ;;  %8693 = vmatprep.subr.bf16.mxu0 %v10450_v47 }
 0xfc2   :  { %8683 = vmatpush3.bf16.msra.mxu1 %v9364_v43  ;;  %8695 = vmatpush3.bf16.msra.mxu0 %v9366_v46 }
 0xfc3   :  { %8684 = vmatprep.subr.bf16.mxu1 %v10450_v47  ;;  %8696 = vmatprep.subr.bf16.mxu0 %v10450_v47 }
 0xfc6   :  { %8686 = vmatpush3.bf16.msra.mxu1 %v9384_v53  ;;  %8698 = vmatpush3.bf16.msra.mxu0 %v9386_v54 }
 0xfc7   :  { %8699 = vmatprep.subr.bf16.mxu1 %v10450_v47 }
 0xfc9   :  { %7857 = vmatmul.mubr.msk.f32.vlgmr.msra.gmra.mrb[68].mxu1 %vm120_vm2, %v5376_v15  ;;  %7876 = vmatmul.mubr.msk.f32.vlgmr.msra.gmra.mrb[70].mxu0 %vm120_vm2, %v5376_v15 }
 0xfca   :  { %8701 = vmatpush3.bf16.msra.mxu1 %v9429_v3  ;;  %7886 = vmatprep.mubr.msk.f32.mxu1 %vm8984_vm0, %v10451_v59 }
 0xfcb   :  { %8702 = vmatprep.subr.bf16.mxu1 %v10450_v47 }
 0xfce   :  { %8704 = vmatpush3.bf16.msra.mxu1 %v9437_v10 }
0x108c   :  { %v5446_v22 = vpop.f32.mrb[66].mxu1  ;;  %v5522_v23 = vpop.f32.mrb[68].mxu0 }
0x108d   :  { %v5447_v31 = vadd.f32 %v10324_v32, %v5446_v22  ;;  %v5523_v35 = vadd.f32 %v10330_v44, %v5522_v23  ;;  %v7820_v43 = vpop.f32.mrb[67].mxu1  ;;  %v7839_v46 = vpop.f32.mrb[69].mxu0 }
0x108f   :  { %v5961_v53 = vmul.f32 -1.442695, %v5447_v31  ;;  %v5963_v54 = vmul.f32 -1.442695, %v5523_v35 }
0x1091   :  { %8949 = vpow2.f32 %v5961_v53 }
0x1092   :  { %8951 = vpow2.f32 %v5963_v54 }
0x109b   :  { %v8950_v3 = vpop.eup %8949 }
0x109c   :  { %v8952_v37 = vpop.eup %8951  ;;  %v5453_v27 = vadd.f32 1.0, %v8950_v3  ;;  %v5598_v59 = vpop.f32.mrb[68].mxu1 }
0x109d   :  { %v5669_v11 = vpop.f32.mrb[70].mxu0  ;;  %v5529_v47 = vadd.f32 1.0, %v8952_v37  ;;  %v5599_v10 = vadd.f32 %v10336_v0, %v5598_v59  ;;  %v7858_v30 = vpop.f32.mrb[69].mxu1 }
0x109e   :  { %v5670_v56 = vadd.f32 %v10342_v29, %v5669_v11  ;;  %v7877_v32 = vpop.f32.mrb[71].mxu0  ;;  %8953 = vrcp.f32 %v5453_v27 }
0x109f   :  { %8955 = vrcp.f32 %v5529_v47 }
0x10a0   :  { %v5966_v44 = vmul.f32 -1.442695, %v5670_v56  ;;  %8957 = vtanh.f32 %v5599_v10 }
0x10a2   :  { %8959 = vpow2.f32 %v5966_v44 }
0x10a8   :  { %v8954_v60 = vpop.eup %8953 }
0x10a9   :  { %v8956_v8 = vpop.eup %8955 }
0x10aa   :  { %v8958_v41 = vpop.eup %8957  ;;  %v5679_v4 = vmul.f32 %v8956_v8, %v10346_v49 }
0x10ab   :  { %v5680_v18 = vmul.f32 %v8958_v41, %v8954_v60 }
0x10ac   :  { %v8960_v52 = vpop.eup %8959 }
0x10ad   :  { %v5676_v9 = vadd.f32 1.0, %v8960_v52  ;;  %v5681_v13 = vadd.f32 %v5680_v18, %v5679_v4 }
0x10af   :  { %8961 = vrcp.f32 %v5676_v9 }
0x10b0   :  { %8963 = vtanh.f32 %v5681_v13 }
0x10b9   :  { %v8962_v0 = vpop.eup %8961 }
0x10ba   :  { %v8964_v29 = vpop.eup %8963 }
0x10bb   :  { %v5683_v19 = vmul.f32 %v8964_v29, %v8962_v0 }
0x10bd   :  { %7887 = vmatmul.mubr.msk.f32.vlgmr.msra.gmra.mrb[70].mxu1 %vm112_vm1, %v5683_v19 }
0x1190   :  { %v5753_v25 = vpop.f32.mrb[70].mxu1 }
0x1191   :  { %v5754_v33 = vadd.f32 %v10390_v12, %v5753_v25  ;;  %v7888_v39 = vpop.f32.mrb[71].mxu1 }
0x1193   :  { %5968 = vst.msk [vmem:[%s10445_s5 + $0xe] sm:$0x3] %vm857_vm3, %v5754_v33 }

</bundles_post_ra>
